<compile_context>
chip_gen: v6e
topology: v6e:2x2x1
jax: 0.10.0
libtpu: 0.0.40
codegen_flags: <defaults>
</compile_context>

<pallas_src>
import numpy as np
import jax
import jax.numpy as jnp
from jax import lax
from jax.experimental import pallas as pl
from jax.experimental.pallas import tpu as pltpu

D_IN = 128 * 3 * 3      # 1152 = 9 * 128
D_H1 = 3072
D_H2 = 2048
D_OUT = 10
OUT_PAD = 128           # lane-dense padded logits width
TILE = 512              # tile of the D_H1 axis streamed per grid step (3072 = 6*512)
MAX_BT = 256            # max batch-tile (rows per grid step along the batch axis)
BN_EPS = 1e-5


def fused_mlp_kernel(x_ref, w1_ref, st1_ref, w2_ref, st2_ref, w3_ref, b3_ref,
                     o_ref, acc_ref):
    j = pl.program_id(1)

    @pl.when(j == 0)
    def _():
        acc_ref[...] = jnp.zeros_like(acc_ref)

    # fc1 tile (bf16 MXU, f32 accumulate) + folded bn1 + relu:
    #   (BT, 1152) @ (1152, TILE) -> (BT, TILE)
    h = jnp.dot(x_ref[...].astype(jnp.bfloat16), w1_ref[...],
                preferred_element_type=jnp.float32)
    st1 = st1_ref[...]                                  # (2, TILE) f32: [scale; shift]
    h = jnp.maximum(h * st1[0:1, :] + st1[1:2, :], 0.0)
    # TODO(synk): F.dropout(logits) (training=True by default in the functional API)
    # is treated as identity (inference semantics); stochastic dropout not reproduced.

    # fc2 partial product accumulated in f32 VMEM:  (BT, TILE) @ (TILE, 2048)
    acc_ref[...] += jnp.dot(h.astype(jnp.bfloat16), w2_ref[...],
                            preferred_element_type=jnp.float32)

    @pl.when(j == pl.num_programs(1) - 1)
    def _():
        # bn2 (folded) + relu, then fc3 (padded to 128 lanes) + log_softmax.
        st2 = st2_ref[...]                              # (2, 2048) f32
        h2 = jnp.maximum(acc_ref[...] * st2[0:1, :] + st2[1:2, :], 0.0)
        logits = jnp.dot(h2.astype(jnp.bfloat16), w3_ref[...],
                         preferred_element_type=jnp.float32) + b3_ref[...]
        m = jnp.max(logits, axis=-1, keepdims=True)
        lse = m + jnp.log(jnp.sum(jnp.exp(logits - m), axis=-1, keepdims=True))
        o_ref[...] = (logits - lse).astype(o_ref.dtype)


def prepare_params(params, weight_dtype=jnp.bfloat16):
    """One-time weight prep: BN fold, transpose, fc3 lane-padding, bf16 cast.

    Call ONCE and reuse the result for every forward call.
    """
    (W1, b1, g1, be1, m1, v1,
     W2, b2, g2, be2, m2, v2,
     W3, b3) = params

    # TODO(synk): BatchNorm1d uses eval-mode running statistics (training-mode batch
    # statistics are not reproduced). Fold bn + linear bias into per-feature
    # scale/shift:  bn(y + b) = y*s + ((b - mean)*s + beta).
    s1 = g1 / jnp.sqrt(v1 + BN_EPS)
    t1 = (b1 - m1) * s1 + be1
    s2 = g2 / jnp.sqrt(v2 + BN_EPS)
    t2 = (b2 - m2) * s2 + be2
    st1 = jnp.stack([s1, t1]).astype(jnp.float32)                 # (2, 3072)
    st2 = jnp.stack([s2, t2]).astype(jnp.float32)                 # (2, 2048)

    w1 = jnp.transpose(W1).astype(weight_dtype)                   # (1152, 3072) bf16
    w2 = jnp.transpose(W2).astype(weight_dtype)                   # (3072, 2048) bf16
    # fc3 padded to a lane-dense 128-wide output; pad bias = -1e30 (f32) so padded
    # columns contribute exp(.) == 0 to the in-kernel log_softmax (exact for the 10).
    w3 = jnp.zeros((D_H2, OUT_PAD), weight_dtype).at[:, :D_OUT].set(
        jnp.transpose(W3).astype(weight_dtype))
    b3p = jnp.full((1, OUT_PAD), -1e30, jnp.float32).at[0, :D_OUT].set(
        b3.astype(jnp.float32))
    return (w1, st1, w2, st2, w3, b3p)


@jax.jit
def svhn_class_classifier_forward(x, prepared):
    w1, st1, w2, st2, w3, b3p = prepared

    B = x.shape[0]
    # Batch tiling: sublane-pad to 8, tile at MAX_BT rows per grid step.
    bt = MAX_BT if B >= MAX_BT else ((B + 7) // 8) * 8
    Bp = ((B + bt - 1) // bt) * bt
    xp = jnp.pad(x.astype(jnp.float32), ((0, Bp - B), (0, 0)))

    nb = Bp // bt
    nt = D_H1 // TILE

    weight_bytes = 2 * (D_IN * D_H1 + D_H1 * D_H2 + D_H2 * OUT_PAD)   # bf16
    cost = pl.CostEstimate(
        flops=2 * Bp * (D_IN * D_H1 + D_H1 * D_H2 + D_H2 * OUT_PAD),
        transcendentals=Bp * OUT_PAD,
        bytes_accessed=(nb * weight_bytes
                        + 4 * (2 * D_H1 + 2 * D_H2 + OUT_PAD)
                        + 4 * Bp * (D_IN + OUT_PAD)),
    )

    out = pl.pallas_call(
        fused_mlp_kernel,
        out_shape=jax.ShapeDtypeStruct((Bp, OUT_PAD), jnp.float32),
        grid=(nb, nt),
        in_specs=[
            pl.BlockSpec((bt, D_IN), lambda i, j: (i, 0)),         # x batch tile
            pl.BlockSpec((D_IN, TILE), lambda i, j: (0, j)),       # W1 tile (bf16)
            pl.BlockSpec((2, TILE), lambda i, j: (0, j)),          # bn1 scale/shift
            pl.BlockSpec((TILE, D_H2), lambda i, j: (j, 0)),       # W2 tile (bf16)
            pl.BlockSpec((2, D_H2), lambda i, j: (0, 0)),          # bn2 scale/shift
            pl.BlockSpec((D_H2, OUT_PAD), lambda i, j: (0, 0)),    # W3 padded (bf16)
            pl.BlockSpec((1, OUT_PAD), lambda i, j: (0, 0)),       # b3 padded (f32)
        ],
        out_specs=pl.BlockSpec((bt, OUT_PAD), lambda i, j: (i, 0)),
        scratch_shapes=[pltpu.VMEM((bt, D_H2), jnp.float32)],      # fc2 accumulator
        compiler_params=pltpu.CompilerParams(
            dimension_semantics=("parallel", "arbitrary"),         # reduction last
            vmem_limit_bytes=32 * 1024 * 1024),
        cost_estimate=cost,
    )(xp, w1, st1, w2, st2, w3, b3p)

    return out[:B, :D_OUT]


# ---------------------------------------------------------------------------
# Pure-JAX reference (f32, HIGHEST precision) for a correctness check
# ---------------------------------------------------------------------------
def reference_forward(x, params):
    (W1, b1, g1, be1, m1, v1,
     W2, b2, g2, be2, m2, v2,
     W3, b3) = params
    hp = lax.Precision.HIGHEST
    y = jnp.dot(x, W1.T, precision=hp) + b1
    y = (y - m1) / jnp.sqrt(v1 + BN_EPS) * g1 + be1
    y = jnp.maximum(y, 0.0)
    # dropout: identity (inference semantics)
    y = jnp.dot(y, W2.T, precision=hp) + b2
    y = (y - m2) / jnp.sqrt(v2 + BN_EPS) * g2 + be2
    y = jnp.maximum(y, 0.0)
    y = jnp.dot(y, W3.T, precision=hp) + b3
    return jax.nn.log_softmax(y, axis=1)


if __name__ == "__main__":
    key = jax.random.PRNGKey(0)
    ks = jax.random.split(key, 16)

    B = 2
    x = jax.random.normal(ks[0], (B, D_IN), jnp.float32)

    def lin_init(kw, kb, fan_in, fan_out):
        bound = 1.0 / float(np.sqrt(fan_in))
        W = jax.random.uniform(kw, (fan_out, fan_in), jnp.float32, -bound, bound)
        b = jax.random.uniform(kb, (fan_out,), jnp.float32, -bound, bound)
        return W, b

    def bn_init(kg, kb, km, kv, n):
        g = jax.random.uniform(kg, (n,), jnp.float32, 0.5, 1.5)
        be = jax.random.uniform(kb, (n,), jnp.float32, -0.5, 0.5)
        m = 0.1 * jax.random.normal(km, (n,), jnp.float32)
        v = jax.random.uniform(kv, (n,), jnp.float32, 0.5, 1.5)
        return g, be, m, v

    W1, b1 = lin_init(ks[1], ks[2], D_IN, D_H1)
    g1, be1, m1, v1 = bn_init(ks[3], ks[4], ks[5], ks[6], D_H1)
    W2, b2 = lin_init(ks[7], ks[8], D_H1, D_H2)
    g2, be2, m2, v2 = bn_init(ks[9], ks[10], ks[11], ks[12], D_H2)
    W3, b3 = lin_init(ks[13], ks[14], D_H2, D_OUT)

    params = (W1, b1, g1, be1, m1, v1, W2, b2, g2, be2, m2, v2, W3, b3)

    # One-time weight preparation (BN fold, transpose, pad, bf16 cast).
    prepared = jax.block_until_ready(prepare_params(params))

    out = jax.block_until_ready(svhn_class_classifier_forward(x, prepared))
    assert out.shape == (B, D_OUT), out.shape

    ref = jax.block_until_ready(reference_forward(x, params))
    np.testing.assert_allclose(np.asarray(out), np.asarray(ref), rtol=2e-2, atol=2e-2)

    print("KERNEL_OK")
</pallas_src>

<mosaic_0001>
module attributes {stable_mosaic.version = 11 : i64} {
  func.func @fused_mlp_kernel(%arg0: i32, %arg1: i32, %arg2: memref<8x1152xf32, #tpu.memory_space<vmem>>, %arg3: memref<1152x512xbf16, #tpu.memory_space<vmem>>, %arg4: memref<2x512xf32, #tpu.memory_space<vmem>>, %arg5: memref<512x2048xbf16, #tpu.memory_space<vmem>>, %arg6: memref<2x2048xf32, #tpu.memory_space<vmem>>, %arg7: memref<2048x128xbf16, #tpu.memory_space<vmem>>, %arg8: memref<1x128xf32, #tpu.memory_space<vmem>>, %arg9: memref<8x128xf32, #tpu.memory_space<vmem>>, %arg10: memref<8x2048xf32, #tpu.memory_space<vmem>>) attributes {dimension_semantics = [#tpu.dimension_semantics<parallel>, #tpu.dimension_semantics<arbitrary>], iteration_bounds = array<i64: 1, 6>, scalar_prefetch = 0 : i64, scratch_operands = 1 : i64, tpu.core_type = #tpu.core_type<tc>, window_params = [{transform_indices = @transform_0, window_bounds = array<i64: 8, 1152>}, {transform_indices = @transform_1, window_bounds = array<i64: 1152, 512>}, {transform_indices = @transform_2, window_bounds = array<i64: 2, 512>}, {transform_indices = @transform_3, window_bounds = array<i64: 512, 2048>}, {pipeline_mode = #tpu.pipeline_mode<synchronous>, transform_indices = @transform_4, window_bounds = array<i64: 2, 2048>}, {pipeline_mode = #tpu.pipeline_mode<synchronous>, transform_indices = @transform_5, window_bounds = array<i64: 2048, 128>}, {pipeline_mode = #tpu.pipeline_mode<synchronous>, transform_indices = @transform_6, window_bounds = array<i64: 1, 128>}, {transform_indices = @transform_7, window_bounds = array<i64: 8, 128>}]} {
    %c0_i32 = arith.constant 0 : i32
    %0 = arith.cmpi eq, %arg1, %c0_i32 : i32
    %1 = arith.extui %0 : i1 to i32
    %c0_i32_0 = arith.constant 0 : i32
    %2 = arith.cmpi ne, %1, %c0_i32_0 : i32
    scf.if %2 {
      %cst_15 = arith.constant 0.000000e+00 : f32
      %25 = vector.broadcast %cst_15 : f32 to vector<8x2048xf32>
      %c0_16 = arith.constant 0 : index
      %c0_17 = arith.constant 0 : index
      %26 = vector.load %arg10[%c0_16, %c0_17] : memref<8x2048xf32, #tpu.memory_space<vmem>>, vector<8x2048xf32>
      tpu.vector_store %arg10[%c0_16, %c0_17], %25 {strides = array<i32>} : memref<8x2048xf32, #tpu.memory_space<vmem>>, vector<8x2048xf32>,
    } else {
    }
    %c0 = arith.constant 0 : index
    %c0_1 = arith.constant 0 : index
    %3 = vector.load %arg2[%c0, %c0_1] : memref<8x1152xf32, #tpu.memory_space<vmem>>, vector<8x1152xf32>
    %4 = arith.truncf %3 : vector<8x1152xf32> to vector<8x1152xbf16>
    %c0_2 = arith.constant 0 : index
    %c0_3 = arith.constant 0 : index
    %5 = vector.load %arg3[%c0_2, %c0_3] : memref<1152x512xbf16, #tpu.memory_space<vmem>>, vector<1152x512xbf16>
    %cst = arith.constant dense<0.000000e+00> : vector<8x512xf32>
    %6 = tpu.matmul %4, %5, %cst {dimension_numbers = #tpu.dot_dimension_numbers<[1], [0], [0], [1], [0, 0, 1, 1], [], []>} : vector<8x1152xbf16>, vector<1152x512xbf16>, vector<8x512xf32> -> vector<8x512xf32>
    %c0_4 = arith.constant 0 : index
    %c0_5 = arith.constant 0 : index
    %7 = vector.load %arg4[%c0_4, %c0_5] : memref<2x512xf32, #tpu.memory_space<vmem>>, vector<2x512xf32>
    %8 = vector.extract_strided_slice %7 {offsets = [0, 0], sizes = [1, 512], strides = [1, 1]} : vector<2x512xf32> to vector<1x512xf32>
    %9 = vector.broadcast %8 : vector<1x512xf32> to vector<8x512xf32>
    %10 = arith.mulf %6, %9 : vector<8x512xf32>
    %11 = vector.extract_strided_slice %7 {offsets = [1, 0], sizes = [1, 512], strides = [1, 1]} : vector<2x512xf32> to vector<1x512xf32>
    %12 = vector.broadcast %11 : vector<1x512xf32> to vector<8x512xf32>
    %13 = arith.addf %10, %12 : vector<8x512xf32>
    %cst_6 = arith.constant 0.000000e+00 : f32
    %14 = vector.broadcast %cst_6 : f32 to vector<8x512xf32>
    %15 = arith.maximumf %13, %14 : vector<8x512xf32>
    %c0_7 = arith.constant 0 : index
    %c0_8 = arith.constant 0 : index
    %16 = vector.load %arg10[%c0_7, %c0_8] : memref<8x2048xf32, #tpu.memory_space<vmem>>, vector<8x2048xf32>
    %17 = arith.truncf %15 : vector<8x512xf32> to vector<8x512xbf16>
    %c0_9 = arith.constant 0 : index
    %c0_10 = arith.constant 0 : index
    %18 = vector.load %arg5[%c0_9, %c0_10] : memref<512x2048xbf16, #tpu.memory_space<vmem>>, vector<512x2048xbf16>
    %cst_11 = arith.constant dense<0.000000e+00> : vector<8x2048xf32>
    %19 = tpu.matmul %17, %18, %cst_11 {dimension_numbers = #tpu.dot_dimension_numbers<[1], [0], [0], [1], [0, 0, 1, 1], [], []>} : vector<8x512xbf16>, vector<512x2048xbf16>, vector<8x2048xf32> -> vector<8x2048xf32>
    %20 = arith.addf %16, %19 : vector<8x2048xf32>
    %c0_12 = arith.constant 0 : index
    %c0_13 = arith.constant 0 : index
    %21 = vector.load %arg10[%c0_12, %c0_13] : memref<8x2048xf32, #tpu.memory_space<vmem>>, vector<8x2048xf32>
    tpu.vector_store %arg10[%c0_12, %c0_13], %20 {strides = array<i32>} : memref<8x2048xf32, #tpu.memory_space<vmem>>, vector<8x2048xf32>,
    %c5_i32 = arith.constant 5 : i32
    %22 = arith.cmpi eq, %arg1, %c5_i32 : i32
    %23 = arith.extui %22 : i1 to i32
    %c0_i32_14 = arith.constant 0 : i32
    %24 = arith.cmpi ne, %23, %c0_i32_14 : i32
    scf.if %24 {
      %c0_15 = arith.constant 0 : index
      %c0_16 = arith.constant 0 : index
      %25 = vector.load %arg6[%c0_15, %c0_16] : memref<2x2048xf32, #tpu.memory_space<vmem>>, vector<2x2048xf32>
      %c0_17 = arith.constant 0 : index
      %c0_18 = arith.constant 0 : index
      %26 = vector.load %arg10[%c0_17, %c0_18] : memref<8x2048xf32, #tpu.memory_space<vmem>>, vector<8x2048xf32>
      %27 = vector.extract_strided_slice %25 {offsets = [0, 0], sizes = [1, 2048], strides = [1, 1]} : vector<2x2048xf32> to vector<1x2048xf32>
      %28 = vector.broadcast %27 : vector<1x2048xf32> to vector<8x2048xf32>
      %29 = arith.mulf %26, %28 : vector<8x2048xf32>
      %30 = vector.extract_strided_slice %25 {offsets = [1, 0], sizes = [1, 2048], strides = [1, 1]} : vector<2x2048xf32> to vector<1x2048xf32>
      %31 = vector.broadcast %30 : vector<1x2048xf32> to vector<8x2048xf32>
      %32 = arith.addf %29, %31 : vector<8x2048xf32>
      %cst_19 = arith.constant 0.000000e+00 : f32
      %33 = vector.broadcast %cst_19 : f32 to vector<8x2048xf32>
      %34 = arith.maximumf %32, %33 : vector<8x2048xf32>
      %35 = arith.truncf %34 : vector<8x2048xf32> to vector<8x2048xbf16>
      %c0_20 = arith.constant 0 : index
      %c0_21 = arith.constant 0 : index
      %36 = vector.load %arg7[%c0_20, %c0_21] : memref<2048x128xbf16, #tpu.memory_space<vmem>>, vector<2048x128xbf16>
      %cst_22 = arith.constant dense<0.000000e+00> : vector<8x128xf32>
      %37 = tpu.matmul %35, %36, %cst_22 {dimension_numbers = #tpu.dot_dimension_numbers<[1], [0], [0], [1], [0, 0, 1, 1], [], []>} : vector<8x2048xbf16>, vector<2048x128xbf16>, vector<8x128xf32> -> vector<8x128xf32>
      %c0_23 = arith.constant 0 : index
      %c0_24 = arith.constant 0 : index
      %38 = vector.load %arg8[%c0_23, %c0_24] : memref<1x128xf32, #tpu.memory_space<vmem>>, vector<1x128xf32>
      %39 = vector.broadcast %38 : vector<1x128xf32> to vector<8x128xf32>
      %40 = arith.addf %37, %39 : vector<8x128xf32>
      %cst_25 = arith.constant dense<0xFF800000> : vector<8xf32>
      %41 = vector.multi_reduction <maximumf>, %40, %cst_25 [1] : vector<8x128xf32> to vector<8xf32>
      %42 = vector.shape_cast %41 : vector<8xf32> to vector<8x1xf32>
      %43 = vector.broadcast %42 : vector<8x1xf32> to vector<8x128xf32>
      %44 = arith.subf %40, %43 : vector<8x128xf32>
      %45 = math.exp %44 : vector<8x128xf32>
      %cst_26 = arith.constant dense<0.000000e+00> : vector<8xf32>
      %46 = vector.multi_reduction <add>, %45, %cst_26 [1] : vector<8x128xf32> to vector<8xf32>
      %47 = vector.shape_cast %46 : vector<8xf32> to vector<8x1xf32>
      %48 = math.log %47 : vector<8x1xf32>
      %49 = arith.addf %42, %48 : vector<8x1xf32>
      %50 = vector.broadcast %49 : vector<8x1xf32> to vector<8x128xf32>
      %51 = arith.subf %40, %50 : vector<8x128xf32>
      %c0_27 = arith.constant 0 : index
      %c0_28 = arith.constant 0 : index
      %52 = vector.load %arg9[%c0_27, %c0_28] : memref<8x128xf32, #tpu.memory_space<vmem>>, vector<8x128xf32>
      tpu.vector_store %arg9[%c0_27, %c0_28], %51 {strides = array<i32>} : memref<8x128xf32, #tpu.memory_space<vmem>>, vector<8x128xf32>,
    } else {
    }
    return
  }
  func.func @transform_0(%arg0: i32, %arg1: i32) -> (i32, i32) {
    %c0_i32 = arith.constant 0 : i32
    %c0_i32_0 = arith.constant 0 : i32
    return %arg0, %c0_i32 : i32, i32
  }
  func.func @transform_1(%arg0: i32, %arg1: i32) -> (i32, i32) {
    %c0_i32 = arith.constant 0 : i32
    %c0_i32_0 = arith.constant 0 : i32
    return %c0_i32, %arg1 : i32, i32
  }
  func.func @transform_2(%arg0: i32, %arg1: i32) -> (i32, i32) {
    %c0_i32 = arith.constant 0 : i32
    %c0_i32_0 = arith.constant 0 : i32
    return %c0_i32, %arg1 : i32, i32
  }
  func.func @transform_3(%arg0: i32, %arg1: i32) -> (i32, i32) {
    %c0_i32 = arith.constant 0 : i32
    %c0_i32_0 = arith.constant 0 : i32
    return %arg1, %c0_i32 : i32, i32
  }
  func.func @transform_4(%arg0: i32, %arg1: i32) -> (i32, i32) {
    %c0_i32 = arith.constant 0 : i32
    %c0_i32_0 = arith.constant 0 : i32
    %c0_i32_1 = arith.constant 0 : i32
    return %c0_i32, %c0_i32_0 : i32, i32
  }
  func.func @transform_5(%arg0: i32, %arg1: i32) -> (i32, i32) {
    %c0_i32 = arith.constant 0 : i32
    %c0_i32_0 = arith.constant 0 : i32
    %c0_i32_1 = arith.constant 0 : i32
    return %c0_i32, %c0_i32_0 : i32, i32
  }
  func.func @transform_6(%arg0: i32, %arg1: i32) -> (i32, i32) {
    %c0_i32 = arith.constant 0 : i32
    %c0_i32_0 = arith.constant 0 : i32
    %c0_i32_1 = arith.constant 0 : i32
    return %c0_i32, %c0_i32_0 : i32, i32
  }
  func.func @transform_7(%arg0: i32, %arg1: i32) -> (i32, i32) {
    %c0_i32 = arith.constant 0 : i32
    %c0_i32_0 = arith.constant 0 : i32
    return %arg0, %c0_i32 : i32, i32
  }
}

</mosaic_0001>

<bundles_post_ra>
// kernel: svhn_class_classifier_forward.1
= control target key start
LH: loop header
LB: loop body
LE: loop exit
PB: predicated region body
PF: predicated region fallthrough
CT: control target
= control target key end

     0   :  { %s11778_s0 = inlined_call_operand.vmem [shape: f32[8,1152], index: 0, kind: input, shape index: {}]   ;;  %s11779_s1 = inlined_call_operand.hbm [shape: bf16[1152,3072], index: 1, kind: input, shape index: {}]   ;;  %s11780_s2 = inlined_call_operand.hbm [shape: f32[2,3072], index: 2, kind: input, shape index: {}]   ;;  %s11781_s3 = inlined_call_operand.hbm [shape: bf16[3072,2048], index: 3, kind: input, shape index: {}]   ;;  %s11782_s4 = inlined_call_operand.hbm [shape: f32[2,2048], index: 4, kind: input, shape index: {}]   ;;  %s11783_s5 = inlined_call_operand.hbm [shape: bf16[2048,128], index: 5, kind: input, shape index: {}]   ;;  %s11784_s6 = inlined_call_operand.hbm [shape: f32[1,128], index: 6, kind: input, shape index: {}]   ;;  %s11785_s7 = inlined_call_operand.vmem [shape: f32[8,128], index: 7, kind: output, shape index: {}]  }
   0x1   :  { %11792 = sst [smem:[#allocation19_spill]] %s11779_s1 }
   0x2   :  { %11793 = sst [smem:[#allocation20_spill]] %s11780_s2 }
   0x3   :  { %11794 = sst [smem:[#allocation21_spill]] %s11782_s4 }
   0x4   :  { %11795 = sst [smem:[#allocation22_spill]] %s11783_s5 }
   0x5   :  { %11796 = sst [smem:[#allocation23_spill]] %s11784_s6 }
   0x6   :  { %12 = vsyncpa [#allocation4], 0 }
   0x7   :  { %14 = vsyncpa [#allocation4 + $0x1], 0 }
   0x8   :  { %15 = vsyncpa [#allocation6], 0 }
   0x9   :  { %17 = vsyncpa [#allocation6 + $0x1], 0 }
   0xa   :  { %18 = vsyncpa [#allocation9], 0 }
   0xb   :  { %19 = vsyncpa [#allocation12], 0  ;;  %s10477_s24 = smov 0   ;;  %s10479_s25 = smov 0  }
   0xc   :  { %s10481_s26 = smov 0   ;;  %s10483_s27 = smov 0  }
   0xd   :  { %s10485_s28 = smov 0   ;;  %s10487_s29 = smov 0  }
   0xe LB: > { %s11786_s30 = sadd.s32 4294967295, %s10421_s29   ;;  %p83_p0 = scmp.ne.s32.totalorder %s10405_s25, %s10401_s24  ;;  %s10421_s29 = sphi %s10487_s29, %s25_s29   ;;  %s10417_s28 = sphi %s10485_s28, %s11822_s28   ;;  %s10413_s27 = sphi %s10483_s27, %s11821_s27   ;;  %s10409_s26 = sphi %s10481_s26, %s11820_s26   ;;  %s10405_s25 = sphi %s10479_s25, %s11819_s25   ;;  %s10401_s24 = sphi %s10477_s24, %s11818_s24  }
   0xf   : > { %p10509_p1 = scmp.eq.s32.totalorder %s11786_s30, 0  ;;  %p8392_p2 = scmp.ge.s32.totalorder %s10421_s29, 1 }
  0x10   : > { %p235_p3 = scmp.lt.s32.totalorder %s10421_s29, 7  ;;  %s10423_s11 = smov [#allocation8]  }
  0x11   : > { %s11797_s8 = scalar_select %p10509_p1, 1, 0 }
  0x12   : > { %p10517_p4 = por %p10509_p1, %p83_p0  ;;  %p10521_p5 = pnand %p8392_p2, %p235_p3 }
  0x13   : > { %s256_s12 = sshll.u32 %s10423_s11, 4  ;;  %s34_s14 = sadd.s32 1, %s10417_s28  ;;  %s257_s12 = int_to_ptr.vmem [resolvable:$true] %s256_s12 }
  0x14   : > { %p9547_p6 = pneg %p10521_p5  ;;  %s70_s15 = sadd.s32 1, %s10409_s26 }
  0x15   : > { %p35_p8 = scmp.ge.s32.totalorder %s34_s14, 6  ;;  %s10208_s16 = scalar_lea.vmem %s257_s12, 512 }
  0x16   : > { %p10529_p7 = pnand %p9547_p6, %p10509_p1  ;;  %p10209_p10 = scmp.ne.s32.totalorder %s257_s12, %s10208_s16 }
  0x17   : > { %p10216_p13 = scmp.lt.s32.totalorder %s257_s12, %s257_s12  ;;  %p10217_p0 = scmp.lt.s32.totalorder %s10208_s16, %s10208_s16 }
  0x18   : > { %p10199_p9 = pneg %p10529_p7 }
  0x19   : > { %p10218_p2 = por %p10217_p0, %p10216_p13 }
  0x1a   : > { %p10211_p11 = pnand %p10209_p10, %p10199_p9 }
  0x1c   : > { %p10212_p12 = pneg %p10211_p11 }
  0x1e   : > { %p10219_p3 = pnand %p10218_p2, %p10212_p12 }
  0x20   : > { %10222 = shalt.err (!%p10219_p3)
}
  0x21   : > { %s11801_s4 = sld [smem:[#allocation21_spill]]  ;;  %s11824_s14 = smov (%p35_p8, %s34_s14), 0 }
  0x22   : > { %11802 = sst [smem:[#allocation17_spill]] %s11824_s14  ;;  %p77_p6 = scmp.ne.s32.totalorder %s10409_s26, %s10405_s25 }
  0x23   : > { %p78_p10 = scmp.eq.s32.totalorder %s10421_s29, 0  ;;  %s67_s19 = ssub.s32 %s10417_s28, %s11824_s14 }
  0x24   : > { %p9570_p11 = scmp.lt.s32.totalorder %s10421_s29, 6  ;;  %p68_p12 = scmp.eq.s32.totalorder %s67_s19, 0 }
  0x25   : > { %p79_p13 = por %p78_p10, %p77_p6  ;;  %s10554_s20 = sand.u32 1, %s10409_s26  }
  0x26   : > { %s312_s21 = sand.u32 1, %s10421_s29   ;;  %s8400_s11 = sshll.u32 %s10554_s20, 3 }
  0x27   : > { %9550 = dma.hbm_to_vmem [thread:$0]  (!%p10529_p7), %s11801_s4, 512, %s257_s12, [#allocation9]  }
  0x28   : > { %s10558_s22 = scalar_select %p68_p12, %s10409_s26, %s70_s15  }
  0x29   : > { %p10561_p0 = pnand %p9570_p11, %p79_p13  ;;  %s9348_s12 = sshll.u32 %s10417_s28, 7 }
  0x2a   : > { %11803 = sst [smem:[#allocation18_spill]] %s10558_s22  ;;  %s316_s16 = scalar_lea.vmem [#allocation5], %s8400_s11 }
  0x2b   : > { %s324_s17 = sshll.u32 %s316_s16, 4  ;;  %s11805_s2 = sld [smem:[#allocation20_spill]]  ;;  %s325_s17 = int_to_ptr.vmem [resolvable:$true] %s324_s17 }
  0x2c   : > { %s10570_s4 = scalar_lea.sflag [#allocation6], %s312_s21  ;;  %p11788_p8 = pneg %p10561_p0 }
  0x2d   : > { %s10236_s15 = scalar_lea.vmem %s325_s17, 128  ;;  %s10424_s23 = smov [#allocation5]  }
  0x2e   : > { %p10237_p2 = scmp.ne.s32.totalorder %s325_s17, %s10236_s15  ;;  %s10241_s14 = sshll.u32 %s10424_s23, 4  ;;  %s10242_s14 = int_to_ptr.vmem [resolvable:$false] %s10241_s14 }
  0x2f   : > { %s10243_s11 = scalar_lea.vmem %s10242_s14, 256  ;;  %p10244_p10 = scmp.lt.s32.totalorder %s325_s17, %s10242_s14 }
  0x30   : > { %p10239_p3 = pnand %p10237_p2, %p11788_p8  ;;  %p10245_p11 = scmp.lt.s32.totalorder %s10243_s11, %s10236_s15 }
  0x31   : > { %s322_s30 = scalar_lea.hbm %s11805_s2, %s9348_s12 }
  0x32   : > { %p10240_p6 = pneg %p10239_p3  ;;  %p10246_p12 = por %p10245_p11, %p10244_p10 }
  0x34   : > { %p10247_p13 = pnand %p10246_p12, %p10240_p6 }
  0x36   : > { %10250 = shalt.err (!%p10247_p13)
}
  0x37   : > { %9563 = dma.hbm_to_vmem [thread:$0]  (!%p10561_p0), %s322_s30, 128, %s325_s17, %s10570_s4  }
  0x38   : > { %s10425_s12 = smov [#allocation10]  }
  0x39   : > { %s266_s16 = sshll.u32 %s10425_s12, 4  ;;  %s267_s16 = int_to_ptr.vmem [resolvable:$true] %s266_s16 }
  0x3a   : > { %s10262_s18 = scalar_lea.vmem %s267_s16, 16384  ;;  %p10270_p1 = scmp.lt.s32.totalorder %s267_s16, %s267_s16 }
  0x3b   : > { %p10263_p2 = scmp.ne.s32.totalorder %s267_s16, %s10262_s18  ;;  %p10271_p10 = scmp.lt.s32.totalorder %s10262_s18, %s10262_s18 }
  0x3d   : > { %p10265_p3 = pnand %p10263_p2, %p10199_p9  ;;  %p10272_p6 = por %p10271_p10, %p10270_p1 }
  0x3f   : > { %p10266_p8 = pneg %p10265_p3 }
  0x41   : > { %p10273_p11 = pnand %p10272_p6, %p10266_p8 }
  0x43   : > { %10276 = shalt.err (!%p10273_p11)
}
  0x44   : > { %s11791_s14 = smov 64   ;;  %s10427_s30 = smov 4  }
  0x45   : > { %s11806_s5 = sld [smem:[#allocation22_spill]]  ;;  %s10428_s19 = smov [#allocation11]  }
  0x46   : > { %s280_s15 = sshll.u32 %s10428_s19, 4  ;;  %s9347_s11 = sshll.u32 %s10417_s28, 8  ;;  %s281_s15 = int_to_ptr.vmem [resolvable:$true] %s280_s15 }
  0x47   : > { %s10288_s12 = scalar_lea.vmem %s281_s15, 16  ;;  %s10295_s18 = scalar_lea.vmem %s281_s15, 32 }
  0x48   : > { %p10289_p1 = scmp.ne.s32.totalorder %s281_s15, %s10288_s12  ;;  %p10296_p13 = scmp.lt.s32.totalorder %s281_s15, %s281_s15 }
  0x49   : > { %p10297_p2 = scmp.lt.s32.totalorder %s10295_s18, %s10288_s12 }
  0x4a   : > { %p10291_p8 = pnand %p10289_p1, %p10199_p9 }
  0x4b   : > { %9553 = dma.hbm_to_vmem [thread:$0]  (!%p10529_p7), %s11806_s5, 16384, %s267_s16, [#allocation9], %s11791_s14, %s11791_s14, %s10427_s30  }
  0x4c   : > { %p10292_p12 = pneg %p10291_p8  ;;  %p10298_p3 = por %p10297_p2, %p10296_p13 }
  0x4e   : > { %p10299_p10 = pnand %p10298_p3, %p10292_p12 }
  0x50   : > { %10302 = shalt.err (!%p10299_p10)
}
  0x51   : > { %s11807_s6 = sld [smem:[#allocation23_spill]]  ;;  %s11809_s14 = smul.u32 2304, %s10554_s20 }
  0x52   : > { %s11808_s1 = sld [smem:[#allocation19_spill]]  ;;  %s292_s12 = scalar_lea.sflag [#allocation4], %s10554_s20 }
  0x53   : > { %s295_s21 = scalar_lea.vmem [#allocation3], %s11809_s14  ;;  %p11810_p6 = pneg %p10561_p0 }
  0x54   : > { %s302_s2 = sshll.u32 %s295_s21, 4  ;;  %s10429_s13 = smov [#allocation3]   ;;  %s303_s2 = int_to_ptr.vmem [resolvable:$true] %s302_s2 }
  0x55   : > { %s10316_s18 = scalar_lea.vmem %s303_s2, 36864  ;;  %s10321_s23 = sshll.u32 %s10429_s13, 4  ;;  %s10322_s23 = int_to_ptr.vmem [resolvable:$false] %s10321_s23 }
  0x56   : > { %p10317_p9 = scmp.ne.s32.totalorder %s303_s2, %s10316_s18  ;;  %s10323_s16 = scalar_lea.vmem %s10322_s23, 73728 }
  0x57   : > { %9556 = dma.hbm_to_vmem [thread:$0]  (!%p10529_p7), %s11807_s6, 16, %s281_s15, [#allocation12]  }
  0x58   : > { %s301_s19 = scalar_lea.hbm %s11808_s1, %s9347_s11  ;;  %p10319_p11 = pnand %p10317_p9, %p11810_p6 }
  0x59   : > { %p10324_p7 = scmp.lt.s32.totalorder %s303_s2, %s10322_s23  ;;  %p10325_p8 = scmp.lt.s32.totalorder %s10323_s16, %s10316_s18 }
  0x5a   : > { %p10320_p1 = pneg %p10319_p11 }
  0x5b   : > { %p10326_p12 = por %p10325_p8, %p10324_p7 }
  0x5d   : > { %p10327_p13 = pnand %p10326_p12, %p10320_p1 }
  0x5f   : > { %10330 = shalt.err (!%p10327_p13)
}
  0x60   : > { %s10430_s15 = smov 1536   ;;  %s10431_s21 = smov 256  }
  0x61   : > { %s10432_s14 = smov 16   ;;  %s9350_s11 = sshll.u32 %s10417_s28, 16 }
  0x62   : > { %9560 = dma.hbm_to_vmem [thread:$0]  (!%p10561_p0), %s301_s19, 36864, %s303_s2, %s292_s12, %s10430_s15, %s10431_s21, %s10432_s14  }
  0x63   : > { %s342_s13 = scalar_lea.hbm %s11781_s3, %s9350_s11  ;;  %s11811_s1 = sshll.u32 %s10554_s20, 12 }
  0x64   : > { %s335_s23 = scalar_lea.vmem [#allocation7], %s11811_s1  ;;  %p11812_p3 = pmov %p11810_p6 }
  0x65   : > { %s343_s18 = sshll.u32 %s335_s23, 4  ;;  %s10433_s5 = smov [#allocation7]   ;;  %s344_s18 = int_to_ptr.vmem [resolvable:$true] %s343_s18 }
  0x66   : > { %s10344_s16 = scalar_lea.vmem %s344_s18, 65536  ;;  %s10349_s6 = sshll.u32 %s10433_s5, 4  ;;  %s10350_s6 = int_to_ptr.vmem [resolvable:$false] %s10349_s6 }
  0x67   : > { %p10345_p2 = scmp.ne.s32.totalorder %s344_s18, %s10344_s16  ;;  %s10351_s22 = scalar_lea.vmem %s10350_s6, 131072 }
  0x68   : > { %p10352_p6 = scmp.lt.s32.totalorder %s344_s18, %s10350_s6  ;;  %p10353_p11 = scmp.lt.s32.totalorder %s10351_s22, %s10344_s16 }
  0x69   : > { %p10347_p10 = pnand %p10345_p2, %p11812_p3 }
  0x6a   : > { %p10354_p1 = por %p10353_p11, %p10352_p6 }
  0x6b   : > { %p10348_p9 = pneg %p10347_p10 }
  0x6d   : > { %p10355_p7 = pnand %p10354_p1, %p10348_p9 }
  0x6f   : > { %10358 = shalt.err (!%p10355_p7)
}
  0x70   : > { %s10434_s2 = smov 1024   ;;  %s11813_s1 = smov 64  }
  0x71   : > { %9566 = dma.hbm_to_vmem [thread:$0]  (!%p10561_p0), %s342_s13, 65536, %s344_s18, %s10570_s4, %s10434_s2, %s10434_s2, %s11813_s1  }
  0x72   : > { %355 = sbr.rel (%p10521_p5) target bundleno = 1937 (0x791), region = 48  ;;  %s357_s20 = sand.u32 (!%p10521_p5), 1, %s10405_s25  }
  0x73   : > { %s9528_s5 = smul.u32 (!%p10521_p5), 2304, %s357_s20  ;;  %s358_s19 = scalar_lea.sflag (!%p10521_p5), [#allocation4], %s357_s20 }
  0x75   : > { %s10627_s12 = scalar_lea.vmem (!%p10521_p5), [#allocation3], %s9528_s5 }
  0x77   : > { %10384 = dma.done.wait (%p10517_p4), %s358_s19, 36864  }
  0x78   : > { %10386 = vsyncadd (%p10517_p4), %s358_s19, 4294930432  ;;  %s11814_s6 = sadd.s32 4294967295, %s10421_s29   ;;  %s8408_s4 = sshll.u32 %s357_s20, 3 }
  0x79   : > { %s366_s22 = sand.u32 1, %s11814_s6   ;;  %s10635_s10 = scalar_lea.vmem [#allocation5], %s8408_s4 }
  0x7a   : > { %s367_s24 = scalar_lea.sflag [#allocation6], %s366_s22 }
  0x7b   : > { %10388 = dma.done.wait (%p10517_p4), %s367_s24, 65664  }
  0x7c   : > { %10390 = vsyncadd (%p10517_p4), %s367_s24, 4294901632  ;;  %s8409_s15 = sshll.u32 %s357_s20, 12  ;;  %p11815_p5 = scmp.ne.s32.totalorder %s11797_s8, 0 }
  0x7d   : > { %s10641_s21 = scalar_lea.vmem [#allocation7], %s8409_s15 }
  0x7e   : > { %10392 = dma.done.wait (%p11815_p5), [#allocation9], 16896  }
  0x7f   : > { %10394 = vsyncadd (%p11815_p5), [#allocation9], 4294950400 }
  0x80   : > { %10396 = dma.done.wait (%p11815_p5), [#allocation12], 16  }
  0x81   : > { %10398 = vsyncadd (%p11815_p5), [#allocation12], 4294967280  ;;  %p8413_p0 = scmp.ne.s32.totalorder %s10413_s27, 0 }
  0x83   : > { %452 = sbr.rel (%p8413_p0) target bundleno = 145 (0x91), region = 76 }
  0x88   : > { %v10435_v0 = vmov 0.0  }
  0x89   : > { %453 = vst [vmem:[#allocation2 + $0x30] sm:$0xff] %v10435_v0  ;;  %454 = vst [vmem:[#allocation2] sm:$0xff] %v10435_v0 }
  0x8a   : > { %455 = vst [vmem:[#allocation2 + $0x58] sm:$0xff] %v10435_v0  ;;  %456 = vst [vmem:[#allocation2 + $0x18] sm:$0xff] %v10435_v0 }
  0x8b   : > { %457 = vst [vmem:[#allocation2 + $0x50] sm:$0xff] %v10435_v0  ;;  %458 = vst [vmem:[#allocation2 + $0x68] sm:$0xff] %v10435_v0 }
  0x8c   : > { %459 = vst [vmem:[#allocation2 + $0x8] sm:$0xff] %v10435_v0  ;;  %460 = vst [vmem:[#allocation2 + $0x48] sm:$0xff] %v10435_v0 }
  0x8d   : > { %461 = vst [vmem:[#allocation2 + $0x40] sm:$0xff] %v10435_v0  ;;  %462 = vst [vmem:[#allocation2 + $0x20] sm:$0xff] %v10435_v0 }
  0x8e   : > { %463 = vst [vmem:[#allocation2 + $0x10] sm:$0xff] %v10435_v0  ;;  %464 = vst [vmem:[#allocation2 + $0x38] sm:$0xff] %v10435_v0 }
  0x8f   : > { %465 = vst [vmem:[#allocation2 + $0x60] sm:$0xff] %v10435_v0  ;;  %466 = vst [vmem:[#allocation2 + $0x70] sm:$0xff] %v10435_v0 }
  0x90   : > { %467 = vst [vmem:[#allocation2 + $0x78] sm:$0xff] %v10435_v0  ;;  %468 = vst [vmem:[#allocation2 + $0x28] sm:$0xff] %v10435_v0 }
  0x91 PF: > { %v9633_v1 = vld [vmem:[%s10627_s12 + $0xe4] ss:$16 sps:$4 sm:$0xff]   ;;  %v9637_v3 = vld [vmem:[%s10627_s12 + $0xe0] ss:$16 sps:$4 sm:$0xff]   ;;  %v470_v47 = vld [vmem:[%s11778_s0 + $0x8] sm:$0xff]  ;;  %p9214_p4 = scmp.ne.s32.totalorder %s10413_s27, 5 }
  0x92   : > { %v9635_v2 = vld [vmem:[%s10627_s12 + $0x2e4] ss:$16 sps:$4 sm:$0xff]   ;;  %2215 = vmatprep.subr.bf16.mxu0 %v9633_v1  ;;  %v9638_v4 = vld [vmem:[%s10627_s12 + $0x2e0] ss:$16 sps:$4 sm:$0xff]   ;;  %v10703_v50 = vpack.c.bf16 %v470_v47, %v470_v47  ;;  %v472_v51 = vld [vmem:[%s11778_s0 + $0x18] sm:$0xff] }
  0x93   : > { %2256 = vmatprep.subr.bf16.mxu1 %v9635_v2  ;;  %v9639_v5 = vld [vmem:[%s10627_s12 + $0xc4] ss:$16 sps:$4 sm:$0xff]   ;;  %2216 = vmatpush1.bf16.msra.mxu0 %v9637_v3  ;;  %v9643_v7 = vld [vmem:[%s10627_s12 + $0xc0] ss:$16 sps:$4 sm:$0xff]   ;;  %v10709_v53 = vpack.c.bf16 %v472_v51, %v472_v51 }
  0x94   : > { %2257 = vmatpush1.bf16.msra.mxu1 %v9638_v4  ;;  %v9641_v6 = vld [vmem:[%s10627_s12 + $0x2c4] ss:$16 sps:$4 sm:$0xff]   ;;  %2217 = vmatprep.subr.bf16.mxu0 %v9639_v5  ;;  %v9644_v8 = vld [vmem:[%s10627_s12 + $0x2c0] ss:$16 sps:$4 sm:$0xff]  }
  0x95   : > { %2258 = vmatprep.subr.bf16.mxu1 %v9641_v6  ;;  %v9645_v9 = vld [vmem:[%s10627_s12 + $0xa4] ss:$16 sps:$4 sm:$0xff]   ;;  %v9649_v11 = vld [vmem:[%s10627_s12 + $0xa0] ss:$16 sps:$4 sm:$0xff]   ;;  %2247 = vmatprep.mubr.bf16.mxu0 %v10703_v50 }
  0x96   : > { %v9647_v10 = vld [vmem:[%s10627_s12 + $0x2a4] ss:$16 sps:$4 sm:$0xff]   ;;  %v9650_v12 = vld [vmem:[%s10627_s12 + $0x2a0] ss:$16 sps:$4 sm:$0xff]   ;;  %2288 = vmatprep.mubr.bf16.mxu1 %v10709_v53 }
  0x97   : > { %2218 = vmatpush1.bf16.msra.mxu0 %v9643_v7  ;;  %v9651_v13 = vld [vmem:[%s10627_s12 + $0x84] ss:$16 sps:$4 sm:$0xff]   ;;  %v9655_v15 = vld [vmem:[%s10627_s12 + $0x80] ss:$16 sps:$4 sm:$0xff]  }
  0x98   : > { %2259 = vmatpush1.bf16.msra.mxu1 %v9644_v8  ;;  %2219 = vmatprep.subr.bf16.mxu0 %v9645_v9  ;;  %v9653_v14 = vld [vmem:[%s10627_s12 + $0x284] ss:$16 sps:$4 sm:$0xff]   ;;  %v9656_v16 = vld [vmem:[%s10627_s12 + $0x280] ss:$16 sps:$4 sm:$0xff]  }
  0x99   : > { %2260 = vmatprep.subr.bf16.mxu1 %v9647_v10  ;;  %v9657_v17 = vld [vmem:[%s10627_s12 + $0x64] ss:$16 sps:$4 sm:$0xff]   ;;  %v9661_v19 = vld [vmem:[%s10627_s12 + $0x60] ss:$16 sps:$4 sm:$0xff]  }
  0x9a   : > { %v9659_v18 = vld [vmem:[%s10627_s12 + $0x264] ss:$16 sps:$4 sm:$0xff]   ;;  %v9662_v20 = vld [vmem:[%s10627_s12 + $0x260] ss:$16 sps:$4 sm:$0xff]  }
  0x9b   : > { %2220 = vmatpush1.bf16.msra.mxu0 %v9649_v11  ;;  %v9663_v21 = vld [vmem:[%s10627_s12 + $0x44] ss:$16 sps:$4 sm:$0xff]   ;;  %v9667_v23 = vld [vmem:[%s10627_s12 + $0x40] ss:$16 sps:$4 sm:$0xff]  }
  0x9c   : > { %2261 = vmatpush1.bf16.msra.mxu1 %v9650_v12  ;;  %2221 = vmatprep.subr.bf16.mxu0 %v9651_v13  ;;  %v9665_v22 = vld [vmem:[%s10627_s12 + $0x244] ss:$16 sps:$4 sm:$0xff]   ;;  %v9668_v24 = vld [vmem:[%s10627_s12 + $0x240] ss:$16 sps:$4 sm:$0xff]  }
  0x9d   : > { %2262 = vmatprep.subr.bf16.mxu1 %v9653_v14  ;;  %v9669_v25 = vld [vmem:[%s10627_s12 + $0x24] ss:$16 sps:$4 sm:$0xff]   ;;  %v9673_v27 = vld [vmem:[%s10627_s12 + $0x20] ss:$16 sps:$4 sm:$0xff]  }
  0x9e   : > { %v9671_v26 = vld [vmem:[%s10627_s12 + $0x224] ss:$16 sps:$4 sm:$0xff]   ;;  %v9674_v28 = vld [vmem:[%s10627_s12 + $0x220] ss:$16 sps:$4 sm:$0xff]  }
  0x9f   : > { %2222 = vmatpush1.bf16.msra.mxu0 %v9655_v15  ;;  %v9675_v29 = vld [vmem:[%s10627_s12 + $0x4] ss:$16 sps:$4 sm:$0xff]   ;;  %v9679_v31 = vld [vmem:[%s10627_s12] ss:$16 sps:$4 sm:$0xff]  }
  0xa0   : > { %2263 = vmatpush1.bf16.msra.mxu1 %v9656_v16  ;;  %2223 = vmatprep.subr.bf16.mxu0 %v9657_v17  ;;  %v9677_v30 = vld [vmem:[%s10627_s12 + $0x204] ss:$16 sps:$4 sm:$0xff]   ;;  %v9680_v32 = vld [vmem:[%s10627_s12 + $0x200] ss:$16 sps:$4 sm:$0xff]  }
  0xa1   : > { %2264 = vmatprep.subr.bf16.mxu1 %v9659_v18  ;;  %v9681_v33 = vld [vmem:[%s10627_s12 + $0x1e4] ss:$16 sps:$4 sm:$0xff]   ;;  %v9685_v35 = vld [vmem:[%s10627_s12 + $0x1e0] ss:$16 sps:$4 sm:$0xff]  }
  0xa2   : > { %v9683_v34 = vld [vmem:[%s10627_s12 + $0x3e4] ss:$16 sps:$4 sm:$0xff]   ;;  %v9686_v36 = vld [vmem:[%s10627_s12 + $0x3e0] ss:$16 sps:$4 sm:$0xff]  }
  0xa3   : > { %2224 = vmatpush1.bf16.msra.mxu0 %v9661_v19  ;;  %v9687_v37 = vld [vmem:[%s10627_s12 + $0x1c4] ss:$16 sps:$4 sm:$0xff]   ;;  %v9691_v39 = vld [vmem:[%s10627_s12 + $0x1c0] ss:$16 sps:$4 sm:$0xff]  }
  0xa4   : > { %2265 = vmatpush1.bf16.msra.mxu1 %v9662_v20  ;;  %2225 = vmatprep.subr.bf16.mxu0 %v9663_v21  ;;  %v9689_v38 = vld [vmem:[%s10627_s12 + $0x3c4] ss:$16 sps:$4 sm:$0xff]   ;;  %v9692_v40 = vld [vmem:[%s10627_s12 + $0x3c0] ss:$16 sps:$4 sm:$0xff]  }
  0xa5   : > { %2266 = vmatprep.subr.bf16.mxu1 %v9665_v22  ;;  %v9693_v41 = vld [vmem:[%s10627_s12 + $0x1a4] ss:$16 sps:$4 sm:$0xff]   ;;  %v9697_v43 = vld [vmem:[%s10627_s12 + $0x1a0] ss:$16 sps:$4 sm:$0xff]  }
  0xa6   : > { %v9695_v42 = vld [vmem:[%s10627_s12 + $0x3a4] ss:$16 sps:$4 sm:$0xff]   ;;  %v9698_v44 = vld [vmem:[%s10627_s12 + $0x3a0] ss:$16 sps:$4 sm:$0xff]  }
  0xa7   : > { %2226 = vmatpush1.bf16.msra.mxu0 %v9667_v23  ;;  %v9699_v45 = vld [vmem:[%s10627_s12 + $0x184] ss:$16 sps:$4 sm:$0xff]   ;;  %v9703_v48 = vld [vmem:[%s10627_s12 + $0x180] ss:$16 sps:$4 sm:$0xff]  }
  0xa8   : > { %2267 = vmatpush1.bf16.msra.mxu1 %v9668_v24  ;;  %2227 = vmatprep.subr.bf16.mxu0 %v9669_v25  ;;  %v9701_v46 = vld [vmem:[%s10627_s12 + $0x384] ss:$16 sps:$4 sm:$0xff]   ;;  %v9704_v49 = vld [vmem:[%s10627_s12 + $0x380] ss:$16 sps:$4 sm:$0xff]  }
  0xa9   : > { %2268 = vmatprep.subr.bf16.mxu1 %v9671_v26  ;;  %v9705_v52 = vld [vmem:[%s10627_s12 + $0x164] ss:$16 sps:$4 sm:$0xff]   ;;  %v9709_v55 = vld [vmem:[%s10627_s12 + $0x160] ss:$16 sps:$4 sm:$0xff]  }
  0xaa   : > { %v9707_v54 = vld [vmem:[%s10627_s12 + $0x364] ss:$16 sps:$4 sm:$0xff]   ;;  %v9710_v56 = vld [vmem:[%s10627_s12 + $0x360] ss:$16 sps:$4 sm:$0xff]  }
  0xab   : > { %2228 = vmatpush1.bf16.msra.mxu0 %v9673_v27  ;;  %v9711_v57 = vld [vmem:[%s10627_s12 + $0x144] ss:$16 sps:$4 sm:$0xff]   ;;  %v9715_v59 = vld [vmem:[%s10627_s12 + $0x140] ss:$16 sps:$4 sm:$0xff]  }
  0xac   : > { %2269 = vmatpush1.bf16.msra.mxu1 %v9674_v28  ;;  %2229 = vmatprep.subr.bf16.mxu0 %v9675_v29  ;;  %v9713_v58 = vld [vmem:[%s10627_s12 + $0x344] ss:$16 sps:$4 sm:$0xff]   ;;  %v9716_v60 = vld [vmem:[%s10627_s12 + $0x340] ss:$16 sps:$4 sm:$0xff]  }
  0xad   : > { %2270 = vmatprep.subr.bf16.mxu1 %v9677_v30  ;;  %v9717_v61 = vld [vmem:[%s10627_s12 + $0x124] ss:$16 sps:$4 sm:$0xff]   ;;  %v9721_v63 = vld [vmem:[%s10627_s12 + $0x120] ss:$16 sps:$4 sm:$0xff]  }
  0xae   : > { %v9719_v62 = vld [vmem:[%s10627_s12 + $0x324] ss:$16 sps:$4 sm:$0xff]   ;;  %v9722_v0 = vld [vmem:[%s10627_s12 + $0x320] ss:$16 sps:$4 sm:$0xff]  }
  0xaf   : > { %2230 = vmatpush1.bf16.msra.mxu0 %v9679_v31  ;;  %v9723_v1 = vld [vmem:[%s10627_s12 + $0x104] ss:$16 sps:$4 sm:$0xff]   ;;  %v9727_v3 = vld [vmem:[%s10627_s12 + $0x100] ss:$16 sps:$4 sm:$0xff]  }
  0xb0   : > { %2271 = vmatpush1.bf16.msra.mxu1 %v9680_v32  ;;  %2231 = vmatprep.subr.bf16.mxu0 %v9681_v33  ;;  %v9725_v2 = vld [vmem:[%s10627_s12 + $0x304] ss:$16 sps:$4 sm:$0xff]   ;;  %v9728_v4 = vld [vmem:[%s10627_s12 + $0x300] ss:$16 sps:$4 sm:$0xff]  }
  0xb1   : > { %2272 = vmatprep.subr.bf16.mxu1 %v9683_v34  ;;  %v469_v5 = vld [vmem:[%s11778_s0] sm:$0xff]  ;;  %v471_v6 = vld [vmem:[%s11778_s0 + $0x10] sm:$0xff] }
  0xb2   : > { %v9731_v7 = vld [vmem:[%s10627_s12 + $0x4e4] ss:$16 sps:$4 sm:$0xff]   ;;  %v10736_v9 = vpack.c.bf16 %v469_v5, %v469_v5  ;;  %v10738_v10 = vpack.c.bf16 %v471_v6, %v471_v6  ;;  %v9729_v11 = vld [vmem:[%s10627_s12 + $0x4e0] ss:$16 sps:$4 sm:$0xff]  }
  0xb3   : > { %2232 = vmatpush2.bf16.msra.mxu0 %v9685_v35  ;;  %v9734_v8 = vld [vmem:[%s10627_s12 + $0x6e4] ss:$16 sps:$4 sm:$0xff]   ;;  %v9732_v12 = vld [vmem:[%s10627_s12 + $0x6e0] ss:$16 sps:$4 sm:$0xff]   ;;  %v474_v35 = vld [vmem:[%s11778_s0 + $0x28] sm:$0xff] }
  0xb4   : > { %2273 = vmatpush2.bf16.msra.mxu1 %v9686_v36  ;;  %2233 = vmatprep.subr.bf16.mxu0 %v9687_v37  ;;  %v9737_v13 = vld [vmem:[%s10627_s12 + $0x4c4] ss:$16 sps:$4 sm:$0xff]   ;;  %v9735_v15 = vld [vmem:[%s10627_s12 + $0x4c0] ss:$16 sps:$4 sm:$0xff]  }
  0xb5   : > { %2274 = vmatprep.subr.bf16.mxu1 %v9689_v38  ;;  %v9740_v14 = vld [vmem:[%s10627_s12 + $0x6c4] ss:$16 sps:$4 sm:$0xff]   ;;  %v9738_v16 = vld [vmem:[%s10627_s12 + $0x6c0] ss:$16 sps:$4 sm:$0xff]   ;;  %v10771_v38 = vpack.c.bf16 %v474_v35, %v474_v35  ;;  %v9848_v35 = vld [vmem:[%s10627_s12 + $0x8c] ss:$16 sps:$4 sm:$0xff]  }
  0xb6   : > { %v9743_v17 = vld [vmem:[%s10627_s12 + $0x4a4] ss:$16 sps:$4 sm:$0xff]   ;;  %v9741_v19 = vld [vmem:[%s10627_s12 + $0x4a0] ss:$16 sps:$4 sm:$0xff]  }
  0xb7   : > { %2234 = vmatpush2.bf16.msra.mxu0 %v9691_v39  ;;  %v9746_v18 = vld [vmem:[%s10627_s12 + $0x6a4] ss:$16 sps:$4 sm:$0xff]   ;;  %v9744_v20 = vld [vmem:[%s10627_s12 + $0x6a0] ss:$16 sps:$4 sm:$0xff]   ;;  %v476_v39 = vld [vmem:[%s11778_s0 + $0x38] sm:$0xff] }
  0xb8   : > { %2275 = vmatpush2.bf16.msra.mxu1 %v9692_v40  ;;  %2235 = vmatprep.subr.bf16.mxu0 %v9693_v41  ;;  %v9749_v21 = vld [vmem:[%s10627_s12 + $0x484] ss:$16 sps:$4 sm:$0xff]   ;;  %v9747_v23 = vld [vmem:[%s10627_s12 + $0x480] ss:$16 sps:$4 sm:$0xff]   ;;  %v10777_v41 = vpack.c.bf16 %v476_v39, %v476_v39  ;;  %v9854_v39 = vld [vmem:[%s10627_s12 + $0x6c] ss:$16 sps:$4 sm:$0xff]  }
  0xb9   : > { %2276 = vmatprep.subr.bf16.mxu1 %v9695_v42  ;;  %v9752_v22 = vld [vmem:[%s10627_s12 + $0x684] ss:$16 sps:$4 sm:$0xff]   ;;  %v9750_v24 = vld [vmem:[%s10627_s12 + $0x680] ss:$16 sps:$4 sm:$0xff]  }
  0xba   : > { %v9755_v25 = vld [vmem:[%s10627_s12 + $0x464] ss:$16 sps:$4 sm:$0xff]   ;;  %v9753_v27 = vld [vmem:[%s10627_s12 + $0x460] ss:$16 sps:$4 sm:$0xff]  }
  0xbb   : > { %2236 = vmatpush2.bf16.msra.mxu0 %v9697_v43  ;;  %v9758_v26 = vld [vmem:[%s10627_s12 + $0x664] ss:$16 sps:$4 sm:$0xff]   ;;  %v9756_v28 = vld [vmem:[%s10627_s12 + $0x660] ss:$16 sps:$4 sm:$0xff]  }
  0xbc   : > { %2277 = vmatpush2.bf16.msra.mxu1 %v9698_v44  ;;  %2237 = vmatprep.subr.bf16.mxu0 %v9699_v45  ;;  %v9761_v29 = vld [vmem:[%s10627_s12 + $0x444] ss:$16 sps:$4 sm:$0xff]   ;;  %v9759_v31 = vld [vmem:[%s10627_s12 + $0x440] ss:$16 sps:$4 sm:$0xff]  }
  0xbd   : > { %2278 = vmatprep.subr.bf16.mxu1 %v9701_v46  ;;  %v9764_v30 = vld [vmem:[%s10627_s12 + $0x644] ss:$16 sps:$4 sm:$0xff]   ;;  %v9762_v32 = vld [vmem:[%s10627_s12 + $0x640] ss:$16 sps:$4 sm:$0xff]  }
  0xbe   : > { %v9767_v33 = vld [vmem:[%s10627_s12 + $0x424] ss:$16 sps:$4 sm:$0xff]   ;;  %v9765_v36 = vld [vmem:[%s10627_s12 + $0x420] ss:$16 sps:$4 sm:$0xff]  }
  0xbf   : > { %2238 = vmatpush2.bf16.msra.mxu0 %v9703_v48  ;;  %v9770_v34 = vld [vmem:[%s10627_s12 + $0x624] ss:$16 sps:$4 sm:$0xff]   ;;  %v9768_v37 = vld [vmem:[%s10627_s12 + $0x620] ss:$16 sps:$4 sm:$0xff]  }
  0xc0   : > { %2279 = vmatpush2.bf16.msra.mxu1 %v9704_v49  ;;  %2239 = vmatprep.subr.bf16.mxu0 %v9705_v52  ;;  %v9773_v40 = vld [vmem:[%s10627_s12 + $0x404] ss:$16 sps:$4 sm:$0xff]   ;;  %v9771_v43 = vld [vmem:[%s10627_s12 + $0x400] ss:$16 sps:$4 sm:$0xff]  }
  0xc1   : > { %2280 = vmatprep.subr.bf16.mxu1 %v9707_v54  ;;  %v9776_v42 = vld [vmem:[%s10627_s12 + $0x604] ss:$16 sps:$4 sm:$0xff]   ;;  %v9774_v44 = vld [vmem:[%s10627_s12 + $0x600] ss:$16 sps:$4 sm:$0xff]  }
  0xc2   : > { %v9779_v45 = vld [vmem:[%s10627_s12 + $0x5e4] ss:$16 sps:$4 sm:$0xff]   ;;  %v9777_v47 = vld [vmem:[%s10627_s12 + $0x5e0] ss:$16 sps:$4 sm:$0xff]  }
  0xc3   : > { %2240 = vmatpush2.bf16.msra.mxu0 %v9709_v55  ;;  %v9782_v46 = vld [vmem:[%s10627_s12 + $0x7e4] ss:$16 sps:$4 sm:$0xff]   ;;  %v9780_v48 = vld [vmem:[%s10627_s12 + $0x7e0] ss:$16 sps:$4 sm:$0xff]  }
  0xc4   : > { %2281 = vmatpush2.bf16.msra.mxu1 %v9710_v56  ;;  %2241 = vmatprep.subr.bf16.mxu0 %v9711_v57  ;;  %v9785_v49 = vld [vmem:[%s10627_s12 + $0x5c4] ss:$16 sps:$4 sm:$0xff]   ;;  %v9783_v52 = vld [vmem:[%s10627_s12 + $0x5c0] ss:$16 sps:$4 sm:$0xff]  }
  0xc5   : > { %2282 = vmatprep.subr.bf16.mxu1 %v9713_v58  ;;  %v9788_v51 = vld [vmem:[%s10627_s12 + $0x7c4] ss:$16 sps:$4 sm:$0xff]   ;;  %v9786_v54 = vld [vmem:[%s10627_s12 + $0x7c0] ss:$16 sps:$4 sm:$0xff]  }
  0xc6   : > { %v9791_v55 = vld [vmem:[%s10627_s12 + $0x5a4] ss:$16 sps:$4 sm:$0xff]   ;;  %v9789_v57 = vld [vmem:[%s10627_s12 + $0x5a0] ss:$16 sps:$4 sm:$0xff]  }
  0xc7   : > { %2242 = vmatpush2.bf16.msra.mxu0 %v9715_v59  ;;  %v9794_v56 = vld [vmem:[%s10627_s12 + $0x7a4] ss:$16 sps:$4 sm:$0xff]   ;;  %v9792_v58 = vld [vmem:[%s10627_s12 + $0x7a0] ss:$16 sps:$4 sm:$0xff]  }
  0xc8   : > { %2283 = vmatpush2.bf16.msra.mxu1 %v9716_v60  ;;  %2243 = vmatprep.subr.bf16.mxu0 %v9717_v61  ;;  %v9797_v59 = vld [vmem:[%s10627_s12 + $0x584] ss:$16 sps:$4 sm:$0xff]   ;;  %v9795_v61 = vld [vmem:[%s10627_s12 + $0x580] ss:$16 sps:$4 sm:$0xff]  }
  0xc9   : > { %2284 = vmatprep.subr.bf16.mxu1 %v9719_v62  ;;  %v9800_v60 = vld [vmem:[%s10627_s12 + $0x784] ss:$16 sps:$4 sm:$0xff]   ;;  %v9798_v62 = vld [vmem:[%s10627_s12 + $0x780] ss:$16 sps:$4 sm:$0xff]  }
  0xca   : > { %v9807_v5 = vld [vmem:[%s10627_s12 + $0x540] ss:$16 sps:$4 sm:$0xff]  }
  0xcb   : > { %2244 = vmatpush2.bf16.msra.mxu0 %v9721_v63  ;;  %v9803_v63 = vld [vmem:[%s10627_s12 + $0x564] ss:$16 sps:$4 sm:$0xff]   ;;  %v9810_v6 = vld [vmem:[%s10627_s12 + $0x740] ss:$16 sps:$4 sm:$0xff]  }
  0xcc   : > { %2285 = vmatpush2.bf16.msra.mxu1 %v9722_v0  ;;  %2245 = vmatprep.subr.bf16.mxu0 %v9723_v1  ;;  %v9806_v0 = vld [vmem:[%s10627_s12 + $0x764] ss:$16 sps:$4 sm:$0xff]   ;;  %v9801_v1 = vld [vmem:[%s10627_s12 + $0x560] ss:$16 sps:$4 sm:$0xff]  }
  0xcd   : > { %2286 = vmatprep.subr.bf16.mxu1 %v9725_v2  ;;  %v9804_v2 = vld [vmem:[%s10627_s12 + $0x760] ss:$16 sps:$4 sm:$0xff]  }
  0xcf   : > { %2246 = vmatpush2.bf16.msra.mxu0 %v9727_v3  ;;  %v9809_v3 = vld [vmem:[%s10627_s12 + $0x544] ss:$16 sps:$4 sm:$0xff]  }
  0xd0   : > { %2287 = vmatpush2.bf16.msra.mxu1 %v9728_v4  ;;  %2297 = vmatprep.subr.bf16.mxu0 %v9731_v7  ;;  %v9812_v4 = vld [vmem:[%s10627_s12 + $0x744] ss:$16 sps:$4 sm:$0xff]  }
  0xd1   : > { %2338 = vmatprep.subr.bf16.mxu1 %v9734_v8  ;;  %v9815_v7 = vld [vmem:[%s10627_s12 + $0x524] ss:$16 sps:$4 sm:$0xff]  }
  0xd2   : > { %2248 = vmatmul.mubr.bf16.vlgmr.msra.gmra.mxu0 %v10736_v9  ;;  %v9818_v8 = vld [vmem:[%s10627_s12 + $0x724] ss:$16 sps:$4 sm:$0xff]  }
  0xd3   : > { %2289 = vmatmul.mubr.bf16.vlgmr.msra.gmra.mxu1 %v10738_v10  ;;  %2298 = vmatpush1.bf16.msra.mxu0 %v9729_v11  ;;  %v9813_v11 = vld [vmem:[%s10627_s12 + $0x520] ss:$16 sps:$4 sm:$0xff]  }
  0xd4   : > { %2339 = vmatpush1.bf16.msra.mxu1 %v9732_v12  ;;  %2299 = vmatprep.subr.bf16.mxu0 %v9737_v13  ;;  %v9816_v12 = vld [vmem:[%s10627_s12 + $0x720] ss:$16 sps:$4 sm:$0xff]   ;;  %v9821_v13 = vld [vmem:[%s10627_s12 + $0x504] ss:$16 sps:$4 sm:$0xff]  }
  0xd5   : > { %2340 = vmatprep.subr.bf16.mxu1 %v9740_v14  ;;  %2329 = vmatprep.mubr.bf16.mxu0 %v10771_v38  ;;  %v9824_v14 = vld [vmem:[%s10627_s12 + $0x704] ss:$16 sps:$4 sm:$0xff]  }
  0xd6   : > { %2370 = vmatprep.mubr.bf16.mxu1 %v10777_v41 }
  0xd7   : > { %2300 = vmatpush1.bf16.msra.mxu0 %v9735_v15  ;;  %v9819_v15 = vld [vmem:[%s10627_s12 + $0x500] ss:$16 sps:$4 sm:$0xff]  }
  0xd8   : > { %2341 = vmatpush1.bf16.msra.mxu1 %v9738_v16  ;;  %2301 = vmatprep.subr.bf16.mxu0 %v9743_v17  ;;  %v9822_v16 = vld [vmem:[%s10627_s12 + $0x700] ss:$16 sps:$4 sm:$0xff]  }
  0xd9   : > { %2342 = vmatprep.subr.bf16.mxu1 %v9746_v18  ;;  %v473_v17 = vld [vmem:[%s11778_s0 + $0x20] sm:$0xff]  ;;  %v475_v18 = vld [vmem:[%s11778_s0 + $0x30] sm:$0xff] }
  0xdb   : > { %2302 = vmatpush1.bf16.msra.mxu0 %v9741_v19  ;;  %v9827_v19 = vld [vmem:[%s10627_s12 + $0x8e4] ss:$16 sps:$4 sm:$0xff]  }
  0xdc   : > { %2343 = vmatpush1.bf16.msra.mxu1 %v9744_v20  ;;  %2303 = vmatprep.subr.bf16.mxu0 %v9749_v21  ;;  %v9830_v20 = vld [vmem:[%s10627_s12 + $0xec] ss:$16 sps:$4 sm:$0xff]   ;;  %v10824_v21 = vpack.c.bf16 %v473_v17, %v473_v17 }
  0xdd   : > { %2344 = vmatprep.subr.bf16.mxu1 %v9752_v22  ;;  %v10826_v22 = vpack.c.bf16 %v475_v18, %v475_v18  ;;  %v9908_v17 = vld [vmem:[%s10627_s12 + $0x24c] ss:$16 sps:$4 sm:$0xff]   ;;  %v9903_v18 = vld [vmem:[%s10627_s12 + $0x148] ss:$16 sps:$4 sm:$0xff]  }
  0xdf   : > { %2304 = vmatpush1.bf16.msra.mxu0 %v9747_v23  ;;  %v9825_v23 = vld [vmem:[%s10627_s12 + $0x8e0] ss:$16 sps:$4 sm:$0xff]  }
  0xe0   : > { %2345 = vmatpush1.bf16.msra.mxu1 %v9750_v24  ;;  %2305 = vmatprep.subr.bf16.mxu0 %v9755_v25  ;;  %v9828_v24 = vld [vmem:[%s10627_s12 + $0xe8] ss:$16 sps:$4 sm:$0xff]   ;;  %v9833_v25 = vld [vmem:[%s10627_s12 + $0x8c4] ss:$16 sps:$4 sm:$0xff]  }
  0xe1   : > { %2346 = vmatprep.subr.bf16.mxu1 %v9758_v26  ;;  %v9836_v26 = vld [vmem:[%s10627_s12 + $0xcc] ss:$16 sps:$4 sm:$0xff]  }
  0xe3   : > { %2306 = vmatpush1.bf16.msra.mxu0 %v9753_v27  ;;  %v9831_v27 = vld [vmem:[%s10627_s12 + $0x8c0] ss:$16 sps:$4 sm:$0xff]  }
  0xe4   : > { %2347 = vmatpush1.bf16.msra.mxu1 %v9756_v28  ;;  %2307 = vmatprep.subr.bf16.mxu0 %v9761_v29  ;;  %v9834_v28 = vld [vmem:[%s10627_s12 + $0xc8] ss:$16 sps:$4 sm:$0xff]   ;;  %v9839_v29 = vld [vmem:[%s10627_s12 + $0x8a4] ss:$16 sps:$4 sm:$0xff]  }
  0xe5   : > { %2348 = vmatprep.subr.bf16.mxu1 %v9764_v30  ;;  %v9842_v30 = vld [vmem:[%s10627_s12 + $0xac] ss:$16 sps:$4 sm:$0xff]  }
  0xe7   : > { %2308 = vmatpush1.bf16.msra.mxu0 %v9759_v31  ;;  %v10436_v31 = vmov 0  }
  0xe8   : > { %2349 = vmatpush1.bf16.msra.mxu1 %v9762_v32  ;;  %2309 = vmatprep.subr.bf16.mxu0 %v9767_v33  ;;  %v9837_v32 = vld [vmem:[%s10627_s12 + $0x8a0] ss:$16 sps:$4 sm:$0xff]   ;;  %v9840_v33 = vld [vmem:[%s10627_s12 + $0xa8] ss:$16 sps:$4 sm:$0xff]  }
  0xe9   : > { %2350 = vmatprep.subr.bf16.mxu1 %v9770_v34  ;;  %v9845_v34 = vld [vmem:[%s10627_s12 + $0x884] ss:$16 sps:$4 sm:$0xff]  }
  0xeb   : > { %2310 = vmatpush1.bf16.msra.mxu0 %v9765_v36  ;;  %v9843_v36 = vld [vmem:[%s10627_s12 + $0x880] ss:$16 sps:$4 sm:$0xff]  }
  0xec   : > { %2351 = vmatpush1.bf16.msra.mxu1 %v9768_v37  ;;  %2311 = vmatprep.subr.bf16.mxu0 %v9773_v40  ;;  %v9846_v37 = vld [vmem:[%s10627_s12 + $0x88] ss:$16 sps:$4 sm:$0xff]   ;;  %v9849_v40 = vld [vmem:[%s10627_s12 + $0x860] ss:$16 sps:$4 sm:$0xff]  }
  0xed   : > { %2352 = vmatprep.subr.bf16.mxu1 %v9776_v42  ;;  %v9852_v42 = vld [vmem:[%s10627_s12 + $0x68] ss:$16 sps:$4 sm:$0xff]  }
  0xef   : > { %2312 = vmatpush1.bf16.msra.mxu0 %v9771_v43  ;;  %v9857_v43 = vld [vmem:[%s10627_s12 + $0x844] ss:$16 sps:$4 sm:$0xff]  }
  0xf0   : > { %2353 = vmatpush1.bf16.msra.mxu1 %v9774_v44  ;;  %2313 = vmatprep.subr.bf16.mxu0 %v9779_v45  ;;  %v9860_v44 = vld [vmem:[%s10627_s12 + $0x4c] ss:$16 sps:$4 sm:$0xff]   ;;  %v9855_v45 = vld [vmem:[%s10627_s12 + $0x840] ss:$16 sps:$4 sm:$0xff]  }
  0xf1   : > { %2354 = vmatprep.subr.bf16.mxu1 %v9782_v46  ;;  %v9858_v46 = vld [vmem:[%s10627_s12 + $0x48] ss:$16 sps:$4 sm:$0xff]  }
  0xf3   : > { %2314 = vmatpush2.bf16.msra.mxu0 %v9777_v47  ;;  %v9863_v47 = vld [vmem:[%s10627_s12 + $0x824] ss:$16 sps:$4 sm:$0xff]  }
  0xf4   : > { %2355 = vmatpush2.bf16.msra.mxu1 %v9780_v48  ;;  %2315 = vmatprep.subr.bf16.mxu0 %v9785_v49  ;;  %v9866_v48 = vld [vmem:[%s10627_s12 + $0x2c] ss:$16 sps:$4 sm:$0xff]   ;;  %v9861_v49 = vld [vmem:[%s10627_s12 + $0x820] ss:$16 sps:$4 sm:$0xff]  }
  0xf5   : > { %2356 = vmatprep.subr.bf16.mxu1 %v9788_v51  ;;  %v9864_v51 = vld [vmem:[%s10627_s12 + $0x28] ss:$16 sps:$4 sm:$0xff]  }
  0xf7   : > { %2316 = vmatpush2.bf16.msra.mxu0 %v9783_v52  ;;  %v9869_v52 = vld [vmem:[%s10627_s12 + $0x804] ss:$16 sps:$4 sm:$0xff]  }
  0xf8   : > { %2357 = vmatpush2.bf16.msra.mxu1 %v9786_v54  ;;  %2317 = vmatprep.subr.bf16.mxu0 %v9791_v55  ;;  %v9872_v54 = vld [vmem:[%s10627_s12 + $0xc] ss:$16 sps:$4 sm:$0xff]   ;;  %v9867_v55 = vld [vmem:[%s10627_s12 + $0x800] ss:$16 sps:$4 sm:$0xff]  }
  0xf9   : > { %2358 = vmatprep.subr.bf16.mxu1 %v9794_v56  ;;  %v9870_v56 = vld [vmem:[%s10627_s12 + $0x8] ss:$16 sps:$4 sm:$0xff]  }
  0xfb   : > { %2318 = vmatpush2.bf16.msra.mxu0 %v9789_v57  ;;  %v477_v57 = vld [vmem:[%s11778_s0 + $0x40] sm:$0xff] }
  0xfc   : > { %2359 = vmatpush2.bf16.msra.mxu1 %v9792_v58  ;;  %2319 = vmatprep.subr.bf16.mxu0 %v9797_v59  ;;  %v9875_v58 = vld [vmem:[%s10627_s12 + $0x1ec] ss:$16 sps:$4 sm:$0xff]  }
  0xfd   : > { %2360 = vmatprep.subr.bf16.mxu1 %v9800_v60  ;;  %v9878_v59 = vld [vmem:[%s10627_s12 + $0x2ec] ss:$16 sps:$4 sm:$0xff]   ;;  %v10867_v60 = vpack.c.bf16 %v477_v57, %v477_v57 }
  0xfe   : > { %v9962_v57 = vld [vmem:[%s10627_s12 + $0x42c] ss:$16 sps:$4 sm:$0xff]  }
  0xff   : > { %2320 = vmatpush2.bf16.msra.mxu0 %v9795_v61  ;;  %v9873_v61 = vld [vmem:[%s10627_s12 + $0x1e8] ss:$16 sps:$4 sm:$0xff]  }
 0x100   : > { %2361 = vmatpush2.bf16.msra.mxu1 %v9798_v62  ;;  %2321 = vmatprep.subr.bf16.mxu0 %v9803_v63  ;;  %v9876_v62 = vld [vmem:[%s10627_s12 + $0x2e8] ss:$16 sps:$4 sm:$0xff]   ;;  %v9881_v63 = vld [vmem:[%s10627_s12 + $0x1cc] ss:$16 sps:$4 sm:$0xff]  }
 0x101   : > { %2362 = vmatprep.subr.bf16.mxu1 %v9806_v0  ;;  %v9884_v0 = vld [vmem:[%s10627_s12 + $0x2cc] ss:$16 sps:$4 sm:$0xff]  }
 0x103   : > { %2322 = vmatpush2.bf16.msra.mxu0 %v9801_v1  ;;  %v9879_v1 = vld [vmem:[%s10627_s12 + $0x1c8] ss:$16 sps:$4 sm:$0xff]  }
 0x104   : > { %2363 = vmatpush2.bf16.msra.mxu1 %v9804_v2  ;;  %2323 = vmatprep.subr.bf16.mxu0 %v9809_v3  ;;  %v9882_v2 = vld [vmem:[%s10627_s12 + $0x2c8] ss:$16 sps:$4 sm:$0xff]   ;;  %v9887_v3 = vld [vmem:[%s10627_s12 + $0x1ac] ss:$16 sps:$4 sm:$0xff]  }
 0x105   : > { %2364 = vmatprep.subr.bf16.mxu1 %v9812_v4  ;;  %v9890_v4 = vld [vmem:[%s10627_s12 + $0x2ac] ss:$16 sps:$4 sm:$0xff]  }
 0x107   : > { %2324 = vmatpush2.bf16.msra.mxu0 %v9807_v5  ;;  %v9885_v5 = vld [vmem:[%s10627_s12 + $0x1a8] ss:$16 sps:$4 sm:$0xff]  }
 0x108   : > { %2365 = vmatpush2.bf16.msra.mxu1 %v9810_v6  ;;  %2325 = vmatprep.subr.bf16.mxu0 %v9815_v7  ;;  %v9888_v6 = vld [vmem:[%s10627_s12 + $0x2a8] ss:$16 sps:$4 sm:$0xff]   ;;  %v9893_v7 = vld [vmem:[%s10627_s12 + $0x18c] ss:$16 sps:$4 sm:$0xff]  }
 0x109   : > { %2366 = vmatprep.subr.bf16.mxu1 %v9818_v8  ;;  %v9896_v8 = vld [vmem:[%s10627_s12 + $0x28c] ss:$16 sps:$4 sm:$0xff]  }
 0x10b   : > { %2326 = vmatpush2.bf16.msra.mxu0 %v9813_v11  ;;  %v9891_v11 = vld [vmem:[%s10627_s12 + $0x188] ss:$16 sps:$4 sm:$0xff]  }
 0x10c   : > { %2367 = vmatpush2.bf16.msra.mxu1 %v9816_v12  ;;  %2327 = vmatprep.subr.bf16.mxu0 %v9821_v13  ;;  %v9894_v12 = vld [vmem:[%s10627_s12 + $0x288] ss:$16 sps:$4 sm:$0xff]   ;;  %v9902_v13 = vld [vmem:[%s10627_s12 + $0x26c] ss:$16 sps:$4 sm:$0xff]  }
 0x10d   : > { %2368 = vmatprep.subr.bf16.mxu1 %v9824_v14  ;;  %v9897_v14 = vld [vmem:[%s10627_s12 + $0x168] ss:$16 sps:$4 sm:$0xff]  }
 0x10f   : > { %2328 = vmatpush2.bf16.msra.mxu0 %v9819_v15  ;;  %v9900_v15 = vld [vmem:[%s10627_s12 + $0x268] ss:$16 sps:$4 sm:$0xff]  }
 0x110   : > { %2369 = vmatpush2.bf16.msra.mxu1 %v9822_v16  ;;  %2379 = vmatprep.subr.bf16.mxu0 %v9827_v19  ;;  %v9905_v16 = vld [vmem:[%s10627_s12 + $0x14c] ss:$16 sps:$4 sm:$0xff]   ;;  %v9906_v19 = vld [vmem:[%s10627_s12 + $0x248] ss:$16 sps:$4 sm:$0xff]  }
 0x111   : > { %2420 = vmatprep.subr.bf16.mxu1 %v9830_v20  ;;  %v9911_v20 = vld [vmem:[%s10627_s12 + $0x12c] ss:$16 sps:$4 sm:$0xff]  }
 0x112   : > { %2330 = vmatmul.mubr.bf16.vlgmr.msra.gmra.mxu0 %v10824_v21 }
 0x113   : > { %2371 = vmatmul.mubr.bf16.vlgmr.msra.gmra.mxu1 %v10826_v22  ;;  %2380 = vmatpush1.bf16.msra.mxu0 %v9825_v23  ;;  %v9914_v23 = vld [vmem:[%s10627_s12 + $0x22c] ss:$16 sps:$4 sm:$0xff]  }
 0x114   : > { %2421 = vmatpush1.bf16.msra.mxu1 %v9828_v24  ;;  %2381 = vmatprep.subr.bf16.mxu0 %v9833_v25  ;;  %v9909_v24 = vld [vmem:[%s10627_s12 + $0x128] ss:$16 sps:$4 sm:$0xff]  }
 0x115   : > { %2422 = vmatprep.subr.bf16.mxu1 %v9836_v26  ;;  %2411 = vmatprep.mubr.bf16.mxu0 %v10436_v31  ;;  %v9912_v25 = vld [vmem:[%s10627_s12 + $0x228] ss:$16 sps:$4 sm:$0xff]   ;;  %v9917_v26 = vld [vmem:[%s10627_s12 + $0x10c] ss:$16 sps:$4 sm:$0xff]  }
 0x116   : > { %2452 = vmatprep.mubr.bf16.mxu1 %v10703_v50  ;;  %v9851_v50 = vld [vmem:[%s10627_s12 + $0x864] ss:$16 sps:$4 sm:$0xff]  }
 0x117   : > { %2382 = vmatpush1.bf16.msra.mxu0 %v9831_v27  ;;  %v9920_v27 = vld [vmem:[%s10627_s12 + $0x20c] ss:$16 sps:$4 sm:$0xff]  }
 0x118   : > { %2423 = vmatpush1.bf16.msra.mxu1 %v9834_v28  ;;  %2383 = vmatprep.subr.bf16.mxu0 %v9839_v29  ;;  %v9915_v28 = vld [vmem:[%s10627_s12 + $0x108] ss:$16 sps:$4 sm:$0xff]  }
 0x119   : > { %2424 = vmatprep.subr.bf16.mxu1 %v9842_v30  ;;  %v9918_v29 = vld [vmem:[%s10627_s12 + $0x208] ss:$16 sps:$4 sm:$0xff]   ;;  %v9923_v30 = vld [vmem:[%s10627_s12 + $0x3ec] ss:$16 sps:$4 sm:$0xff]  }
 0x11b   : > { %2384 = vmatpush1.bf16.msra.mxu0 %v9837_v32  ;;  %v9926_v32 = vld [vmem:[%s10627_s12 + $0x4ec] ss:$16 sps:$4 sm:$0xff]  }
 0x11c   : > { %2425 = vmatpush1.bf16.msra.mxu1 %v9840_v33  ;;  %2385 = vmatprep.subr.bf16.mxu0 %v9845_v34  ;;  %v9921_v33 = vld [vmem:[%s10627_s12 + $0x3e8] ss:$16 sps:$4 sm:$0xff]  }
 0x11d   : > { %2426 = vmatprep.subr.bf16.mxu1 %v9848_v35  ;;  %v9924_v34 = vld [vmem:[%s10627_s12 + $0x4e8] ss:$16 sps:$4 sm:$0xff]   ;;  %v9929_v35 = vld [vmem:[%s10627_s12 + $0x3cc] ss:$16 sps:$4 sm:$0xff]  }
 0x11f   : > { %2386 = vmatpush1.bf16.msra.mxu0 %v9843_v36  ;;  %v9932_v36 = vld [vmem:[%s10627_s12 + $0x4cc] ss:$16 sps:$4 sm:$0xff]  }
 0x120   : > { %2427 = vmatpush1.bf16.msra.mxu1 %v9846_v37  ;;  %2387 = vmatprep.subr.bf16.mxu0 %v9851_v50  ;;  %v9927_v37 = vld [vmem:[%s10627_s12 + $0x3c8] ss:$16 sps:$4 sm:$0xff]  }
 0x121   : > { %2428 = vmatprep.subr.bf16.mxu1 %v9854_v39  ;;  %v9930_v50 = vld [vmem:[%s10627_s12 + $0x4c8] ss:$16 sps:$4 sm:$0xff]   ;;  %v9935_v39 = vld [vmem:[%s10627_s12 + $0x3ac] ss:$16 sps:$4 sm:$0xff]  }
 0x123   : > { %2388 = vmatpush1.bf16.msra.mxu0 %v9849_v40  ;;  %v9938_v40 = vld [vmem:[%s10627_s12 + $0x4ac] ss:$16 sps:$4 sm:$0xff]  }
 0x124   : > { %2429 = vmatpush1.bf16.msra.mxu1 %v9852_v42  ;;  %2389 = vmatprep.subr.bf16.mxu0 %v9857_v43  ;;  %v9933_v42 = vld [vmem:[%s10627_s12 + $0x3a8] ss:$16 sps:$4 sm:$0xff]   ;;  %v9941_v43 = vld [vmem:[%s10627_s12 + $0x38c] ss:$16 sps:$4 sm:$0xff]  }
 0x125   : > { %2430 = vmatprep.subr.bf16.mxu1 %v9860_v44  ;;  %v9944_v44 = vld [vmem:[%s10627_s12 + $0x48c] ss:$16 sps:$4 sm:$0xff]  }
 0x127   : > { %2390 = vmatpush1.bf16.msra.mxu0 %v9855_v45  ;;  %v9939_v45 = vld [vmem:[%s10627_s12 + $0x388] ss:$16 sps:$4 sm:$0xff]  }
 0x128   : > { %2431 = vmatpush1.bf16.msra.mxu1 %v9858_v46  ;;  %2391 = vmatprep.subr.bf16.mxu0 %v9863_v47  ;;  %v9942_v46 = vld [vmem:[%s10627_s12 + $0x488] ss:$16 sps:$4 sm:$0xff]   ;;  %v9950_v47 = vld [vmem:[%s10627_s12 + $0x46c] ss:$16 sps:$4 sm:$0xff]  }
 0x129   : > { %2432 = vmatprep.subr.bf16.mxu1 %v9866_v48  ;;  %v9945_v48 = vld [vmem:[%s10627_s12 + $0x368] ss:$16 sps:$4 sm:$0xff]  }
 0x12b   : > { %2392 = vmatpush1.bf16.msra.mxu0 %v9861_v49  ;;  %v9948_v49 = vld [vmem:[%s10627_s12 + $0x468] ss:$16 sps:$4 sm:$0xff]  }
 0x12c   : > { %2433 = vmatpush1.bf16.msra.mxu1 %v9864_v51  ;;  %2393 = vmatprep.subr.bf16.mxu0 %v9869_v52  ;;  %v9953_v51 = vld [vmem:[%s10627_s12 + $0x34c] ss:$16 sps:$4 sm:$0xff]  }
 0x12d   : > { %2434 = vmatprep.subr.bf16.mxu1 %v9872_v54  ;;  %v9956_v52 = vld [vmem:[%s10627_s12 + $0x44c] ss:$16 sps:$4 sm:$0xff]   ;;  %v9951_v54 = vld [vmem:[%s10627_s12 + $0x348] ss:$16 sps:$4 sm:$0xff]  }
 0x12f   : > { %2394 = vmatpush1.bf16.msra.mxu0 %v9867_v55  ;;  %v9954_v55 = vld [vmem:[%s10627_s12 + $0x448] ss:$16 sps:$4 sm:$0xff]  }
 0x130   : > { %2435 = vmatpush1.bf16.msra.mxu1 %v9870_v56  ;;  %2461 = vmatprep.subr.bf16.mxu0 %v9878_v59  ;;  %v9959_v56 = vld [vmem:[%s10627_s12 + $0x32c] ss:$16 sps:$4 sm:$0xff]   ;;  %v9960_v59 = vld [vmem:[%s10627_s12 + $0x428] ss:$16 sps:$4 sm:$0xff]  }
 0x131   : > { %2436 = vmatprep.subr.bf16.mxu1 %v9875_v58  ;;  %v9957_v58 = vld [vmem:[%s10627_s12 + $0x328] ss:$16 sps:$4 sm:$0xff]  }
 0x132   : > { %2412 = vmatmul.mubr.bf16.vlgmr.msra.gmra.mxu0 %v10867_v60 }
 0x133   : > { %2462 = vmatpush1.bf16.msra.mxu0 %v9876_v62  ;;  %2493 = vmatprep.mubr.bf16.mxu0 %v10709_v53  ;;  %v9899_v53 = vld [vmem:[%s10627_s12 + $0x16c] ss:$16 sps:$4 sm:$0xff]  }
 0x134   : > { %2437 = vmatpush2.bf16.msra.mxu1 %v9873_v61  ;;  %2463 = vmatprep.subr.bf16.mxu0 %v9884_v0  ;;  %v9965_v61 = vld [vmem:[%s10627_s12 + $0x30c] ss:$16 sps:$4 sm:$0xff]   ;;  %v9966_v0 = vld [vmem:[%s10627_s12 + $0x408] ss:$16 sps:$4 sm:$0xff]  }
 0x135   : > { %2438 = vmatprep.subr.bf16.mxu1 %v9881_v63  ;;  %v9968_v62 = vld [vmem:[%s10627_s12 + $0x40c] ss:$16 sps:$4 sm:$0xff]   ;;  %v9963_v63 = vld [vmem:[%s10627_s12 + $0x308] ss:$16 sps:$4 sm:$0xff]  }
 0x137   : > { %2464 = vmatpush1.bf16.msra.mxu0 %v9882_v2  ;;  %v9974_v2 = vld [vmem:[%s10627_s12 + $0x6ec] ss:$16 sps:$4 sm:$0xff]  }
 0x138   : > { %2439 = vmatpush2.bf16.msra.mxu1 %v9879_v1  ;;  %2465 = vmatprep.subr.bf16.mxu0 %v9890_v4  ;;  %v9971_v1 = vld [vmem:[%s10627_s12 + $0x5ec] ss:$16 sps:$4 sm:$0xff]   ;;  %v9972_v4 = vld [vmem:[%s10627_s12 + $0x6e8] ss:$16 sps:$4 sm:$0xff]  }
 0x139   : > { %2440 = vmatprep.subr.bf16.mxu1 %v9887_v3  ;;  %v9969_v3 = vld [vmem:[%s10627_s12 + $0x5e8] ss:$16 sps:$4 sm:$0xff]  }
 0x13b   : > { %2466 = vmatpush1.bf16.msra.mxu0 %v9888_v6  ;;  %v9980_v6 = vld [vmem:[%s10627_s12 + $0x6cc] ss:$16 sps:$4 sm:$0xff]  }
 0x13c   : > { %2441 = vmatpush2.bf16.msra.mxu1 %v9885_v5  ;;  %2467 = vmatprep.subr.bf16.mxu0 %v9896_v8  ;;  %v9977_v5 = vld [vmem:[%s10627_s12 + $0x5cc] ss:$16 sps:$4 sm:$0xff]   ;;  %v9978_v8 = vld [vmem:[%s10627_s12 + $0x6c8] ss:$16 sps:$4 sm:$0xff]  }
 0x13d   : > { %2442 = vmatprep.subr.bf16.mxu1 %v9893_v7  ;;  %v9975_v7 = vld [vmem:[%s10627_s12 + $0x5c8] ss:$16 sps:$4 sm:$0xff]  }
 0x13f   : > { %2468 = vmatpush1.bf16.msra.mxu0 %v9894_v12  ;;  %v9986_v12 = vld [vmem:[%s10627_s12 + $0x6ac] ss:$16 sps:$4 sm:$0xff]  }
 0x140   : > { %2443 = vmatpush2.bf16.msra.mxu1 %v9891_v11  ;;  %2469 = vmatprep.subr.bf16.mxu0 %v9902_v13  ;;  %v9983_v11 = vld [vmem:[%s10627_s12 + $0x5ac] ss:$16 sps:$4 sm:$0xff]  }
 0x141   : > { %2444 = vmatprep.subr.bf16.mxu1 %v9899_v53  ;;  %v9981_v53 = vld [vmem:[%s10627_s12 + $0x5a8] ss:$16 sps:$4 sm:$0xff]   ;;  %v9989_v13 = vld [vmem:[%s10627_s12 + $0x58c] ss:$16 sps:$4 sm:$0xff]  }
 0x143   : > { %2470 = vmatpush1.bf16.msra.mxu0 %v9900_v15  ;;  %v9987_v15 = vld [vmem:[%s10627_s12 + $0x588] ss:$16 sps:$4 sm:$0xff]  }
 0x144   : > { %2445 = vmatpush2.bf16.msra.mxu1 %v9897_v14  ;;  %2471 = vmatprep.subr.bf16.mxu0 %v9908_v17  ;;  %v9992_v14 = vld [vmem:[%s10627_s12 + $0x68c] ss:$16 sps:$4 sm:$0xff]  }
 0x145   : > { %2446 = vmatprep.subr.bf16.mxu1 %v9905_v16  ;;  %v9990_v16 = vld [vmem:[%s10627_s12 + $0x688] ss:$16 sps:$4 sm:$0xff]   ;;  %v9998_v17 = vld [vmem:[%s10627_s12 + $0x66c] ss:$16 sps:$4 sm:$0xff]  }
 0x147   : > { %2472 = vmatpush1.bf16.msra.mxu0 %v9906_v19  ;;  %v9996_v19 = vld [vmem:[%s10627_s12 + $0x668] ss:$16 sps:$4 sm:$0xff]  }
 0x148   : > { %2447 = vmatpush2.bf16.msra.mxu1 %v9903_v18  ;;  %2473 = vmatprep.subr.bf16.mxu0 %v9914_v23  ;;  %v9993_v18 = vld [vmem:[%s10627_s12 + $0x568] ss:$16 sps:$4 sm:$0xff]   ;;  %v10004_v23 = vld [vmem:[%s10627_s12 + $0x64c] ss:$16 sps:$4 sm:$0xff]  }
 0x149   : > { %2448 = vmatprep.subr.bf16.mxu1 %v9911_v20  ;;  %v10001_v20 = vld [vmem:[%s10627_s12 + $0x54c] ss:$16 sps:$4 sm:$0xff]  }
 0x14b   : > { %2474 = vmatpush1.bf16.msra.mxu0 %v9912_v25  ;;  %v10002_v25 = vld [vmem:[%s10627_s12 + $0x648] ss:$16 sps:$4 sm:$0xff]  }
 0x14c   : > { %2449 = vmatpush2.bf16.msra.mxu1 %v9909_v24  ;;  %2475 = vmatprep.subr.bf16.mxu0 %v9920_v27  ;;  %v9999_v24 = vld [vmem:[%s10627_s12 + $0x548] ss:$16 sps:$4 sm:$0xff]   ;;  %v10010_v27 = vld [vmem:[%s10627_s12 + $0x62c] ss:$16 sps:$4 sm:$0xff]  }
 0x14d   : > { %2450 = vmatprep.subr.bf16.mxu1 %v9917_v26  ;;  %v10007_v26 = vld [vmem:[%s10627_s12 + $0x52c] ss:$16 sps:$4 sm:$0xff]  }
 0x14f   : > { %2476 = vmatpush1.bf16.msra.mxu0 %v9918_v29  ;;  %v10008_v29 = vld [vmem:[%s10627_s12 + $0x628] ss:$16 sps:$4 sm:$0xff]  }
 0x150   : > { %2451 = vmatpush2.bf16.msra.mxu1 %v9915_v28  ;;  %2477 = vmatprep.subr.bf16.mxu0 %v9923_v30  ;;  %v10005_v28 = vld [vmem:[%s10627_s12 + $0x528] ss:$16 sps:$4 sm:$0xff]   ;;  %v10013_v30 = vld [vmem:[%s10627_s12 + $0x50c] ss:$16 sps:$4 sm:$0xff]  }
 0x151   : > { %2502 = vmatprep.subr.bf16.mxu1 %v9926_v32  ;;  %v10016_v32 = vld [vmem:[%s10627_s12 + $0x60c] ss:$16 sps:$4 sm:$0xff]  }
 0x153   : > { %2453 = vmatmul.mubr.bf16.vlgmr.msra.gmra.mxu1 %v10736_v9  ;;  %2478 = vmatpush2.bf16.msra.mxu0 %v9921_v33  ;;  %v9936_v9 = vld [vmem:[%s10627_s12 + $0x4a8] ss:$16 sps:$4 sm:$0xff]  }
 0x154   : > { %2503 = vmatpush1.bf16.msra.mxu1 %v9924_v34  ;;  %2479 = vmatprep.subr.bf16.mxu0 %v9929_v35  ;;  %v10011_v33 = vld [vmem:[%s10627_s12 + $0x508] ss:$16 sps:$4 sm:$0xff]   ;;  %v10019_v35 = vld [vmem:[%s10627_s12 + $0x7ec] ss:$16 sps:$4 sm:$0xff]  }
 0x155   : > { %2504 = vmatprep.subr.bf16.mxu1 %v9932_v36  ;;  %2534 = vmatprep.mubr.bf16.mxu1 %v10771_v38  ;;  %v9947_v38 = vld [vmem:[%s10627_s12 + $0x36c] ss:$16 sps:$4 sm:$0xff]   ;;  %v10014_v34 = vld [vmem:[%s10627_s12 + $0x608] ss:$16 sps:$4 sm:$0xff]  }
 0x156   : > { %v10022_v36 = vld [vmem:[%s10627_s12 + $0x8ec] ss:$16 sps:$4 sm:$0xff]  }
 0x157   : > { %2480 = vmatpush2.bf16.msra.mxu0 %v9927_v37  ;;  %v10017_v37 = vld [vmem:[%s10627_s12 + $0x7e8] ss:$16 sps:$4 sm:$0xff]  }
 0x158   : > { %2505 = vmatpush1.bf16.msra.mxu1 %v9930_v50  ;;  %2481 = vmatprep.subr.bf16.mxu0 %v9935_v39  ;;  %v10020_v50 = vld [vmem:[%s10627_s12 + $0x8e8] ss:$16 sps:$4 sm:$0xff]   ;;  %v10025_v39 = vld [vmem:[%s10627_s12 + $0x7cc] ss:$16 sps:$4 sm:$0xff]  }
 0x159   : > { %2506 = vmatprep.subr.bf16.mxu1 %v9938_v40  ;;  %v10028_v40 = vld [vmem:[%s10627_s12 + $0x8cc] ss:$16 sps:$4 sm:$0xff]  }
 0x15b   : > { %2482 = vmatpush2.bf16.msra.mxu0 %v9933_v42 }
 0x15c   : > { %2507 = vmatpush1.bf16.msra.mxu1 %v9936_v9  ;;  %2483 = vmatprep.subr.bf16.mxu0 %v9941_v43 }
 0x15d   : > { %2508 = vmatprep.subr.bf16.mxu1 %v9944_v44  ;;  %v10023_v44 = vld [vmem:[%s10627_s12 + $0x7c8] ss:$16 sps:$4 sm:$0xff]  }
 0x15f   : > { %2484 = vmatpush2.bf16.msra.mxu0 %v9939_v45  ;;  %v10026_v45 = vld [vmem:[%s10627_s12 + $0x8c8] ss:$16 sps:$4 sm:$0xff]  }
 0x160   : > { %2509 = vmatpush1.bf16.msra.mxu1 %v9942_v46  ;;  %2485 = vmatprep.subr.bf16.mxu0 %v9947_v38 }
 0x161   : > { %2510 = vmatprep.subr.bf16.mxu1 %v9950_v47  ;;  %v10031_v47 = vld [vmem:[%s10627_s12 + $0x7ac] ss:$16 sps:$4 sm:$0xff]  }
 0x163   : > { %2486 = vmatpush2.bf16.msra.mxu0 %v9945_v48  ;;  %v10034_v48 = vld [vmem:[%s10627_s12 + $0x8ac] ss:$16 sps:$4 sm:$0xff]  }
 0x164   : > { %2511 = vmatpush1.bf16.msra.mxu1 %v9948_v49  ;;  %2487 = vmatprep.subr.bf16.mxu0 %v9953_v51 }
 0x165   : > { %2512 = vmatprep.subr.bf16.mxu1 %v9956_v52  ;;  %v10029_v52 = vld [vmem:[%s10627_s12 + $0x7a8] ss:$16 sps:$4 sm:$0xff]  }
 0x167   : > { %2488 = vmatpush2.bf16.msra.mxu0 %v9951_v54  ;;  %v10032_v54 = vld [vmem:[%s10627_s12 + $0x8a8] ss:$16 sps:$4 sm:$0xff]  }
 0x168   : > { %2513 = vmatpush1.bf16.msra.mxu1 %v9954_v55  ;;  %2489 = vmatprep.subr.bf16.mxu0 %v9959_v56 }
 0x169   : > { %2514 = vmatprep.subr.bf16.mxu1 %v9962_v57  ;;  %v10037_v57 = vld [vmem:[%s10627_s12 + $0x78c] ss:$16 sps:$4 sm:$0xff]  }
 0x16b   : > { %2490 = vmatpush2.bf16.msra.mxu0 %v9957_v58  ;;  %v10040_v58 = vld [vmem:[%s10627_s12 + $0x88c] ss:$16 sps:$4 sm:$0xff]  }
 0x16c   : > { %2515 = vmatpush1.bf16.msra.mxu1 %v9960_v59  ;;  %2491 = vmatprep.subr.bf16.mxu0 %v9965_v61  ;;  %v10038_v59 = vld [vmem:[%s10627_s12 + $0x888] ss:$16 sps:$4 sm:$0xff]   ;;  %v10043_v61 = vld [vmem:[%s10627_s12 + $0x76c] ss:$16 sps:$4 sm:$0xff]  }
 0x16d   : > { %2516 = vmatprep.subr.bf16.mxu1 %v9968_v62  ;;  %v10046_v62 = vld [vmem:[%s10627_s12 + $0x86c] ss:$16 sps:$4 sm:$0xff]  }
 0x16f   : > { %2492 = vmatpush2.bf16.msra.mxu0 %v9963_v63  ;;  %v10041_v63 = vld [vmem:[%s10627_s12 + $0x768] ss:$16 sps:$4 sm:$0xff]  }
 0x170   : > { %2517 = vmatpush1.bf16.msra.mxu1 %v9966_v0  ;;  %2543 = vmatprep.subr.bf16.mxu0 %v9974_v2  ;;  %v10044_v0 = vld [vmem:[%s10627_s12 + $0x868] ss:$16 sps:$4 sm:$0xff]   ;;  %v10052_v2 = vld [vmem:[%s10627_s12 + $0x84c] ss:$16 sps:$4 sm:$0xff]  }
 0x171   : > { %2518 = vmatprep.subr.bf16.mxu1 %v9971_v1  ;;  %v10049_v1 = vld [vmem:[%s10627_s12 + $0x74c] ss:$16 sps:$4 sm:$0xff]  }
 0x172   : > { %2494 = vmatmul.mubr.bf16.vlgmr.msra.gmra.mxu0 %v10738_v10  ;;  %v9984_v10 = vld [vmem:[%s10627_s12 + $0x6a8] ss:$16 sps:$4 sm:$0xff]  }
 0x173   : > { %2544 = vmatpush1.bf16.msra.mxu0 %v9972_v4  ;;  %2575 = vmatprep.mubr.bf16.mxu0 %v10777_v41  ;;  %v9995_v41 = vld [vmem:[%s10627_s12 + $0x56c] ss:$16 sps:$4 sm:$0xff]   ;;  %v10050_v4 = vld [vmem:[%s10627_s12 + $0x848] ss:$16 sps:$4 sm:$0xff]  }
 0x174   : > { %2519 = vmatpush2.bf16.msra.mxu1 %v9969_v3  ;;  %2545 = vmatprep.subr.bf16.mxu0 %v9980_v6  ;;  %v10047_v3 = vld [vmem:[%s10627_s12 + $0x748] ss:$16 sps:$4 sm:$0xff]   ;;  %v10058_v6 = vld [vmem:[%s10627_s12 + $0x82c] ss:$16 sps:$4 sm:$0xff]  }
 0x175   : > { %2520 = vmatprep.subr.bf16.mxu1 %v9977_v5  ;;  %v10055_v5 = vld [vmem:[%s10627_s12 + $0x72c] ss:$16 sps:$4 sm:$0xff]  }
 0x177   : > { %2546 = vmatpush1.bf16.msra.mxu0 %v9978_v8  ;;  %v10056_v8 = vld [vmem:[%s10627_s12 + $0x828] ss:$16 sps:$4 sm:$0xff]  }
 0x178   : > { %2521 = vmatpush2.bf16.msra.mxu1 %v9975_v7  ;;  %2547 = vmatprep.subr.bf16.mxu0 %v9986_v12  ;;  %v10053_v7 = vld [vmem:[%s10627_s12 + $0x728] ss:$16 sps:$4 sm:$0xff]   ;;  %v10064_v12 = vld [vmem:[%s10627_s12 + $0x80c] ss:$16 sps:$4 sm:$0xff]  }
 0x179   : > { %2522 = vmatprep.subr.bf16.mxu1 %v9983_v11  ;;  %v10061_v11 = vld [vmem:[%s10627_s12 + $0x70c] ss:$16 sps:$4 sm:$0xff]  }
 0x17b   : > { %2548 = vmatpush1.bf16.msra.mxu0 %v9984_v10  ;;  %v2851_v10 = vld [vmem:[%s10641_s21 + $0x3c0] sm:$0xff] }
 0x17c   : > { %2523 = vmatpush2.bf16.msra.mxu1 %v9981_v53  ;;  %2549 = vmatprep.subr.bf16.mxu0 %v9992_v14  ;;  %v2843_v53 = vld [vmem:[%s10641_s21 + $0x380] sm:$0xff]  ;;  %v10062_v14 = vld [vmem:[%s10627_s12 + $0x808] ss:$16 sps:$4 sm:$0xff]  }
 0x17d   : > { %2524 = vmatprep.subr.bf16.mxu1 %v9989_v13  ;;  %v10059_v13 = vld [vmem:[%s10627_s12 + $0x708] ss:$16 sps:$4 sm:$0xff]  }
 0x17f   : > { %2550 = vmatpush1.bf16.msra.mxu0 %v9990_v16  ;;  %v2827_v16 = vld [vmem:[%s10641_s21 + $0x300] sm:$0xff] }
 0x180   : > { %2525 = vmatpush2.bf16.msra.mxu1 %v9987_v15  ;;  %2551 = vmatprep.subr.bf16.mxu0 %v9998_v17  ;;  %v8815_v15 = vcombine.high %v2843_v53, %v2851_v10  ;;  %v8814_v17 = vcombine.low %v2843_v53, %v2851_v10 }
 0x181   : > { %2526 = vmatprep.subr.bf16.mxu1 %v9995_v41  ;;  %v2835_v41 = vld [vmem:[%s10641_s21 + $0x340] sm:$0xff] }
 0x183   : > { %2552 = vmatpush1.bf16.msra.mxu0 %v9996_v19  ;;  %v2811_v19 = vld [vmem:[%s10641_s21 + $0x280] sm:$0xff] }
 0x184   : > { %2527 = vmatpush2.bf16.msra.mxu1 %v9993_v18  ;;  %2553 = vmatprep.subr.bf16.mxu0 %v10004_v23  ;;  %v8799_v18 = vcombine.high %v2827_v16, %v2835_v41  ;;  %v8798_v23 = vcombine.low %v2827_v16, %v2835_v41  ;;  %v3027_v16 = vld [vmem:[%s10641_s21 + $0x940] sm:$0xff] }
 0x185   : > { %2528 = vmatprep.subr.bf16.mxu1 %v10001_v20  ;;  %v2819_v20 = vld [vmem:[%s10641_s21 + $0x2c0] sm:$0xff] }
 0x187   : > { %2554 = vmatpush1.bf16.msra.mxu0 %v10002_v25  ;;  %v2795_v25 = vld [vmem:[%s10641_s21 + $0x200] sm:$0xff] }
 0x188   : > { %2529 = vmatpush2.bf16.msra.mxu1 %v9999_v24  ;;  %2555 = vmatprep.subr.bf16.mxu0 %v10010_v27  ;;  %v8783_v24 = vcombine.high %v2811_v19, %v2819_v20  ;;  %v8782_v27 = vcombine.low %v2811_v19, %v2819_v20  ;;  %v2923_v20 = vld [vmem:[%s10641_s21 + $0x600] sm:$0xff] }
 0x189   : > { %2530 = vmatprep.subr.bf16.mxu1 %v10007_v26  ;;  %v2803_v26 = vld [vmem:[%s10641_s21 + $0x240] sm:$0xff] }
 0x18b   : > { %2556 = vmatpush1.bf16.msra.mxu0 %v10008_v29  ;;  %v2779_v29 = vld [vmem:[%s10641_s21 + $0x180] sm:$0xff] }
 0x18c   : > { %2531 = vmatpush2.bf16.msra.mxu1 %v10005_v28  ;;  %2557 = vmatprep.subr.bf16.mxu0 %v10016_v32  ;;  %v8767_v28 = vcombine.high %v2795_v25, %v2803_v26  ;;  %v2763_v32 = vld [vmem:[%s10641_s21 + $0x100] sm:$0xff] }
 0x18d   : > { %2532 = vmatprep.subr.bf16.mxu1 %v10013_v30 }
 0x18f   : > { %2558 = vmatpush1.bf16.msra.mxu0 %v10014_v34 }
 0x190   : > { %2533 = vmatpush2.bf16.msra.mxu1 %v10011_v33  ;;  %2559 = vmatprep.subr.bf16.mxu0 %v10019_v35  ;;  %v2771_v33 = vld [vmem:[%s10641_s21 + $0x140] sm:$0xff] }
 0x191   : > { %2584 = vmatprep.subr.bf16.mxu1 %v10022_v36  ;;  %v3099_v35 = vld [vmem:[%s10641_s21 + $0xb80] sm:$0xff] }
 0x192   : > { %v2249_v42 = vpop.f32.mrf.mxu0  ;;  %v3107_v36 = vld [vmem:[%s10641_s21 + $0xbc0] sm:$0xff] }
 0x193   : > { %v2290_v9 = vpop.f32.mrf.mxu1  ;;  %2535 = vmatmul.mubr.bf16.vlgmr.msra.gmra.mxu1 %v10824_v21  ;;  %2560 = vmatpush2.bf16.msra.mxu0 %v10017_v37  ;;  %v8735_v37 = vcombine.high %v2763_v32, %v2771_v33 }
 0x194   : > { %v10976_v43 = vadd.f32 %v2290_v9, %v2249_v42  ;;  %2585 = vmatpush1.bf16.msra.mxu1 %v10020_v50  ;;  %v2251_v46 = vpop.f32.mrf.mxu0  ;;  %2561 = vmatprep.subr.bf16.mxu0 %v10025_v39  ;;  %v9071_v50 = vcombine.high %v3099_v35, %v3107_v36  ;;  %v2747_v39 = vld [vmem:[%s10641_s21 + $0x80] sm:$0xff]  ;;  %v9070_v42 = vcombine.low %v3099_v35, %v3107_v36 }
 0x195   : > { %v2292_v38 = vpop.f32.mrf.mxu1  ;;  %2586 = vmatprep.subr.bf16.mxu1 %v10028_v40  ;;  %2616 = vmatprep.mubr.bf16.mxu1 %v10436_v31  ;;  %v10035_v31 = vld [vmem:[%s10627_s12 + $0x788] ss:$16 sps:$4 sm:$0xff]   ;;  %v2755_v40 = vld [vmem:[%s10641_s21 + $0xc0] sm:$0xff]  ;;  %v8734_v9 = vcombine.low %v2763_v32, %v2771_v33 }
 0x196   : > { %v10982_v49 = vadd.f32 %v2292_v38, %v2251_v46  ;;  %v2253_v21 = vpop.f32.mrf.mxu0  ;;  %v8719_v46 = vcombine.high %v2747_v39, %v2755_v40  ;;  %v2907_v33 = vld [vmem:[%s10641_s21 + $0x580] sm:$0xff] }
 0x197   : > { %v2294_v51 = vpop.f32.mrf.mxu1  ;;  %2562 = vmatpush2.bf16.msra.mxu0 %v10023_v44  ;;  %v3083_v44 = vld [vmem:[%s10641_s21 + $0xb00] sm:$0xff] }
 0x198   : > { %2587 = vmatpush1.bf16.msra.mxu1 %v10026_v45  ;;  %v2254_v55 = vpop.f32.mrf.mxu0  ;;  %2563 = vmatprep.subr.bf16.mxu0 %v10031_v47  ;;  %v3091_v45 = vld [vmem:[%s10641_s21 + $0xb40] sm:$0xff]  ;;  %v8718_v51 = vcombine.low %v2747_v39, %v2755_v40 }
 0x199   : > { %v2295_v56 = vpop.f32.mrf.mxu1  ;;  %2588 = vmatprep.subr.bf16.mxu1 %v10034_v48  ;;  %v9055_v38 = vcombine.high %v3083_v44, %v3091_v45  ;;  %v2731_v47 = vld [vmem:[%s10641_s21] sm:$0xff]  ;;  %v9054_v21 = vcombine.low %v3083_v44, %v3091_v45 }
 0x19a   : > { %v2739_v48 = vld [vmem:[%s10641_s21 + $0x40] sm:$0xff] }
 0x19b   : > { %2564 = vmatpush2.bf16.msra.mxu0 %v10029_v52  ;;  %v3067_v52 = vld [vmem:[%s10641_s21 + $0xa80] sm:$0xff]  ;;  %v8703_v55 = vcombine.high %v2731_v47, %v2739_v48 }
 0x19c   : > { %2589 = vmatpush1.bf16.msra.mxu1 %v10032_v54  ;;  %2565 = vmatprep.subr.bf16.mxu0 %v10037_v57  ;;  %v3075_v54 = vld [vmem:[%s10641_s21 + $0xac0] sm:$0xff] }
 0x19d   : > { %2590 = vmatprep.subr.bf16.mxu1 %v10040_v58  ;;  %v9039_v56 = vcombine.high %v3067_v52, %v3075_v54  ;;  %v2971_v57 = vld [vmem:[%s10641_s21 + $0x780] sm:$0xff] }
 0x19e   : > { %v2979_v58 = vld [vmem:[%s10641_s21 + $0x7c0] sm:$0xff] }
 0x19f   : > { %2566 = vmatpush2.bf16.msra.mxu0 %v10035_v31  ;;  %v9038_v31 = vcombine.low %v3067_v52, %v3075_v54  ;;  %v2883_v52 = vld [vmem:[%s10641_s21 + $0x4c0] sm:$0xff] }
 0x1a0   : > { %2591 = vmatpush1.bf16.msra.mxu1 %v10038_v59  ;;  %2567 = vmatprep.subr.bf16.mxu0 %v10043_v61  ;;  %v8702_v59 = vcombine.low %v2731_v47, %v2739_v48  ;;  %v3051_v61 = vld [vmem:[%s10641_s21 + $0xa00] sm:$0xff] }
 0x1a1   : > { %2592 = vmatprep.subr.bf16.mxu1 %v10046_v62  ;;  %v3059_v62 = vld [vmem:[%s10641_s21 + $0xa40] sm:$0xff] }
 0x1a3   : > { %2568 = vmatpush2.bf16.msra.mxu0 %v10041_v63  ;;  %v8943_v63 = vcombine.high %v2971_v57, %v2979_v58 }
 0x1a4   : > { %2593 = vmatpush1.bf16.msra.mxu1 %v10044_v0  ;;  %2569 = vmatprep.subr.bf16.mxu0 %v10049_v1  ;;  %v9023_v0 = vcombine.high %v3051_v61, %v3059_v62  ;;  %v2955_v1 = vld [vmem:[%s10641_s21 + $0x700] sm:$0xff] }
 0x1a5   : > { %2594 = vmatprep.subr.bf16.mxu1 %v10052_v2  ;;  %v2963_v2 = vld [vmem:[%s10641_s21 + $0x740] sm:$0xff] }
 0x1a7   : > { %2570 = vmatpush2.bf16.msra.mxu0 %v10047_v3  ;;  %v9022_v3 = vcombine.low %v3051_v61, %v3059_v62  ;;  %v2859_v61 = vld [vmem:[%s10641_s21 + $0x400] sm:$0xff] }
 0x1a8   : > { %2595 = vmatpush1.bf16.msra.mxu1 %v10050_v4  ;;  %2571 = vmatprep.subr.bf16.mxu0 %v10055_v5  ;;  %v8942_v4 = vcombine.low %v2971_v57, %v2979_v58  ;;  %v3035_v5 = vld [vmem:[%s10641_s21 + $0x980] sm:$0xff] }
 0x1a9   : > { %2596 = vmatprep.subr.bf16.mxu1 %v10058_v6  ;;  %v3043_v6 = vld [vmem:[%s10641_s21 + $0x9c0] sm:$0xff] }
 0x1aa   : > { %v9006_v53 = vcombine.low %v3035_v5, %v3043_v6  ;;  %v3219_v57 = vld [vmem:[%s10641_s21 + $0xf40] sm:$0xff] }
 0x1ab   : > { %2572 = vmatpush2.bf16.msra.mxu0 %v10053_v7  ;;  %v8927_v7 = vcombine.high %v2955_v1, %v2963_v2  ;;  %v2867_v62 = vld [vmem:[%s10641_s21 + $0x440] sm:$0xff] }
 0x1ac   : > { %2597 = vmatpush1.bf16.msra.mxu1 %v10056_v8  ;;  %2573 = vmatprep.subr.bf16.mxu0 %v10061_v11  ;;  %v9007_v8 = vcombine.high %v3035_v5, %v3043_v6  ;;  %v2939_v11 = vld [vmem:[%s10641_s21 + $0x680] sm:$0xff]  ;;  %v11077_v6 = vld [vmem:[%s10641_s21 + $0x388] sm:$0xff] }
 0x1ad   : > { %2598 = vmatprep.subr.bf16.mxu1 %v10064_v12  ;;  %v2947_v12 = vld [vmem:[%s10641_s21 + $0x6c0] sm:$0xff] }
 0x1af   : > { %2574 = vmatpush2.bf16.msra.mxu0 %v10059_v13 }
 0x1b0   : > { %2599 = vmatpush1.bf16.msra.mxu1 %v10062_v14  ;;  %5803 = vmatprep.subr.bf16.mxu0 %v8815_v15  ;;  %v8926_v14 = vcombine.low %v2955_v1, %v2963_v2  ;;  %v3019_v15 = vld [vmem:[%s10641_s21 + $0x900] sm:$0xff] }
 0x1b1   : > { %5844 = vmatprep.subr.bf16.mxu1 %v9071_v50  ;;  %v8991_v19 = vcombine.high %v3019_v15, %v3027_v16  ;;  %v2995_v50 = vld [vmem:[%s10641_s21 + $0x840] sm:$0xff] }
 0x1b2   : > { %2576 = vmatmul.mubr.bf16.vlgmr.msra.gmra.mxu0 %v10826_v22  ;;  %v2787_v22 = vld [vmem:[%s10641_s21 + $0x1c0] sm:$0xff] }
 0x1b3   : > { %2617 = vmatmul.mubr.bf16.vlgmr.msra.gmra.mxu1 %v10867_v60  ;;  %5804 = vmatpush1.bf16.msra.mxu0 %v8814_v17  ;;  %v8766_v60 = vcombine.low %v2795_v25, %v2803_v26  ;;  %v8751_v30 = vcombine.high %v2779_v29, %v2787_v22  ;;  %v8750_v34 = vcombine.low %v2779_v29, %v2787_v22  ;;  %v3011_v29 = vld [vmem:[%s10641_s21 + $0x8c0] sm:$0xff] }
 0x1b4   : > { %5805 = vmatprep.subr.bf16.mxu0 %v8799_v18  ;;  %5845 = vmatpush1.bf16.msra.mxu1 %v9070_v42  ;;  %v8911_v18 = vcombine.high %v2939_v11, %v2947_v12  ;;  %v2891_v42 = vld [vmem:[%s10641_s21 + $0x500] sm:$0xff] }
 0x1b5   : > { %5846 = vmatprep.subr.bf16.mxu1 %v9055_v38  ;;  %v3235_v38 = vld [vmem:[%s10641_s21 + $0xfc0] sm:$0xff] }
 0x1b6   : > { %v3195_v1 = vld [vmem:[%s10641_s21 + $0xe80] sm:$0xff] }
 0x1b7   : > { %5806 = vmatpush1.bf16.msra.mxu0 %v8798_v23  ;;  %v2931_v23 = vld [vmem:[%s10641_s21 + $0x640] sm:$0xff] }
 0x1b8   : > { %5807 = vmatprep.subr.bf16.mxu0 %v8783_v24  ;;  %5847 = vmatpush1.bf16.msra.mxu1 %v9054_v21  ;;  %v8990_v24 = vcombine.low %v3019_v15, %v3027_v16  ;;  %v8894_v36 = vcombine.low %v2923_v20, %v2931_v23  ;;  %v2627_v21 = vlaneseq  ;;  %v3203_v2 = vld [vmem:[%s10641_s21 + $0xec0] sm:$0xff] }
 0x1b9   : > { %5848 = vmatprep.subr.bf16.mxu1 %v9039_v56  ;;  %v3211_v56 = vld [vmem:[%s10641_s21 + $0xf00] sm:$0xff] }
 0x1ba   : > { %v3179_v15 = vld [vmem:[%s10641_s21 + $0xe00] sm:$0xff] }
 0x1bb   : > { %5808 = vmatpush1.bf16.msra.mxu0 %v8782_v27  ;;  %v8910_v27 = vcombine.low %v2939_v11, %v2947_v12  ;;  %v11083_v11 = vld [vmem:[%s10635_s10] sm:$0xff]  ;;  %v3187_v16 = vld [vmem:[%s10641_s21 + $0xe40] sm:$0xff] }
 0x1bc   : > { %5809 = vmatprep.subr.bf16.mxu0 %v8767_v28  ;;  %5849 = vmatpush1.bf16.msra.mxu1 %v9038_v31  ;;  %v3003_v28 = vld [vmem:[%s10641_s21 + $0x880] sm:$0xff]  ;;  %v9183_v31 = vcombine.high %v3211_v56, %v3219_v57 }
 0x1bd   : > { %5850 = vmatprep.subr.bf16.mxu1 %v9023_v0  ;;  %v8975_v32 = vcombine.high %v3003_v28, %v3011_v29  ;;  %v8974_v35 = vcombine.low %v3003_v28, %v3011_v29 }
 0x1bf   : > { %5810 = vmatpush1.bf16.msra.mxu0 %v8766_v60 }
 0x1c0   : > { %5811 = vmatprep.subr.bf16.mxu0 %v8751_v30  ;;  %5851 = vmatpush1.bf16.msra.mxu1 %v9022_v3  ;;  %v8895_v30 = vcombine.high %v2923_v20, %v2931_v23  ;;  %v8831_v3 = vcombine.high %v2859_v61, %v2867_v62 }
 0x1c1   : > { %5852 = vmatprep.subr.bf16.mxu1 %v9007_v8  ;;  %v9166_v8 = vcombine.low %v3195_v1, %v3203_v2 }
 0x1c3   : > { %5812 = vmatpush1.bf16.msra.mxu0 %v8750_v34  ;;  %v2915_v34 = vld [vmem:[%s10641_s21 + $0x5c0] sm:$0xff] }
 0x1c4   : > { %5813 = vmatprep.subr.bf16.mxu0 %v8735_v37  ;;  %5853 = vmatpush1.bf16.msra.mxu1 %v9006_v53  ;;  %v2987_v37 = vld [vmem:[%s10641_s21 + $0x800] sm:$0xff]  ;;  %v8879_v39 = vcombine.high %v2907_v33, %v2915_v34  ;;  %v8878_v45 = vcombine.low %v2907_v33, %v2915_v34 }
 0x1c5   : > { %5854 = vmatprep.subr.bf16.mxu1 %v8991_v19  ;;  %v8959_v40 = vcombine.high %v2987_v37, %v2995_v50  ;;  %v8958_v44 = vcombine.low %v2987_v37, %v2995_v50  ;;  %v9151_v19 = vcombine.high %v3179_v15, %v3187_v16 }
 0x1c7   : > { %5814 = vmatpush1.bf16.msra.mxu0 %v8734_v9  ;;  %v2899_v9 = vld [vmem:[%s10641_s21 + $0x540] sm:$0xff] }
 0x1c8   : > { %5815 = vmatprep.subr.bf16.mxu0 %v8719_v46  ;;  %5855 = vmatpush1.bf16.msra.mxu1 %v8990_v24  ;;  %v3227_v46 = vld [vmem:[%s10641_s21 + $0xf80] sm:$0xff]  ;;  %v8863_v47 = vcombine.high %v2891_v42, %v2899_v9 }
 0x1c9   : > { %5856 = vmatprep.subr.bf16.mxu1 %v8975_v32  ;;  %v9199_v48 = vcombine.high %v3227_v46, %v3235_v38  ;;  %v9198_v54 = vcombine.low %v3227_v46, %v3235_v38  ;;  %v3131_v46 = vld [vmem:[%s10641_s21 + $0xc80] sm:$0xff] }
 0x1ca   : > { %v3139_v38 = vld [vmem:[%s10641_s21 + $0xcc0] sm:$0xff] }
 0x1cb   : > { %5816 = vmatpush1.bf16.msra.mxu0 %v8718_v51  ;;  %v2875_v51 = vld [vmem:[%s10641_s21 + $0x480] sm:$0xff] }
 0x1cc   : > { %5817 = vmatprep.subr.bf16.mxu0 %v8703_v55  ;;  %5857 = vmatpush1.bf16.msra.mxu1 %v8974_v35  ;;  %v8862_v55 = vcombine.low %v2891_v42, %v2899_v9  ;;  %v8847_v58 = vcombine.high %v2875_v51, %v2883_v52  ;;  %v8846_v0 = vcombine.low %v2875_v51, %v2883_v52 }
 0x1cd   : > { %5858 = vmatprep.subr.bf16.mxu1 %v8959_v40  ;;  %v9102_v51 = vcombine.low %v3131_v46, %v3139_v38 }
 0x1cf   : > { %5818 = vmatpush1.bf16.msra.mxu0 %v8702_v59  ;;  %v11067_v59 = vshrl.u32 %v2627_v21, 7 }
 0x1d0   : > { %5819 = vmatprep.subr.bf16.mxu0 %v8943_v63  ;;  %5859 = vmatpush1.bf16.msra.mxu1 %v8958_v44  ;;  %v9182_v63 = vcombine.low %v3211_v56, %v3219_v57  ;;  %v2836_v56 = vld [vmem:[%s10641_s21 + $0x348] sm:$0xff]  ;;  %v3115_v57 = vld [vmem:[%s10641_s21 + $0xc00] sm:$0xff] }
 0x1d1   : > { %5860 = vmatprep.subr.bf16.mxu1 %v9199_v48  ;;  %v11074_v5 = vsub.s32 0, %v11067_v59  ;;  %v11086_v12 = vsub.s32 1, %v11067_v59  ;;  %v11089_v53 = vsub.s32 2, %v11067_v59  ;;  %v11100_v24 = vsub.s32 3, %v11067_v59 }
 0x1d2   : > { %v11041_v10 = vpop.f32.mrf.mxu0  ;;  %v9103_v48 = vcombine.high %v3131_v46, %v3139_v38  ;;  %v2940_v46 = vld [vmem:[%s10641_s21 + $0x688] sm:$0xff] }
 0x1d3   : > { %v11043_v13 = vpop.f32.mrf.mxu1  ;;  %5820 = vmatpush2.bf16.msra.mxu0 %v8942_v4  ;;  %v9167_v4 = vcombine.high %v3195_v1, %v3203_v2  ;;  %v2332_v20 = vadd.f32 %v11041_v10, %v10976_v43  ;;  %v2630_v23 = vrot.slane %v11083_v11, %v11074_v5  ;;  %v2634_v28 = vrot.slane %v11083_v11, %v11089_v53  ;;  %v3163_v43 = vld [vmem:[%s10641_s21 + $0xd80] sm:$0xff]  ;;  %v2812_v2 = vld [vmem:[%s10641_s21 + $0x288] sm:$0xff] }
 0x1d4   : > { %v11047_v41 = vpop.f32.mrf.mxu0  ;;  %5821 = vmatprep.subr.bf16.mxu0 %v8927_v7  ;;  %5861 = vmatpush2.bf16.msra.mxu1 %v9198_v54  ;;  %v11080_v7 = vld [vmem:[%s10641_s21 + $0x3c8] sm:$0xff]  ;;  %v3171_v10 = vld [vmem:[%s10641_s21 + $0xdc0] sm:$0xff] }
 0x1d5   : > { %v11049_v17 = vpop.f32.mrf.mxu1  ;;  %5862 = vmatprep.subr.bf16.mxu1 %v9183_v31  ;;  %v9135_v29 = vcombine.high %v3163_v43, %v3171_v10  ;;  %v2654_v35 = vrot.slane %v2634_v28, %v11074_v5  ;;  %v2828_v54 = vld [vmem:[%s10641_s21 + $0x308] sm:$0xff] }
 0x1d6   : > { %v2335_v25 = vpop.f32.mrf.mxu0  ;;  %v8801_v1 = vcombine.high %v2828_v54, %v2836_v56  ;;  %v2764_v28 = vld [vmem:[%s10641_s21 + $0x108] sm:$0xff] }
 0x1d7   : > { %v2376_v26 = vpop.f32.mrf.mxu1  ;;  %5822 = vmatpush2.bf16.msra.mxu0 %v8926_v14  ;;  %v8830_v14 = vcombine.low %v2859_v61, %v2867_v62  ;;  %v9150_v25 = vcombine.low %v3179_v15, %v3187_v16  ;;  %v8816_v62 = vcombine.low %v11077_v6, %v11080_v7  ;;  %v2796_v16 = vld [vmem:[%s10641_s21 + $0x208] sm:$0xff] }
 0x1d8   : > { %v2336_v22 = vpop.f32.mrf.mxu0  ;;  %5823 = vmatprep.subr.bf16.mxu0 %v8911_v18  ;;  %5863 = vmatpush2.bf16.msra.mxu1 %v9182_v63  ;;  %v8817_v18 = vcombine.high %v11077_v6, %v11080_v7  ;;  %v2334_v26 = vadd.f32 %v11047_v41, %v10982_v49  ;;  %v2674_v49 = vrot.slane %v11083_v11, %v11100_v24  ;;  %v2948_v38 = vld [vmem:[%s10641_s21 + $0x6c8] sm:$0xff] }
 0x1d9   : > { %v2377_v60 = vpop.f32.mrf.mxu1  ;;  %5864 = vmatprep.subr.bf16.mxu1 %v9167_v4  ;;  %v2373_v22 = vadd.f32 %v11043_v13, %v2332_v20  ;;  %v9134_v41 = vcombine.low %v3163_v43, %v3171_v10  ;;  %v3155_v13 = vld [vmem:[%s10641_s21 + $0xd40] sm:$0xff]  ;;  %v11136_v4 = vld [vmem:[%s10641_s21 + $0xb88] sm:$0xff]  ;;  %v8800_v7 = vcombine.low %v2828_v54, %v2836_v56 }
 0x1da   : > { %v2650_v60 = vrot.slane %v2630_v23, %v11074_v5  ;;  %v2375_v32 = vadd.f32 %v11049_v17, %v2334_v26  ;;  %v2694_v42 = vrot.slane %v2674_v49, %v11086_v12  ;;  %v2780_v23 = vld [vmem:[%s10641_s21 + $0x188] sm:$0xff] }
 0x1db   : > { %5824 = vmatpush2.bf16.msra.mxu0 %v8910_v27  ;;  %v2670_v27 = vrot.slane %v11083_v11, %v11086_v12  ;;  %v2772_v43 = vld [vmem:[%s10641_s21 + $0x148] sm:$0xff] }
 0x1dc   : > { %5825 = vmatprep.subr.bf16.mxu0 %v8895_v30  ;;  %5865 = vmatpush2.bf16.msra.mxu1 %v9166_v8  ;;  %v11139_v8 = vld [vmem:[%s10641_s21 + $0xbc8] sm:$0xff]  ;;  %v8736_v49 = vcombine.low %v2764_v28, %v2772_v43 }
 0x1dd   : > { %5866 = vmatprep.subr.bf16.mxu1 %v9151_v19  ;;  %v2690_v34 = vrot.slane %v2670_v27, %v11086_v12  ;;  %v9073_v6 = vcombine.high %v11136_v4, %v11139_v8  ;;  %v2916_v56 = vld [vmem:[%s10641_s21 + $0x5c8] sm:$0xff] }
 0x1df   : > { %5826 = vmatpush2.bf16.msra.mxu0 %v8894_v36  ;;  %v3147_v36 = vld [vmem:[%s10641_s21 + $0xd00] sm:$0xff] }
 0x1e0   : > { %5827 = vmatprep.subr.bf16.mxu0 %v8879_v39  ;;  %5867 = vmatpush2.bf16.msra.mxu1 %v9150_v25  ;;  %v9119_v50 = vcombine.high %v3147_v36, %v3155_v13  ;;  %v9118_v9 = vcombine.low %v3147_v36, %v3155_v13  ;;  %v2788_v25 = vld [vmem:[%s10641_s21 + $0x1c8] sm:$0xff] }
 0x1e1   : > { %5868 = vmatprep.subr.bf16.mxu1 %v9135_v29  ;;  %v8753_v27 = vcombine.high %v2780_v23, %v2788_v25  ;;  %v8752_v10 = vcombine.low %v2780_v23, %v2788_v25  ;;  %v8737_v29 = vcombine.high %v2764_v28, %v2772_v43  ;;  %v2853_v28 = vld [vmem:[%s10641_s21 + $0x3d0] sm:$0xff] }
 0x1e3   : > { %5828 = vmatpush2.bf16.msra.mxu0 %v8878_v45 }
 0x1e4   : > { %5829 = vmatprep.subr.bf16.mxu0 %v8863_v47  ;;  %5869 = vmatpush2.bf16.msra.mxu1 %v9134_v41 }
 0x1e5   : > { %5870 = vmatprep.subr.bf16.mxu1 %v9119_v50  ;;  %v2980_v50 = vld [vmem:[%s10641_s21 + $0x7c8] sm:$0xff] }
 0x1e7   : > { %5830 = vmatpush2.bf16.msra.mxu0 %v8862_v55 }
 0x1e8   : > { %5831 = vmatprep.subr.bf16.mxu0 %v8847_v58  ;;  %5871 = vmatpush2.bf16.msra.mxu1 %v9118_v9  ;;  %v3123_v58 = vld [vmem:[%s10641_s21 + $0xc40] sm:$0xff]  ;;  %v2956_v9 = vld [vmem:[%s10641_s21 + $0x708] sm:$0xff] }
 0x1e9   : > { %5872 = vmatprep.subr.bf16.mxu1 %v9103_v48  ;;  %v9087_v31 = vcombine.high %v3115_v57, %v3123_v58  ;;  %v9086_v63 = vcombine.low %v3115_v57, %v3123_v58  ;;  %v8913_v48 = vcombine.high %v2940_v46, %v2948_v38 }
 0x1eb   : > { %5832 = vmatpush2.bf16.msra.mxu0 %v8846_v0 }
 0x1ec   : > { %5833 = vmatprep.subr.bf16.mxu0 %v8831_v3  ;;  %5873 = vmatpush2.bf16.msra.mxu1 %v9102_v51  ;;  %v2820_v3 = vld [vmem:[%s10641_s21 + $0x2c8] sm:$0xff] }
 0x1ed   : > { %5874 = vmatprep.subr.bf16.mxu1 %v9087_v31  ;;  %v8785_v15 = vcombine.high %v2812_v2, %v2820_v3  ;;  %v8784_v19 = vcombine.low %v2812_v2, %v2820_v3  ;;  %v2932_v51 = vld [vmem:[%s10641_s21 + $0x648] sm:$0xff] }
 0x1ee   : > { %v2892_v31 = vld [vmem:[%s10641_s21 + $0x508] sm:$0xff] }
 0x1ef   : > { %5834 = vmatpush2.bf16.msra.mxu0 %v8830_v14  ;;  %v9072_v14 = vcombine.low %v11136_v4, %v11139_v8  ;;  %v2876_v2 = vld [vmem:[%s10641_s21 + $0x488] sm:$0xff] }
 0x1f0   : > { %5885 = vmatprep.subr.bf16.mxu0 %v8817_v18  ;;  %5875 = vmatpush2.bf16.msra.mxu1 %v9086_v63  ;;  %v2804_v18 = vld [vmem:[%s10641_s21 + $0x248] sm:$0xff] }
 0x1f1   : > { %5926 = vmatprep.subr.bf16.mxu1 %v9073_v6  ;;  %v8769_v20 = vcombine.high %v2796_v16, %v2804_v18  ;;  %v8768_v26 = vcombine.low %v2796_v16, %v2804_v18  ;;  %v2884_v3 = vld [vmem:[%s10641_s21 + $0x4c8] sm:$0xff] }
 0x1f2   : > { %v2413_v30 = vpop.f32.mrf.mxu0  ;;  %v2860_v18 = vld [vmem:[%s10641_s21 + $0x408] sm:$0xff]  ;;  %v8848_v23 = vcombine.low %v2876_v2, %v2884_v3 }
 0x1f3   : > { %v2414_v33 = vadd.f32 %v2413_v30, %v2373_v22  ;;  %v2748_v22 = vld [vmem:[%s10641_s21 + $0x88] sm:$0xff] }
 0x1f4   : > { %v2415_v37 = vpop.f32.mrf.mxu0 }
 0x1f5   : > { %v2663_v39 = vmul.f32 %v2650_v60, %v2414_v33  ;;  %v2416_v40 = vadd.f32 %v2415_v37, %v2375_v32  ;;  %v2756_v60 = vld [vmem:[%s10641_s21 + $0xc8] sm:$0xff] }
 0x1f6   : > { %v2417_v17 = vpop.f32.mrf.mxu0  ;;  %v8721_v30 = vcombine.high %v2748_v22, %v2756_v60  ;;  %v2732_v32 = vld [vmem:[%s10641_s21 + $0x8] sm:$0xff] }
 0x1f7   : > { %v2703_v44 = vadd.f32 %v2690_v34, %v2663_v39  ;;  %v2664_v45 = vmul.f32 %v2654_v35, %v2416_v40  ;;  %v2740_v33 = vld [vmem:[%s10641_s21 + $0x48] sm:$0xff]  ;;  %v8720_v35 = vcombine.low %v2748_v22, %v2756_v60  ;;  %v2829_v22 = vld [vmem:[%s10641_s21 + $0x310] sm:$0xff] }
 0x1f8   : > { %v2418_v47 = vpop.f32.mrf.mxu0  ;;  %v8705_v13 = vcombine.high %v2732_v32, %v2740_v33  ;;  %v2972_v37 = vld [vmem:[%s10641_s21 + $0x788] sm:$0xff]  ;;  %v8704_v40 = vcombine.low %v2732_v32, %v2740_v33  ;;  %v2837_v60 = vld [vmem:[%s10641_s21 + $0x350] sm:$0xff] }
 0x1f9   : > { %v2704_v21 = vadd.f32 %v2694_v42, %v2664_v45  ;;  %v2707_v52 = vmax.f32 %v2703_v44, 0.0  ;;  %v8945_v42 = vcombine.high %v2972_v37, %v2980_v50  ;;  %v2964_v17 = vld [vmem:[%s10641_s21 + $0x748] sm:$0xff]  ;;  %v8944_v44 = vcombine.low %v2972_v37, %v2980_v50  ;;  %v2821_v32 = vld [vmem:[%s10641_s21 + $0x2d0] sm:$0xff] }
 0x1fa   : > { %v8929_v45 = vcombine.high %v2956_v9, %v2964_v17  ;;  %v8928_v47 = vcombine.low %v2956_v9, %v2964_v17  ;;  %v8802_v33 = vcombine.low %v2829_v22, %v2837_v60  ;;  %v2765_v17 = vld [vmem:[%s10641_s21 + $0x110] sm:$0xff] }
 0x1fb   : > { %v2708_v55 = vmax.f32 %v2704_v21, 0.0  ;;  %v11130_v0 = vpack.c.bf16 %v2707_v52, %v2707_v52  ;;  %v2924_v21 = vld [vmem:[%s10641_s21 + $0x608] sm:$0xff]  ;;  %v8912_v52 = vcombine.low %v2940_v46, %v2948_v38  ;;  %v2749_v38 = vld [vmem:[%s10641_s21 + $0x90] sm:$0xff] }
 0x1fc   : > { %v8897_v54 = vcombine.high %v2924_v21, %v2932_v51  ;;  %v8896_v57 = vcombine.low %v2924_v21, %v2932_v51 }
 0x1fd   : > { %v11126_v61 = vpack.c.bf16 %v2708_v55, %v2708_v55  ;;  %v2908_v55 = vld [vmem:[%s10641_s21 + $0x588] sm:$0xff] }
 0x1fe   : > { %v8881_v58 = vcombine.high %v2908_v55, %v2916_v56  ;;  %v8880_v63 = vcombine.low %v2908_v55, %v2916_v56 }
 0x1ff   : > { %5835 = vmatprep.mubr.bf16.mxu0 %v11126_v61 }
 0x200   : > { %5836 = vmatmul.mubr.bf16.vlgmr.msra.gmra.mxu0 %v11130_v0 }
 0x201   : > { %5886 = vmatpush1.bf16.msra.mxu0 %v8816_v62  ;;  %5917 = vmatprep.mubr.bf16.mxu0 %v11126_v61  ;;  %v2900_v62 = vld [vmem:[%s10641_s21 + $0x548] sm:$0xff] }
 0x202   : > { %5887 = vmatprep.subr.bf16.mxu0 %v8801_v1  ;;  %v8865_v1 = vcombine.high %v2892_v31, %v2900_v62  ;;  %v8864_v6 = vcombine.low %v2892_v31, %v2900_v62  ;;  %v2973_v31 = vld [vmem:[%s10641_s21 + $0x790] sm:$0xff] }
 0x203   : > { %v2981_v62 = vld [vmem:[%s10641_s21 + $0x7d0] sm:$0xff] }
 0x205   : > { %5888 = vmatpush1.bf16.msra.mxu0 %v8800_v7 }
 0x206   : > { %5889 = vmatprep.subr.bf16.mxu0 %v8785_v15  ;;  %v8849_v15 = vcombine.high %v2876_v2, %v2884_v3  ;;  %v8947_v2 = vcombine.high %v2973_v31, %v2981_v62  ;;  %v2957_v3 = vld [vmem:[%s10641_s21 + $0x710] sm:$0xff] }
 0x209   : > { %5890 = vmatpush1.bf16.msra.mxu0 %v8784_v19  ;;  %v2868_v19 = vld [vmem:[%s10641_s21 + $0x448] sm:$0xff] }
 0x20a   : > { %5891 = vmatprep.subr.bf16.mxu0 %v8769_v20 }
 0x20d   : > { %5892 = vmatpush1.bf16.msra.mxu0 %v8768_v26  ;;  %v8833_v26 = vcombine.high %v2860_v18, %v2868_v19 }
 0x20e   : > { %5893 = vmatprep.subr.bf16.mxu0 %v8753_v27  ;;  %v2845_v27 = vld [vmem:[%s10641_s21 + $0x390] sm:$0xff] }
 0x211   : > { %5894 = vmatpush1.bf16.msra.mxu0 %v8752_v10  ;;  %v8832_v10 = vcombine.low %v2860_v18, %v2868_v19  ;;  %v2941_v18 = vld [vmem:[%s10641_s21 + $0x690] sm:$0xff] }
 0x212   : > { %5895 = vmatprep.subr.bf16.mxu0 %v8737_v29  ;;  %v8819_v29 = vcombine.high %v2845_v27, %v2853_v28  ;;  %v2949_v19 = vld [vmem:[%s10641_s21 + $0x6d0] sm:$0xff] }
 0x213   : > { %v2454_v41 = vpop.f32.mrf.mxu1 }
 0x215   : > { %v11157_v34 = vpop.f32.mrf.mxu1  ;;  %5896 = vmatpush1.bf16.msra.mxu0 %v8736_v49  ;;  %v8818_v49 = vcombine.low %v2845_v27, %v2853_v28  ;;  %v2933_v27 = vld [vmem:[%s10641_s21 + $0x650] sm:$0xff]  ;;  %v8914_v28 = vcombine.low %v2941_v18, %v2949_v19 }
 0x216   : > { %5897 = vmatprep.subr.bf16.mxu0 %v8721_v30  ;;  %v2813_v30 = vld [vmem:[%s10641_s21 + $0x290] sm:$0xff] }
 0x217   : > { %v2458_v36 = vpop.f32.mrf.mxu1  ;;  %v8786_v37 = vcombine.low %v2813_v30, %v2821_v32 }
 0x218   : > { %v2797_v36 = vld [vmem:[%s10641_s21 + $0x210] sm:$0xff] }
 0x219   : > { %v2459_v39 = vpop.f32.mrf.mxu1  ;;  %5898 = vmatpush1.bf16.msra.mxu0 %v8720_v35  ;;  %v8787_v35 = vcombine.high %v2813_v30, %v2821_v32  ;;  %v2901_v30 = vld [vmem:[%s10641_s21 + $0x550] sm:$0xff] }
 0x21a   : > { %5899 = vmatprep.subr.bf16.mxu0 %v8705_v13  ;;  %v2805_v13 = vld [vmem:[%s10641_s21 + $0x250] sm:$0xff] }
 0x21b   : > { %v8771_v50 = vcombine.high %v2797_v36, %v2805_v13  ;;  %v2781_v39 = vld [vmem:[%s10641_s21 + $0x190] sm:$0xff] }
 0x21d   : > { %5900 = vmatpush1.bf16.msra.mxu0 %v8704_v40  ;;  %v2789_v40 = vld [vmem:[%s10641_s21 + $0x1d0] sm:$0xff] }
 0x21e   : > { %5901 = vmatprep.subr.bf16.mxu0 %v8945_v42  ;;  %v8770_v42 = vcombine.low %v2797_v36, %v2805_v13  ;;  %v8755_v9 = vcombine.high %v2781_v39, %v2789_v40 }
 0x221   : > { %5902 = vmatpush2.bf16.msra.mxu0 %v8944_v44  ;;  %v2773_v44 = vld [vmem:[%s10641_s21 + $0x150] sm:$0xff] }
 0x222   : > { %5903 = vmatprep.subr.bf16.mxu0 %v8929_v45  ;;  %v8754_v45 = vcombine.low %v2781_v39, %v2789_v40  ;;  %v8739_v46 = vcombine.high %v2765_v17, %v2773_v44  ;;  %v2885_v39 = vld [vmem:[%s10641_s21 + $0x4d0] sm:$0xff] }
 0x225   : > { %5904 = vmatpush2.bf16.msra.mxu0 %v8928_v47  ;;  %v2757_v47 = vld [vmem:[%s10641_s21 + $0xd0] sm:$0xff] }
 0x226   : > { %5905 = vmatprep.subr.bf16.mxu0 %v8913_v48  ;;  %v8738_v48 = vcombine.low %v2765_v17, %v2773_v44  ;;  %v8723_v51 = vcombine.high %v2749_v38, %v2757_v47  ;;  %v8722_v56 = vcombine.low %v2749_v38, %v2757_v47 }
 0x229   : > { %5906 = vmatpush2.bf16.msra.mxu0 %v8912_v52  ;;  %v2733_v52 = vld [vmem:[%s10641_s21 + $0x10] sm:$0xff] }
 0x22a   : > { %5907 = vmatprep.subr.bf16.mxu0 %v8897_v54  ;;  %v2741_v54 = vld [vmem:[%s10641_s21 + $0x50] sm:$0xff] }
 0x22d   : > { %5908 = vmatpush2.bf16.msra.mxu0 %v8896_v57 }
 0x22e   : > { %5909 = vmatprep.subr.bf16.mxu0 %v8881_v58  ;;  %v8707_v58 = vcombine.high %v2733_v52, %v2741_v54 }
 0x231   : > { %5910 = vmatpush2.bf16.msra.mxu0 %v8880_v63 }
 0x232   : > { %v2495_v7 = vpop.f32.mrf.mxu0  ;;  %5911 = vmatprep.subr.bf16.mxu0 %v8865_v1  ;;  %v8706_v1 = vcombine.low %v2733_v52, %v2741_v54 }
 0x233   : > { %v11173_v16 = vadd.f32 %v2495_v7, %v2454_v41  ;;  %v8803_v41 = vcombine.high %v2829_v22, %v2837_v60  ;;  %v8946_v7 = vcombine.low %v2973_v31, %v2981_v62 }
 0x234   : > { %v11177_v20 = vpop.f32.mrf.mxu0 }
 0x235   : > { %5912 = vmatpush2.bf16.msra.mxu0 %v8864_v6  ;;  %v2965_v6 = vld [vmem:[%s10641_s21 + $0x750] sm:$0xff] }
 0x236   : > { %v2499_v25 = vpop.f32.mrf.mxu0  ;;  %5913 = vmatprep.subr.bf16.mxu0 %v8849_v15  ;;  %v8931_v15 = vcombine.high %v2957_v3, %v2965_v6 }
 0x237   : > { %v8915_v25 = vcombine.high %v2941_v18, %v2949_v19 }
 0x238   : > { %v2500_v43 = vpop.f32.mrf.mxu0 }
 0x239   : > { %5914 = vmatpush2.bf16.msra.mxu0 %v8848_v23  ;;  %v8930_v23 = vcombine.low %v2957_v3, %v2965_v6  ;;  %v2854_v3 = vld [vmem:[%s10641_s21 + $0x3d8] sm:$0xff] }
 0x23a   : > { %5915 = vmatprep.subr.bf16.mxu0 %v8833_v26  ;;  %v2925_v26 = vld [vmem:[%s10641_s21 + $0x610] sm:$0xff] }
 0x23b   : > { %v8899_v43 = vcombine.high %v2925_v26, %v2933_v27  ;;  %v8898_v22 = vcombine.low %v2925_v26, %v2933_v27  ;;  %v2830_v26 = vld [vmem:[%s10641_s21 + $0x318] sm:$0xff] }
 0x23c   : > { %v2838_v27 = vld [vmem:[%s10641_s21 + $0x358] sm:$0xff] }
 0x23d   : > { %5916 = vmatpush2.bf16.msra.mxu0 %v8832_v10  ;;  %v2909_v10 = vld [vmem:[%s10641_s21 + $0x590] sm:$0xff] }
 0x23e   : > { %5967 = vmatprep.subr.bf16.mxu0 %v8819_v29  ;;  %v2917_v29 = vld [vmem:[%s10641_s21 + $0x5d0] sm:$0xff] }
 0x23f   : > { %v8883_v60 = vcombine.high %v2909_v10, %v2917_v29  ;;  %v8882_v32 = vcombine.low %v2909_v10, %v2917_v29  ;;  %v8805_v29 = vcombine.high %v2830_v26, %v2838_v27 }
 0x240   : > { %5918 = vmatmul.mubr.bf16.vlgmr.msra.gmra.mxu0 %v11130_v0 }
 0x241   : > { %5968 = vmatpush1.bf16.msra.mxu0 %v8818_v49  ;;  %5999 = vmatprep.mubr.bf16.mxu0 %v11126_v61  ;;  %v11208_v49 = vsub.s32 4, %v11067_v59 }
 0x242   : > { %5969 = vmatprep.subr.bf16.mxu0 %v8803_v41  ;;  %v2893_v41 = vld [vmem:[%s10641_s21 + $0x510] sm:$0xff] }
 0x243   : > { %v8867_v36 = vcombine.high %v2893_v41, %v2901_v30  ;;  %v2638_v13 = vrot.slane %v11083_v11, %v11208_v49  ;;  %v8866_v40 = vcombine.low %v2893_v41, %v2901_v30  ;;  %v2814_v30 = vld [vmem:[%s10641_s21 + $0x298] sm:$0xff] }
 0x245   : > { %5970 = vmatpush1.bf16.msra.mxu0 %v8802_v33  ;;  %v11213_v33 = vsub.s32 5, %v11067_v59 }
 0x246   : > { %5971 = vmatprep.subr.bf16.mxu0 %v8787_v35  ;;  %v11216_v35 = vsub.s32 6, %v11067_v59 }
 0x247   : > { %v2678_v17 = vrot.slane %v11083_v11, %v11213_v33 }
 0x248   : > { %v2642_v44 = vrot.slane %v11083_v11, %v11216_v35 }
 0x249   : > { %5972 = vmatpush1.bf16.msra.mxu0 %v8786_v37  ;;  %v11221_v37 = vsub.s32 7, %v11067_v59 }
 0x24a   : > { %5973 = vmatprep.subr.bf16.mxu0 %v8771_v50  ;;  %v2877_v50 = vld [vmem:[%s10641_s21 + $0x490] sm:$0xff] }
 0x24b   : > { %v8850_v52 = vcombine.low %v2877_v50, %v2885_v39 }
 0x24d   : > { %5974 = vmatpush1.bf16.msra.mxu0 %v8770_v42  ;;  %v2498_v42 = vadd.f32 %v11177_v20, %v11157_v34  ;;  %v2682_v34 = vrot.slane %v11083_v11, %v11221_v37  ;;  %v2861_v20 = vld [vmem:[%s10641_s21 + $0x410] sm:$0xff] }
 0x24e   : > { %5975 = vmatprep.subr.bf16.mxu0 %v8755_v9 }
 0x251   : > { %5976 = vmatpush1.bf16.msra.mxu0 %v8754_v45 }
 0x252   : > { %5977 = vmatprep.subr.bf16.mxu0 %v8739_v46  ;;  %v8851_v46 = vcombine.high %v2877_v50, %v2885_v39 }
 0x253   : > { %v2536_v21 = vpop.f32.mrf.mxu1 }
 0x254   : > { %v2537_v9 = vadd.f32 %v2536_v21, %v11173_v16  ;;  %v2869_v16 = vld [vmem:[%s10641_s21 + $0x450] sm:$0xff] }
 0x255   : > { %v2538_v55 = vpop.f32.mrf.mxu1  ;;  %5978 = vmatpush1.bf16.msra.mxu0 %v8738_v48  ;;  %v2658_v48 = vrot.slane %v2638_v13, %v11074_v5  ;;  %v8835_v62 = vcombine.high %v2861_v20, %v2869_v16  ;;  %v8834_v19 = vcombine.low %v2861_v20, %v2869_v16  ;;  %v8804_v13 = vcombine.low %v2830_v26, %v2838_v27  ;;  %v3036_v16 = vld [vmem:[%s10641_s21 + $0x988] sm:$0xff] }
 0x256   : > { %5979 = vmatprep.subr.bf16.mxu0 %v8723_v51  ;;  %v2539_v38 = vadd.f32 %v2538_v55, %v2498_v42  ;;  %v3076_v42 = vld [vmem:[%s10641_s21 + $0xac8] sm:$0xff] }
 0x257   : > { %v2540_v57 = vpop.f32.mrf.mxu1  ;;  %v2988_v27 = vld [vmem:[%s10641_s21 + $0x808] sm:$0xff] }
 0x259   : > { %v2541_v63 = vpop.f32.mrf.mxu1  ;;  %5980 = vmatpush1.bf16.msra.mxu0 %v8722_v56  ;;  %v2698_v56 = vrot.slane %v2678_v17, %v11086_v12  ;;  %v2806_v17 = vld [vmem:[%s10641_s21 + $0x258] sm:$0xff] }
 0x25a   : > { %5981 = vmatprep.subr.bf16.mxu0 %v8707_v58  ;;  %v2662_v58 = vrot.slane %v2642_v44, %v11074_v5 }
 0x25d   : > { %5982 = vmatpush1.bf16.msra.mxu0 %v8706_v1  ;;  %v2702_v1 = vrot.slane %v2682_v34, %v11086_v12  ;;  %v2790_v34 = vld [vmem:[%s10641_s21 + $0x1d8] sm:$0xff] }
 0x25e   : > { %5983 = vmatprep.subr.bf16.mxu0 %v8947_v2  ;;  %v2846_v2 = vld [vmem:[%s10641_s21 + $0x398] sm:$0xff] }
 0x25f   : > { %v8820_v10 = vcombine.low %v2846_v2, %v2854_v3 }
 0x261   : > { %5984 = vmatpush2.bf16.msra.mxu0 %v8946_v7 }
 0x262   : > { %5985 = vmatprep.subr.bf16.mxu0 %v8931_v15 }
 0x265   : > { %5986 = vmatpush2.bf16.msra.mxu0 %v8930_v23  ;;  %v8821_v23 = vcombine.high %v2846_v2, %v2854_v3 }
 0x266   : > { %5987 = vmatprep.subr.bf16.mxu0 %v8915_v25 }
 0x269   : > { %5988 = vmatpush2.bf16.msra.mxu0 %v8914_v28 }
 0x26a   : > { %5989 = vmatprep.subr.bf16.mxu0 %v8899_v43 }
 0x26d   : > { %5990 = vmatpush2.bf16.msra.mxu0 %v8898_v22  ;;  %v3084_v22 = vld [vmem:[%s10641_s21 + $0xb08] sm:$0xff] }
 0x26e   : > { %5991 = vmatprep.subr.bf16.mxu0 %v8883_v60  ;;  %v3092_v60 = vld [vmem:[%s10641_s21 + $0xb48] sm:$0xff] }
 0x26f   : > { %v9057_v50 = vcombine.high %v3084_v22, %v3092_v60  ;;  %v9056_v44 = vcombine.low %v3084_v22, %v3092_v60 }
 0x271   : > { %5992 = vmatpush2.bf16.msra.mxu0 %v8882_v32  ;;  %v2822_v32 = vld [vmem:[%s10641_s21 + $0x2d8] sm:$0xff] }
 0x272   : > { %v2577_v45 = vpop.f32.mrf.mxu0  ;;  %5993 = vmatprep.subr.bf16.mxu0 %v8867_v36  ;;  %v8789_v39 = vcombine.high %v2814_v30, %v2822_v32 }
 0x273   : > { %v2618_v59 = vpop.f32.mrf.mxu1  ;;  %v2578_v47 = vadd.f32 %v2577_v45, %v2537_v9  ;;  %v2798_v9 = vld [vmem:[%s10641_s21 + $0x218] sm:$0xff]  ;;  %v8788_v45 = vcombine.low %v2814_v30, %v2822_v32  ;;  %v3228_v32 = vld [vmem:[%s10641_s21 + $0xf88] sm:$0xff] }
 0x274   : > { %v2579_v21 = vpop.f32.mrf.mxu0  ;;  %v8772_v8 = vcombine.low %v2798_v9, %v2806_v17 }
 0x275   : > { %v2620_v51 = vpop.f32.mrf.mxu1  ;;  %v2619_v54 = vadd.f32 %v2618_v59, %v2578_v47  ;;  %v2580_v57 = vadd.f32 %v2579_v21, %v2539_v38  ;;  %5994 = vmatpush2.bf16.msra.mxu0 %v8866_v40  ;;  %v3068_v40 = vld [vmem:[%s10641_s21 + $0xa88] sm:$0xff] }
 0x276   : > { %v2581_v55 = vpop.f32.mrf.mxu0  ;;  %5995 = vmatprep.subr.bf16.mxu0 %v8851_v46  ;;  %v9041_v59 = vcombine.high %v3068_v40, %v3076_v42  ;;  %v8773_v46 = vcombine.high %v2798_v9, %v2806_v17  ;;  %v3052_v38 = vld [vmem:[%s10641_s21 + $0xa08] sm:$0xff]  ;;  %v9040_v4 = vcombine.low %v3068_v40, %v3076_v42 }
 0x277   : > { %v2622_v31 = vpop.f32.mrf.mxu1  ;;  %v2665_v11 = vmul.f32 %v2658_v48, %v2619_v54  ;;  %v2621_v63 = vadd.f32 %v2620_v51, %v2580_v57  ;;  %v3060_v47 = vld [vmem:[%s10641_s21 + $0xa48] sm:$0xff]  ;;  %v2782_v48 = vld [vmem:[%s10641_s21 + $0x198] sm:$0xff] }
 0x278   : > { %v2582_v6 = vpop.f32.mrf.mxu0  ;;  %v8757_v20 = vcombine.high %v2782_v48, %v2790_v34  ;;  %v3044_v21 = vld [vmem:[%s10641_s21 + $0x9c8] sm:$0xff]  ;;  %v2766_v51 = vld [vmem:[%s10641_s21 + $0x118] sm:$0xff]  ;;  %v9024_v54 = vcombine.low %v3052_v38, %v3060_v47 }
 0x279   : > { %v2623_v7 = vpop.f32.mrf.mxu1  ;;  %v2705_v15 = vadd.f32 %v2698_v56, %v2665_v11  ;;  %v2666_v18 = vmul.f32 %v2662_v58, %v2621_v63  ;;  %5996 = vmatpush2.bf16.msra.mxu0 %v8850_v52  ;;  %v2774_v52 = vld [vmem:[%s10641_s21 + $0x158] sm:$0xff]  ;;  %v8756_v56 = vcombine.low %v2782_v48, %v2790_v34  ;;  %v9009_v57 = vcombine.high %v3036_v16, %v3044_v21  ;;  %v3020_v55 = vld [vmem:[%s10641_s21 + $0x908] sm:$0xff] }
 0x27a   : > { %5997 = vmatprep.subr.bf16.mxu0 %v8835_v62  ;;  %v8741_v58 = vcombine.high %v2766_v51, %v2774_v52  ;;  %v3028_v31 = vld [vmem:[%s10641_s21 + $0x948] sm:$0xff]  ;;  %v2750_v62 = vld [vmem:[%s10641_s21 + $0x98] sm:$0xff]  ;;  %v9008_v63 = vcombine.low %v3036_v16, %v3044_v21 }
 0x27b   : > { %v2706_v25 = vadd.f32 %v2702_v1, %v2666_v18  ;;  %v2709_v28 = vmax.f32 %v2705_v15, 0.0  ;;  %v2758_v11 = vld [vmem:[%s10641_s21 + $0xd8] sm:$0xff]  ;;  %v8740_v1 = vcombine.low %v2766_v51, %v2774_v52  ;;  %v8993_v2 = vcombine.high %v3020_v55, %v3028_v31  ;;  %v3004_v6 = vld [vmem:[%s10641_s21 + $0x888] sm:$0xff] }
 0x27c   : > { %v8725_v3 = vcombine.high %v2750_v62, %v2758_v11  ;;  %v3012_v7 = vld [vmem:[%s10641_s21 + $0x8c8] sm:$0xff]  ;;  %v2734_v15 = vld [vmem:[%s10641_s21 + $0x18] sm:$0xff] }
 0x27d   : > { %v2710_v43 = vmax.f32 %v2706_v25, 0.0  ;;  %5998 = vmatpush2.bf16.msra.mxu0 %v8834_v19  ;;  %v11251_v36 = vpack.c.bf16 %v2709_v28, %v2709_v28  ;;  %v2742_v18 = vld [vmem:[%s10641_s21 + $0x58] sm:$0xff]  ;;  %v8992_v19 = vcombine.low %v3020_v55, %v3028_v31  ;;  %v8977_v25 = vcombine.high %v3004_v6, %v3012_v7  ;;  %v2996_v28 = vld [vmem:[%s10641_s21 + $0x848] sm:$0xff] }
 0x27e   : > { %6049 = vmatprep.subr.bf16.mxu0 %v8821_v23  ;;  %v8724_v23 = vcombine.low %v2750_v62, %v2758_v11  ;;  %v8709_v26 = vcombine.high %v2734_v15, %v2742_v18  ;;  %v8708_v22 = vcombine.low %v2734_v15, %v2742_v18  ;;  %v8961_v60 = vcombine.high %v2988_v27, %v2996_v28 }
 0x27f   : > { %v11246_v41 = vpack.c.bf16 %v2710_v43, %v2710_v43  ;;  %v2974_v43 = vld [vmem:[%s10641_s21 + $0x798] sm:$0xff]  ;;  %v8960_v40 = vcombine.low %v2988_v27, %v2996_v28 }
 0x280   : > { %6000 = vmatmul.mubr.bf16.vlgmr.msra.gmra.mxu0 %v11130_v0 }
 0x281   : > { %6050 = vmatpush1.bf16.msra.mxu0 %v8820_v10  ;;  %6081 = vmatprep.mubr.bf16.mxu0 %v11126_v61  ;;  %v2982_v10 = vld [vmem:[%s10641_s21 + $0x7d8] sm:$0xff] }
 0x282   : > { %5876 = vmatprep.mubr.bf16.mxu1 %v11246_v41  ;;  %6051 = vmatprep.subr.bf16.mxu0 %v8805_v29  ;;  %v8976_v29 = vcombine.low %v3004_v6, %v3012_v7  ;;  %v8949_v30 = vcombine.high %v2974_v43, %v2982_v10  ;;  %v8948_v42 = vcombine.low %v2974_v43, %v2982_v10 }
 0x283   : > { %5877 = vmatmul.mubr.bf16.vlgmr.msra.gmra.mxu1 %v11251_v36 }
 0x284   : > { %5927 = vmatpush1.bf16.msra.mxu1 %v9072_v14  ;;  %5958 = vmatprep.mubr.bf16.mxu1 %v11246_v41  ;;  %v9025_v14 = vcombine.high %v3052_v38, %v3060_v47 }
 0x285   : > { %6052 = vmatpush1.bf16.msra.mxu0 %v8804_v13  ;;  %5928 = vmatprep.subr.bf16.mxu1 %v9057_v50  ;;  %v3236_v13 = vld [vmem:[%s10641_s21 + $0xfc8] sm:$0xff]  ;;  %v2958_v50 = vld [vmem:[%s10641_s21 + $0x718] sm:$0xff] }
 0x286   : > { %6053 = vmatprep.subr.bf16.mxu0 %v8789_v39  ;;  %v2966_v39 = vld [vmem:[%s10641_s21 + $0x758] sm:$0xff]  ;;  %v9201_v9 = vcombine.high %v3228_v32, %v3236_v13  ;;  %v9200_v38 = vcombine.low %v3228_v32, %v3236_v13 }
 0x287   : > { %v8933_v17 = vcombine.high %v2958_v50, %v2966_v39  ;;  %v8932_v47 = vcombine.low %v2958_v50, %v2966_v39 }
 0x288   : > { %5929 = vmatpush1.bf16.msra.mxu1 %v9056_v44  ;;  %v3212_v44 = vld [vmem:[%s10641_s21 + $0xf08] sm:$0xff] }
 0x289   : > { %6054 = vmatpush1.bf16.msra.mxu0 %v8788_v45  ;;  %5930 = vmatprep.subr.bf16.mxu1 %v9041_v59  ;;  %v3220_v45 = vld [vmem:[%s10641_s21 + $0xf48] sm:$0xff]  ;;  %v2942_v59 = vld [vmem:[%s10641_s21 + $0x698] sm:$0xff] }
 0x28a   : > { %6055 = vmatprep.subr.bf16.mxu0 %v8773_v46  ;;  %v2950_v46 = vld [vmem:[%s10641_s21 + $0x6d8] sm:$0xff]  ;;  %v9185_v48 = vcombine.high %v3212_v44, %v3220_v45  ;;  %v9184_v16 = vcombine.low %v3212_v44, %v3220_v45 }
 0x28b   : > { %v8917_v34 = vcombine.high %v2942_v59, %v2950_v46  ;;  %v8916_v21 = vcombine.low %v2942_v59, %v2950_v46 }
 0x28c   : > { %5931 = vmatpush1.bf16.msra.mxu1 %v9040_v4  ;;  %v3196_v4 = vld [vmem:[%s10641_s21 + $0xe88] sm:$0xff] }
 0x28d   : > { %6056 = vmatpush1.bf16.msra.mxu0 %v8772_v8  ;;  %5932 = vmatprep.subr.bf16.mxu1 %v9025_v14  ;;  %v3204_v8 = vld [vmem:[%s10641_s21 + $0xec8] sm:$0xff]  ;;  %v2926_v14 = vld [vmem:[%s10641_s21 + $0x618] sm:$0xff] }
 0x28e   : > { %6057 = vmatprep.subr.bf16.mxu0 %v8757_v20  ;;  %v2934_v20 = vld [vmem:[%s10641_s21 + $0x658] sm:$0xff]  ;;  %v9169_v51 = vcombine.high %v3196_v4, %v3204_v8  ;;  %v9168_v55 = vcombine.low %v3196_v4, %v3204_v8 }
 0x28f   : > { %v8901_v52 = vcombine.high %v2926_v14, %v2934_v20  ;;  %v8900_v31 = vcombine.low %v2926_v14, %v2934_v20 }
 0x290   : > { %5933 = vmatpush1.bf16.msra.mxu1 %v9024_v54  ;;  %v3180_v54 = vld [vmem:[%s10641_s21 + $0xe08] sm:$0xff] }
 0x291   : > { %6058 = vmatpush1.bf16.msra.mxu0 %v8756_v56  ;;  %5934 = vmatprep.subr.bf16.mxu1 %v9009_v57  ;;  %v3188_v56 = vld [vmem:[%s10641_s21 + $0xe48] sm:$0xff]  ;;  %v2910_v57 = vld [vmem:[%s10641_s21 + $0x598] sm:$0xff] }
 0x292   : > { %6059 = vmatprep.subr.bf16.mxu0 %v8741_v58  ;;  %v2918_v58 = vld [vmem:[%s10641_s21 + $0x5d8] sm:$0xff]  ;;  %v9153_v62 = vcombine.high %v3180_v54, %v3188_v56  ;;  %v9152_v6 = vcombine.low %v3180_v54, %v3188_v56 }
 0x293   : > { %v8885_v11 = vcombine.high %v2910_v57, %v2918_v58  ;;  %v8884_v7 = vcombine.low %v2910_v57, %v2918_v58 }
 0x294   : > { %5935 = vmatpush1.bf16.msra.mxu1 %v9008_v63  ;;  %v3164_v63 = vld [vmem:[%s10641_s21 + $0xd88] sm:$0xff] }
 0x295   : > { %6060 = vmatpush1.bf16.msra.mxu0 %v8740_v1  ;;  %5936 = vmatprep.subr.bf16.mxu1 %v8993_v2  ;;  %v3172_v1 = vld [vmem:[%s10641_s21 + $0xdc8] sm:$0xff]  ;;  %v2894_v2 = vld [vmem:[%s10641_s21 + $0x518] sm:$0xff] }
 0x296   : > { %6061 = vmatprep.subr.bf16.mxu0 %v8725_v3  ;;  %v2902_v3 = vld [vmem:[%s10641_s21 + $0x558] sm:$0xff]  ;;  %v9137_v15 = vcombine.high %v3164_v63, %v3172_v1  ;;  %v9136_v27 = vcombine.low %v3164_v63, %v3172_v1  ;;  %v2799_v63 = vld [vmem:[%s10641_s21 + $0x220] sm:$0xff] }
 0x297   : > { %v8869_v18 = vcombine.high %v2894_v2, %v2902_v3  ;;  %v8868_v28 = vcombine.low %v2894_v2, %v2902_v3  ;;  %v2807_v1 = vld [vmem:[%s10641_s21 + $0x260] sm:$0xff] }
 0x298   : > { %5937 = vmatpush1.bf16.msra.mxu1 %v8992_v19  ;;  %v3148_v19 = vld [vmem:[%s10641_s21 + $0xd08] sm:$0xff] }
 0x299   : > { %6062 = vmatpush1.bf16.msra.mxu0 %v8724_v23  ;;  %5938 = vmatprep.subr.bf16.mxu1 %v8977_v25  ;;  %v3156_v23 = vld [vmem:[%s10641_s21 + $0xd48] sm:$0xff]  ;;  %v2878_v25 = vld [vmem:[%s10641_s21 + $0x498] sm:$0xff] }
 0x29a   : > { %6063 = vmatprep.subr.bf16.mxu0 %v8709_v26  ;;  %v2886_v26 = vld [vmem:[%s10641_s21 + $0x4d8] sm:$0xff]  ;;  %v9121_v43 = vcombine.high %v3148_v19, %v3156_v23  ;;  %v9120_v32 = vcombine.low %v3148_v19, %v3156_v23  ;;  %v3053_v19 = vld [vmem:[%s10641_s21 + $0xa10] sm:$0xff] }
 0x29b   : > { %v8853_v10 = vcombine.high %v2878_v25, %v2886_v26  ;;  %v8852_v13 = vcombine.low %v2878_v25, %v2886_v26  ;;  %v3061_v23 = vld [vmem:[%s10641_s21 + $0xa50] sm:$0xff]  ;;  %v2783_v25 = vld [vmem:[%s10641_s21 + $0x1a0] sm:$0xff] }
 0x29c   : > { %5939 = vmatpush1.bf16.msra.mxu1 %v8976_v29  ;;  %v3132_v29 = vld [vmem:[%s10641_s21 + $0xc88] sm:$0xff]  ;;  %v2791_v26 = vld [vmem:[%s10641_s21 + $0x1e0] sm:$0xff] }
 0x29d   : > { %6064 = vmatpush1.bf16.msra.mxu0 %v8708_v22  ;;  %5940 = vmatprep.subr.bf16.mxu1 %v8961_v60  ;;  %v3140_v22 = vld [vmem:[%s10641_s21 + $0xcc8] sm:$0xff]  ;;  %v2862_v60 = vld [vmem:[%s10641_s21 + $0x418] sm:$0xff] }
 0x29e   : > { %6065 = vmatprep.subr.bf16.mxu0 %v8949_v30  ;;  %v2870_v30 = vld [vmem:[%s10641_s21 + $0x458] sm:$0xff]  ;;  %v9105_v50 = vcombine.high %v3132_v29, %v3140_v22  ;;  %v9104_v44 = vcombine.low %v3132_v29, %v3140_v22  ;;  %v3037_v29 = vld [vmem:[%s10641_s21 + $0x990] sm:$0xff] }
 0x29f   : > { %v8837_v39 = vcombine.high %v2862_v60, %v2870_v30  ;;  %v8836_v45 = vcombine.low %v2862_v60, %v2870_v30  ;;  %v3045_v22 = vld [vmem:[%s10641_s21 + $0x9d0] sm:$0xff]  ;;  %v2767_v60 = vld [vmem:[%s10641_s21 + $0x120] sm:$0xff] }
 0x2a0   : > { %5941 = vmatpush1.bf16.msra.mxu1 %v8960_v40  ;;  %v3116_v40 = vld [vmem:[%s10641_s21 + $0xc08] sm:$0xff]  ;;  %v2775_v30 = vld [vmem:[%s10641_s21 + $0x160] sm:$0xff] }
 0x2a1   : > { %6066 = vmatpush2.bf16.msra.mxu0 %v8948_v42  ;;  %5942 = vmatprep.subr.bf16.mxu1 %v9201_v9  ;;  %v3124_v42 = vld [vmem:[%s10641_s21 + $0xc48] sm:$0xff]  ;;  %v2847_v9 = vld [vmem:[%s10641_s21 + $0x3a0] sm:$0xff] }
 0x2a2   : > { %6067 = vmatprep.subr.bf16.mxu0 %v8933_v17  ;;  %v2855_v17 = vld [vmem:[%s10641_s21 + $0x3e0] sm:$0xff]  ;;  %v9089_v59 = vcombine.high %v3116_v40, %v3124_v42  ;;  %v9088_v4 = vcombine.low %v3116_v40, %v3124_v42  ;;  %v3021_v40 = vld [vmem:[%s10641_s21 + $0x910] sm:$0xff] }
 0x2a3   : > { %v8823_v46 = vcombine.high %v2847_v9, %v2855_v17  ;;  %v8822_v8 = vcombine.low %v2847_v9, %v2855_v17  ;;  %v3029_v42 = vld [vmem:[%s10641_s21 + $0x950] sm:$0xff]  ;;  %v2751_v9 = vld [vmem:[%s10641_s21 + $0xa0] sm:$0xff] }
 0x2a4   : > { %5943 = vmatpush2.bf16.msra.mxu1 %v9200_v38  ;;  %v3101_v38 = vld [vmem:[%s10641_s21 + $0xb90] sm:$0xff]  ;;  %v2759_v17 = vld [vmem:[%s10641_s21 + $0xe0] sm:$0xff] }
 0x2a5   : > { %6068 = vmatpush2.bf16.msra.mxu0 %v8932_v47  ;;  %5944 = vmatprep.subr.bf16.mxu1 %v9185_v48  ;;  %v3109_v47 = vld [vmem:[%s10641_s21 + $0xbd0] sm:$0xff]  ;;  %v2831_v48 = vld [vmem:[%s10641_s21 + $0x320] sm:$0xff] }
 0x2a6   : > { %6069 = vmatprep.subr.bf16.mxu0 %v8917_v34  ;;  %v2839_v34 = vld [vmem:[%s10641_s21 + $0x360] sm:$0xff]  ;;  %v9075_v14 = vcombine.high %v3101_v38, %v3109_v47  ;;  %v9074_v56 = vcombine.low %v3101_v38, %v3109_v47  ;;  %v3005_v38 = vld [vmem:[%s10641_s21 + $0x890] sm:$0xff] }
 0x2a7   : > { %v8807_v20 = vcombine.high %v2831_v48, %v2839_v34  ;;  %v8806_v57 = vcombine.low %v2831_v48, %v2839_v34  ;;  %v3013_v47 = vld [vmem:[%s10641_s21 + $0x8d0] sm:$0xff]  ;;  %v2735_v48 = vld [vmem:[%s10641_s21 + $0x20] sm:$0xff] }
 0x2a8   : > { %5945 = vmatpush2.bf16.msra.mxu1 %v9184_v16  ;;  %v3085_v16 = vld [vmem:[%s10641_s21 + $0xb10] sm:$0xff]  ;;  %v2743_v34 = vld [vmem:[%s10641_s21 + $0x60] sm:$0xff] }
 0x2a9   : > { %6070 = vmatpush2.bf16.msra.mxu0 %v8916_v21  ;;  %5946 = vmatprep.subr.bf16.mxu1 %v9169_v51  ;;  %v3093_v21 = vld [vmem:[%s10641_s21 + $0xb50] sm:$0xff]  ;;  %v2815_v51 = vld [vmem:[%s10641_s21 + $0x2a0] sm:$0xff] }
 0x2aa   : > { %6071 = vmatprep.subr.bf16.mxu0 %v8901_v52  ;;  %v2823_v52 = vld [vmem:[%s10641_s21 + $0x2e0] sm:$0xff]  ;;  %v9059_v58 = vcombine.high %v3085_v16, %v3093_v21  ;;  %v9058_v3 = vcombine.low %v3085_v16, %v3093_v21  ;;  %v2989_v16 = vld [vmem:[%s10641_s21 + $0x810] sm:$0xff] }
 0x2ab   : > { %v2997_v21 = vld [vmem:[%s10641_s21 + $0x850] sm:$0xff] }
 0x2ac   : > { %5947 = vmatpush2.bf16.msra.mxu1 %v9168_v55 }
 0x2ad   : > { %6072 = vmatpush2.bf16.msra.mxu0 %v8900_v31  ;;  %5948 = vmatprep.subr.bf16.mxu1 %v9153_v62  ;;  %v8791_v31 = vcombine.high %v2815_v51, %v2823_v52  ;;  %v3069_v62 = vld [vmem:[%s10641_s21 + $0xa90] sm:$0xff] }
 0x2ae   : > { %6073 = vmatprep.subr.bf16.mxu0 %v8885_v11  ;;  %v3077_v11 = vld [vmem:[%s10641_s21 + $0xad0] sm:$0xff] }
 0x2b0   : > { %5949 = vmatpush2.bf16.msra.mxu1 %v9152_v6  ;;  %v8790_v6 = vcombine.low %v2815_v51, %v2823_v52  ;;  %v2975_v51 = vld [vmem:[%s10641_s21 + $0x7a0] sm:$0xff] }
 0x2b1   : > { %6074 = vmatpush2.bf16.msra.mxu0 %v8884_v7  ;;  %5950 = vmatprep.subr.bf16.mxu1 %v9137_v15  ;;  %v9043_v7 = vcombine.high %v3069_v62, %v3077_v11  ;;  %v2983_v52 = vld [vmem:[%s10641_s21 + $0x7e0] sm:$0xff] }
 0x2b2   : > { %6075 = vmatprep.subr.bf16.mxu0 %v8869_v18  ;;  %v8775_v18 = vcombine.high %v2799_v63, %v2807_v1 }
 0x2b4   : > { %5951 = vmatpush2.bf16.msra.mxu1 %v9136_v27  ;;  %v9042_v27 = vcombine.low %v3069_v62, %v3077_v11  ;;  %v3229_v62 = vld [vmem:[%s10641_s21 + $0xf90] sm:$0xff] }
 0x2b5   : > { %6076 = vmatpush2.bf16.msra.mxu0 %v8868_v28  ;;  %5952 = vmatprep.subr.bf16.mxu1 %v9121_v43  ;;  %v8774_v28 = vcombine.low %v2799_v63, %v2807_v1  ;;  %v9027_v43 = vcombine.high %v3053_v19, %v3061_v23  ;;  %v3237_v11 = vld [vmem:[%s10641_s21 + $0xfd0] sm:$0xff]  ;;  %v2959_v63 = vld [vmem:[%s10641_s21 + $0x720] sm:$0xff] }
 0x2b6   : > { %6077 = vmatprep.subr.bf16.mxu0 %v8853_v10  ;;  %v8759_v10 = vcombine.high %v2783_v25, %v2791_v26  ;;  %v2967_v1 = vld [vmem:[%s10641_s21 + $0x760] sm:$0xff] }
 0x2b8   : > { %5953 = vmatpush2.bf16.msra.mxu1 %v9120_v32  ;;  %v9026_v32 = vcombine.low %v3053_v19, %v3061_v23  ;;  %v2943_v19 = vld [vmem:[%s10641_s21 + $0x6a0] sm:$0xff] }
 0x2b9   : > { %6078 = vmatpush2.bf16.msra.mxu0 %v8852_v13  ;;  %5954 = vmatprep.subr.bf16.mxu1 %v9105_v50  ;;  %v8758_v13 = vcombine.low %v2783_v25, %v2791_v26  ;;  %v9011_v50 = vcombine.high %v3037_v29, %v3045_v22  ;;  %v2951_v23 = vld [vmem:[%s10641_s21 + $0x6e0] sm:$0xff]  ;;  %v9202_v25 = vcombine.low %v3229_v62, %v3237_v11 }
 0x2ba   : > { %6079 = vmatprep.subr.bf16.mxu0 %v8837_v39  ;;  %v8743_v39 = vcombine.high %v2767_v60, %v2775_v30  ;;  %v8934_v26 = vcombine.low %v2959_v63, %v2967_v1 }
 0x2bc   : > { %5955 = vmatpush2.bf16.msra.mxu1 %v9104_v44  ;;  %v9010_v44 = vcombine.low %v3037_v29, %v3045_v22  ;;  %v2927_v29 = vld [vmem:[%s10641_s21 + $0x620] sm:$0xff] }
 0x2bd   : > { %6080 = vmatpush2.bf16.msra.mxu0 %v8836_v45  ;;  %5956 = vmatprep.subr.bf16.mxu1 %v9089_v59  ;;  %v8742_v45 = vcombine.low %v2767_v60, %v2775_v30  ;;  %v8995_v59 = vcombine.high %v3021_v40, %v3029_v42  ;;  %v2935_v22 = vld [vmem:[%s10641_s21 + $0x660] sm:$0xff]  ;;  %v8918_v30 = vcombine.low %v2943_v19, %v2951_v23 }
 0x2be   : > { %6131 = vmatprep.subr.bf16.mxu0 %v8823_v46  ;;  %v8727_v46 = vcombine.high %v2751_v9, %v2759_v17 }
 0x2c0   : > { %5957 = vmatpush2.bf16.msra.mxu1 %v9088_v4  ;;  %6082 = vmatmul.mubr.bf16.vlgmr.msra.gmra.mxu0 %v11130_v0  ;;  %v11325_v54 = vpop.f32.mrf.mxu0  ;;  %v8994_v4 = vcombine.low %v3021_v40, %v3029_v42  ;;  %v2911_v40 = vld [vmem:[%s10641_s21 + $0x5a0] sm:$0xff] }
 0x2c1   : > { %6132 = vmatpush1.bf16.msra.mxu0 %v8822_v8  ;;  %6163 = vmatprep.mubr.bf16.mxu0 %v11126_v61  ;;  %v8726_v8 = vcombine.low %v2751_v9, %v2759_v17  ;;  %v2919_v42 = vld [vmem:[%s10641_s21 + $0x5e0] sm:$0xff]  ;;  %v8902_v17 = vcombine.low %v2927_v29, %v2935_v22 }
 0x2c2   : > { %6008 = vmatprep.subr.bf16.mxu1 %v9075_v14  ;;  %v11328_v55 = vpop.f32.mrf.mxu0  ;;  %6133 = vmatprep.subr.bf16.mxu0 %v8807_v20  ;;  %v8979_v14 = vcombine.high %v3005_v38, %v3013_v47  ;;  %v8711_v20 = vcombine.high %v2735_v48, %v2743_v34 }
 0x2c3   : > { %5959 = vmatmul.mubr.bf16.vlgmr.msra.gmra.mxu1 %v11251_v36 }
 0x2c4   : > { %6009 = vmatpush1.bf16.msra.mxu1 %v9074_v56  ;;  %6040 = vmatprep.mubr.bf16.mxu1 %v11246_v41  ;;  %v5841_v2 = vpop.f32.mrf.mxu0  ;;  %v8978_v56 = vcombine.low %v3005_v38, %v3013_v47  ;;  %v2895_v38 = vld [vmem:[%s10641_s21 + $0x520] sm:$0xff] }
 0x2c5   : > { %6134 = vmatpush1.bf16.msra.mxu0 %v8806_v57  ;;  %6010 = vmatprep.subr.bf16.mxu1 %v9059_v58  ;;  %v8710_v57 = vcombine.low %v2735_v48, %v2743_v34  ;;  %v8963_v58 = vcombine.high %v2989_v16, %v2997_v21  ;;  %v8962_v2 = vcombine.low %v2989_v16, %v2997_v21  ;;  %v2903_v47 = vld [vmem:[%s10641_s21 + $0x560] sm:$0xff] }
 0x2c6   : > { %v5842_v15 = vpop.f32.mrf.mxu0  ;;  %6135 = vmatprep.subr.bf16.mxu0 %v8791_v31  ;;  %v8951_v31 = vcombine.high %v2975_v51, %v2983_v52  ;;  %v8886_v34 = vcombine.low %v2911_v40, %v2919_v42  ;;  %v2879_v16 = vld [vmem:[%s10641_s21 + $0x4a0] sm:$0xff] }
 0x2c7   : > { %v3213_v15 = vld [vmem:[%s10641_s21 + $0xf10] sm:$0xff]  ;;  %v2887_v21 = vld [vmem:[%s10641_s21 + $0x4e0] sm:$0xff] }
 0x2c8   : > { %6011 = vmatpush1.bf16.msra.mxu1 %v9058_v3  ;;  %v8950_v3 = vcombine.low %v2975_v51, %v2983_v52  ;;  %v8870_v52 = vcombine.low %v2895_v38, %v2903_v47 }
 0x2c9   : > { %6136 = vmatpush1.bf16.msra.mxu0 %v8790_v6  ;;  %6012 = vmatprep.subr.bf16.mxu1 %v9043_v7  ;;  %v9203_v6 = vcombine.high %v3229_v62, %v3237_v11  ;;  %v8935_v7 = vcombine.high %v2959_v63, %v2967_v1  ;;  %v2863_v62 = vld [vmem:[%s10641_s21 + $0x420] sm:$0xff]  ;;  %v8854_v1 = vcombine.low %v2879_v16, %v2887_v21 }
 0x2ca   : > { %6137 = vmatprep.subr.bf16.mxu0 %v8775_v18  ;;  %v3221_v18 = vld [vmem:[%s10641_s21 + $0xf50] sm:$0xff]  ;;  %v2871_v11 = vld [vmem:[%s10641_s21 + $0x460] sm:$0xff] }
 0x2cb   : > { %v9186_v60 = vcombine.low %v3213_v15, %v3221_v18 }
 0x2cc   : > { %6013 = vmatpush1.bf16.msra.mxu1 %v9042_v27  ;;  %v9187_v27 = vcombine.high %v3213_v15, %v3221_v18  ;;  %v2848_v15 = vld [vmem:[%s10641_s21 + $0x3a8] sm:$0xff] }
 0x2cd   : > { %6138 = vmatpush1.bf16.msra.mxu0 %v8774_v28  ;;  %6014 = vmatprep.subr.bf16.mxu1 %v9027_v43  ;;  %v8919_v28 = vcombine.high %v2943_v19, %v2951_v23  ;;  %v3197_v43 = vld [vmem:[%s10641_s21 + $0xe90] sm:$0xff]  ;;  %v2856_v18 = vld [vmem:[%s10641_s21 + $0x3e8] sm:$0xff]  ;;  %v8838_v23 = vcombine.low %v2863_v62, %v2871_v11 }
 0x2ce   : > { %6139 = vmatprep.subr.bf16.mxu0 %v8759_v10  ;;  %v3205_v10 = vld [vmem:[%s10641_s21 + $0xed0] sm:$0xff] }
 0x2cf   : > { %v9170_v9 = vcombine.low %v3197_v43, %v3205_v10 }
 0x2d0   : > { %6015 = vmatpush1.bf16.msra.mxu1 %v9026_v32  ;;  %v9171_v32 = vcombine.high %v3197_v43, %v3205_v10  ;;  %v2832_v43 = vld [vmem:[%s10641_s21 + $0x328] sm:$0xff] }
 0x2d1   : > { %6140 = vmatpush1.bf16.msra.mxu0 %v8758_v13  ;;  %6016 = vmatprep.subr.bf16.mxu1 %v9011_v50  ;;  %v8903_v13 = vcombine.high %v2927_v29, %v2935_v22  ;;  %v3181_v50 = vld [vmem:[%s10641_s21 + $0xe10] sm:$0xff]  ;;  %v2840_v10 = vld [vmem:[%s10641_s21 + $0x368] sm:$0xff]  ;;  %v8824_v22 = vcombine.low %v2848_v15, %v2856_v18 }
 0x2d2   : > { %6141 = vmatprep.subr.bf16.mxu0 %v8743_v39  ;;  %v3189_v39 = vld [vmem:[%s10641_s21 + $0xe50] sm:$0xff] }
 0x2d3   : > { %v9154_v48 = vcombine.low %v3181_v50, %v3189_v39 }
 0x2d4   : > { %6017 = vmatpush1.bf16.msra.mxu1 %v9010_v44  ;;  %v9155_v44 = vcombine.high %v3181_v50, %v3189_v39  ;;  %v2816_v50 = vld [vmem:[%s10641_s21 + $0x2a8] sm:$0xff] }
 0x2d5   : > { %6142 = vmatpush1.bf16.msra.mxu0 %v8742_v45  ;;  %6018 = vmatprep.subr.bf16.mxu1 %v8995_v59  ;;  %v8887_v45 = vcombine.high %v2911_v40, %v2919_v42  ;;  %v3165_v59 = vld [vmem:[%s10641_s21 + $0xd90] sm:$0xff]  ;;  %v2824_v39 = vld [vmem:[%s10641_s21 + $0x2e8] sm:$0xff] }
 0x2d6   : > { %6143 = vmatprep.subr.bf16.mxu0 %v8727_v46  ;;  %v3173_v46 = vld [vmem:[%s10641_s21 + $0xdd0] sm:$0xff] }
 0x2d7   : > { %v9138_v51 = vcombine.low %v3165_v59, %v3173_v46 }
 0x2d8   : > { %6019 = vmatpush1.bf16.msra.mxu1 %v8994_v4  ;;  %v9139_v4 = vcombine.high %v3165_v59, %v3173_v46  ;;  %v3070_v59 = vld [vmem:[%s10641_s21 + $0xa98] sm:$0xff] }
 0x2d9   : > { %6144 = vmatpush1.bf16.msra.mxu0 %v8726_v8  ;;  %6020 = vmatprep.subr.bf16.mxu1 %v8979_v14  ;;  %v8871_v8 = vcombine.high %v2895_v38, %v2903_v47  ;;  %v3149_v14 = vld [vmem:[%s10641_s21 + $0xd10] sm:$0xff]  ;;  %v3078_v46 = vld [vmem:[%s10641_s21 + $0xad8] sm:$0xff]  ;;  %v2800_v38 = vld [vmem:[%s10641_s21 + $0x228] sm:$0xff] }
 0x2da   : > { %6145 = vmatprep.subr.bf16.mxu0 %v8711_v20  ;;  %v3157_v20 = vld [vmem:[%s10641_s21 + $0xd50] sm:$0xff]  ;;  %v2808_v47 = vld [vmem:[%s10641_s21 + $0x268] sm:$0xff] }
 0x2db   : > { %v9122_v63 = vcombine.low %v3149_v14, %v3157_v20 }
 0x2dc   : > { %6021 = vmatpush1.bf16.msra.mxu1 %v8978_v56  ;;  %v9123_v56 = vcombine.high %v3149_v14, %v3157_v20  ;;  %v8777_v20 = vcombine.high %v2800_v38, %v2808_v47 }
 0x2dd   : > { %6146 = vmatpush1.bf16.msra.mxu0 %v8710_v57  ;;  %6022 = vmatprep.subr.bf16.mxu1 %v8963_v58  ;;  %v8855_v57 = vcombine.high %v2879_v16, %v2887_v21  ;;  %v3133_v58 = vld [vmem:[%s10641_s21 + $0xc90] sm:$0xff]  ;;  %v3054_v16 = vld [vmem:[%s10641_s21 + $0xa18] sm:$0xff] }
 0x2de   : > { %6147 = vmatprep.subr.bf16.mxu0 %v8951_v31  ;;  %v3141_v31 = vld [vmem:[%s10641_s21 + $0xcd0] sm:$0xff]  ;;  %v3062_v21 = vld [vmem:[%s10641_s21 + $0xa58] sm:$0xff] }
 0x2df   : > { %v9106_v19 = vcombine.low %v3133_v58, %v3141_v31 }
 0x2e0   : > { %6023 = vmatpush1.bf16.msra.mxu1 %v8962_v2  ;;  %v9107_v2 = vcombine.high %v3133_v58, %v3141_v31  ;;  %v9029_v58 = vcombine.high %v3054_v16, %v3062_v21 }
 0x2e1   : > { %6148 = vmatpush2.bf16.msra.mxu0 %v8950_v3  ;;  %6024 = vmatprep.subr.bf16.mxu1 %v9203_v6  ;;  %v8839_v3 = vcombine.high %v2863_v62, %v2871_v11  ;;  %v3117_v6 = vld [vmem:[%s10641_s21 + $0xc10] sm:$0xff]  ;;  %v3038_v62 = vld [vmem:[%s10641_s21 + $0x998] sm:$0xff] }
 0x2e2   : > { %6149 = vmatprep.subr.bf16.mxu0 %v8935_v7  ;;  %v3125_v7 = vld [vmem:[%s10641_s21 + $0xc50] sm:$0xff]  ;;  %v3046_v11 = vld [vmem:[%s10641_s21 + $0x9d8] sm:$0xff] }
 0x2e3   : > { %v9090_v29 = vcombine.low %v3117_v6, %v3125_v7 }
 0x2e4   : > { %6025 = vmatpush2.bf16.msra.mxu1 %v9202_v25  ;;  %v9091_v25 = vcombine.high %v3117_v6, %v3125_v7  ;;  %v9013_v6 = vcombine.high %v3038_v62, %v3046_v11 }
 0x2e5   : > { %6150 = vmatpush2.bf16.msra.mxu0 %v8934_v26  ;;  %6026 = vmatprep.subr.bf16.mxu1 %v9187_v27  ;;  %v8825_v26 = vcombine.high %v2848_v15, %v2856_v18  ;;  %v3102_v27 = vld [vmem:[%s10641_s21 + $0xb98] sm:$0xff] }
 0x2e6   : > { %6151 = vmatprep.subr.bf16.mxu0 %v8919_v28  ;;  %v3110_v28 = vld [vmem:[%s10641_s21 + $0xbd8] sm:$0xff] }
 0x2e7   : > { %v9076_v42 = vcombine.low %v3102_v27, %v3110_v28  ;;  %v3022_v15 = vld [vmem:[%s10641_s21 + $0x918] sm:$0xff] }
 0x2e8   : > { %6027 = vmatpush2.bf16.msra.mxu1 %v9186_v60  ;;  %v9077_v60 = vcombine.high %v3102_v27, %v3110_v28  ;;  %v3030_v18 = vld [vmem:[%s10641_s21 + $0x958] sm:$0xff] }
 0x2e9   : > { %6152 = vmatpush2.bf16.msra.mxu0 %v8918_v30  ;;  %6028 = vmatprep.subr.bf16.mxu1 %v9171_v32  ;;  %v8809_v30 = vcombine.high %v2832_v43, %v2840_v10  ;;  %v3086_v32 = vld [vmem:[%s10641_s21 + $0xb18] sm:$0xff]  ;;  %v8997_v27 = vcombine.high %v3022_v15, %v3030_v18 }
 0x2ea   : > { %6153 = vmatprep.subr.bf16.mxu0 %v8903_v13  ;;  %v3094_v13 = vld [vmem:[%s10641_s21 + $0xb58] sm:$0xff] }
 0x2ec   : > { %6029 = vmatpush2.bf16.msra.mxu1 %v9170_v9  ;;  %v8808_v9 = vcombine.low %v2832_v43, %v2840_v10  ;;  %v3006_v43 = vld [vmem:[%s10641_s21 + $0x898] sm:$0xff] }
 0x2ed   : > { %6154 = vmatpush2.bf16.msra.mxu0 %v8902_v17  ;;  %6030 = vmatprep.subr.bf16.mxu1 %v9155_v44  ;;  %v9061_v17 = vcombine.high %v3086_v32, %v3094_v13  ;;  %v3014_v10 = vld [vmem:[%s10641_s21 + $0x8d8] sm:$0xff] }
 0x2ee   : > { %6155 = vmatprep.subr.bf16.mxu0 %v8887_v45  ;;  %v8793_v45 = vcombine.high %v2816_v50, %v2824_v39 }
 0x2f0   : > { %6031 = vmatpush2.bf16.msra.mxu1 %v9154_v48 }
 0x2f1   : > { %6156 = vmatpush2.bf16.msra.mxu0 %v8886_v34  ;;  %6032 = vmatprep.subr.bf16.mxu1 %v9139_v4  ;;  %v9060_v34 = vcombine.low %v3086_v32, %v3094_v13  ;;  %v8792_v4 = vcombine.low %v2816_v50, %v2824_v39  ;;  %v8981_v32 = vcombine.high %v3006_v43, %v3014_v10  ;;  %v2990_v50 = vld [vmem:[%s10641_s21 + $0x818] sm:$0xff] }
 0x2f2   : > { %6157 = vmatprep.subr.bf16.mxu0 %v8871_v8  ;;  %v9045_v8 = vcombine.high %v3070_v59, %v3078_v46  ;;  %v2998_v39 = vld [vmem:[%s10641_s21 + $0x858] sm:$0xff] }
 0x2f4   : > { %6033 = vmatpush2.bf16.msra.mxu1 %v9138_v51  ;;  %v2784_v51 = vld [vmem:[%s10641_s21 + $0x1a8] sm:$0xff] }
 0x2f5   : > { %6158 = vmatpush2.bf16.msra.mxu0 %v8870_v52  ;;  %6034 = vmatprep.subr.bf16.mxu1 %v9123_v56  ;;  %v2792_v52 = vld [vmem:[%s10641_s21 + $0x1e8] sm:$0xff]  ;;  %v9044_v56 = vcombine.low %v3070_v59, %v3078_v46  ;;  %v8965_v59 = vcombine.high %v2990_v50, %v2998_v39 }
 0x2f6   : > { %6159 = vmatprep.subr.bf16.mxu0 %v8855_v57  ;;  %v8776_v57 = vcombine.low %v2800_v38, %v2808_v47  ;;  %v8761_v31 = vcombine.high %v2784_v51, %v2792_v52  ;;  %v3230_v38 = vld [vmem:[%s10641_s21 + $0xf98] sm:$0xff] }
 0x2f7   : > { %v3238_v47 = vld [vmem:[%s10641_s21 + $0xfd8] sm:$0xff] }
 0x2f8   : > { %6035 = vmatpush2.bf16.msra.mxu1 %v9122_v63  ;;  %v2768_v63 = vld [vmem:[%s10641_s21 + $0x128] sm:$0xff] }
 0x2f9   : > { %6160 = vmatpush2.bf16.msra.mxu0 %v8854_v1  ;;  %6036 = vmatprep.subr.bf16.mxu1 %v9107_v2  ;;  %v2776_v1 = vld [vmem:[%s10641_s21 + $0x168] sm:$0xff]  ;;  %v9028_v2 = vcombine.low %v3054_v16, %v3062_v21  ;;  %v3214_v16 = vld [vmem:[%s10641_s21 + $0xf18] sm:$0xff] }
 0x2fa   : > { %6161 = vmatprep.subr.bf16.mxu0 %v8839_v3  ;;  %v8760_v3 = vcombine.low %v2784_v51, %v2792_v52  ;;  %v8745_v7 = vcombine.high %v2768_v63, %v2776_v1  ;;  %v3222_v21 = vld [vmem:[%s10641_s21 + $0xf58] sm:$0xff]  ;;  %v2944_v51 = vld [vmem:[%s10641_s21 + $0x6a8] sm:$0xff] }
 0x2fb   : > { %v2952_v52 = vld [vmem:[%s10641_s21 + $0x6e8] sm:$0xff] }
 0x2fc   : > { %6037 = vmatpush2.bf16.msra.mxu1 %v9106_v19  ;;  %v2752_v19 = vld [vmem:[%s10641_s21 + $0xa8] sm:$0xff] }
 0x2fd   : > { %6162 = vmatpush2.bf16.msra.mxu0 %v8838_v23  ;;  %6038 = vmatprep.subr.bf16.mxu1 %v9091_v25  ;;  %v2760_v23 = vld [vmem:[%s10641_s21 + $0xe8] sm:$0xff]  ;;  %v9012_v25 = vcombine.low %v3038_v62, %v3046_v11  ;;  %v3198_v62 = vld [vmem:[%s10641_s21 + $0xe98] sm:$0xff] }
 0x2fe   : > { %6213 = vmatprep.subr.bf16.mxu0 %v8825_v26  ;;  %v8744_v26 = vcombine.low %v2768_v63, %v2776_v1  ;;  %v8729_v28 = vcombine.high %v2752_v19, %v2760_v23  ;;  %v3206_v11 = vld [vmem:[%s10641_s21 + $0xed8] sm:$0xff]  ;;  %v2928_v63 = vld [vmem:[%s10641_s21 + $0x628] sm:$0xff] }
 0x2ff   : > { %v2936_v1 = vld [vmem:[%s10641_s21 + $0x668] sm:$0xff] }
 0x300   : > { %6039 = vmatpush2.bf16.msra.mxu1 %v9090_v29  ;;  %v11396_v40 = vpop.f32.mrf.mxu0  ;;  %6164 = vmatmul.mubr.bf16.vlgmr.msra.gmra.mxu0 %v11130_v0  ;;  %v2736_v29 = vld [vmem:[%s10641_s21 + $0x28] sm:$0xff] }
 0x301   : > { %6214 = vmatpush1.bf16.msra.mxu0 %v8824_v22  ;;  %6245 = vmatprep.mubr.bf16.mxu0 %v11126_v61  ;;  %v2744_v22 = vld [vmem:[%s10641_s21 + $0x68] sm:$0xff] }
 0x302   : > { %v11400_v44 = vpop.f32.mrf.mxu0  ;;  %6090 = vmatprep.subr.bf16.mxu1 %v9077_v60  ;;  %6215 = vmatprep.subr.bf16.mxu0 %v8809_v30  ;;  %v8996_v60 = vcombine.low %v3022_v15, %v3030_v18  ;;  %v8728_v30 = vcombine.low %v2752_v19, %v2760_v23  ;;  %v8713_v13 = vcombine.high %v2736_v29, %v2744_v22  ;;  %v3182_v15 = vld [vmem:[%s10641_s21 + $0xe18] sm:$0xff]  ;;  %v2912_v19 = vld [vmem:[%s10641_s21 + $0x5a8] sm:$0xff] }
 0x303   : > { %6041 = vmatmul.mubr.bf16.vlgmr.msra.gmra.mxu1 %v11251_v36  ;;  %v3190_v18 = vld [vmem:[%s10641_s21 + $0xe58] sm:$0xff]  ;;  %v2920_v23 = vld [vmem:[%s10641_s21 + $0x5e8] sm:$0xff] }
 0x304   : > { %6091 = vmatpush1.bf16.msra.mxu1 %v9076_v42  ;;  %6122 = vmatprep.mubr.bf16.mxu1 %v11246_v41  ;;  %v5923_v48 = vpop.f32.mrf.mxu0  ;;  %v2976_v42 = vld [vmem:[%s10641_s21 + $0x7a8] sm:$0xff] }
 0x305   : > { %6216 = vmatpush1.bf16.msra.mxu0 %v8808_v9  ;;  %6092 = vmatprep.subr.bf16.mxu1 %v9061_v17  ;;  %v2984_v9 = vld [vmem:[%s10641_s21 + $0x7e8] sm:$0xff]  ;;  %v8980_v17 = vcombine.low %v3006_v43, %v3014_v10  ;;  %v3166_v43 = vld [vmem:[%s10641_s21 + $0xd98] sm:$0xff] }
 0x306   : > { %v5924_v14 = vpop.f32.mrf.mxu0  ;;  %6217 = vmatprep.subr.bf16.mxu0 %v8793_v45  ;;  %v8712_v45 = vcombine.low %v2736_v29, %v2744_v22  ;;  %v8953_v46 = vcombine.high %v2976_v42, %v2984_v9  ;;  %v2960_v48 = vld [vmem:[%s10641_s21 + $0x728] sm:$0xff]  ;;  %v3174_v10 = vld [vmem:[%s10641_s21 + $0xdd8] sm:$0xff] }
 0x307   : > { %v9205_v14 = vcombine.high %v3230_v38, %v3238_v47  ;;  %v2896_v29 = vld [vmem:[%s10641_s21 + $0x528] sm:$0xff] }
 0x308   : > { %6093 = vmatpush1.bf16.msra.mxu1 %v9060_v34  ;;  %v2968_v34 = vld [vmem:[%s10641_s21 + $0x768] sm:$0xff] }
 0x309   : > { %6218 = vmatpush1.bf16.msra.mxu0 %v8792_v4  ;;  %6094 = vmatprep.subr.bf16.mxu1 %v9045_v8  ;;  %v8964_v4 = vcombine.low %v2990_v50, %v2998_v39  ;;  %v8952_v8 = vcombine.low %v2976_v42, %v2984_v9  ;;  %v2904_v22 = vld [vmem:[%s10641_s21 + $0x568] sm:$0xff]  ;;  %v3150_v50 = vld [vmem:[%s10641_s21 + $0xd18] sm:$0xff] }
 0x30a   : > { %6219 = vmatprep.subr.bf16.mxu0 %v8777_v20  ;;  %v8937_v20 = vcombine.high %v2960_v48, %v2968_v34  ;;  %v3158_v39 = vld [vmem:[%s10641_s21 + $0xd58] sm:$0xff]  ;;  %v2880_v42 = vld [vmem:[%s10641_s21 + $0x4a8] sm:$0xff] }
 0x30b   : > { %v2888_v9 = vld [vmem:[%s10641_s21 + $0x4e8] sm:$0xff] }
 0x30c   : > { %6095 = vmatpush1.bf16.msra.mxu1 %v9044_v56  ;;  %v9204_v56 = vcombine.low %v3230_v38, %v3238_v47  ;;  %v3134_v38 = vld [vmem:[%s10641_s21 + $0xc98] sm:$0xff] }
 0x30d   : > { %6220 = vmatpush1.bf16.msra.mxu0 %v8776_v57  ;;  %6096 = vmatprep.subr.bf16.mxu1 %v9029_v58  ;;  %v8936_v57 = vcombine.low %v2960_v48, %v2968_v34  ;;  %v9189_v58 = vcombine.high %v3214_v16, %v3222_v21  ;;  %v3142_v47 = vld [vmem:[%s10641_s21 + $0xcd8] sm:$0xff]  ;;  %v2864_v48 = vld [vmem:[%s10641_s21 + $0x428] sm:$0xff] }
 0x30e   : > { %6221 = vmatprep.subr.bf16.mxu0 %v8761_v31  ;;  %v8921_v31 = vcombine.high %v2944_v51, %v2952_v52  ;;  %v2872_v34 = vld [vmem:[%s10641_s21 + $0x468] sm:$0xff] }
 0x310   : > { %6097 = vmatpush1.bf16.msra.mxu1 %v9028_v2  ;;  %v9188_v2 = vcombine.low %v3214_v16, %v3222_v21  ;;  %v3118_v16 = vld [vmem:[%s10641_s21 + $0xc18] sm:$0xff] }
 0x311   : > { %6222 = vmatpush1.bf16.msra.mxu0 %v8760_v3  ;;  %6098 = vmatprep.subr.bf16.mxu1 %v9013_v6  ;;  %v8920_v3 = vcombine.low %v2944_v51, %v2952_v52  ;;  %v9173_v6 = vcombine.high %v3198_v62, %v3206_v11  ;;  %v3126_v21 = vld [vmem:[%s10641_s21 + $0xc58] sm:$0xff]  ;;  %v2849_v51 = vld [vmem:[%s10641_s21 + $0x3b0] sm:$0xff] }
 0x312   : > { %6223 = vmatprep.subr.bf16.mxu0 %v8745_v7  ;;  %v8905_v7 = vcombine.high %v2928_v63, %v2936_v1  ;;  %v2857_v52 = vld [vmem:[%s10641_s21 + $0x3f0] sm:$0xff] }
 0x314   : > { %6099 = vmatpush1.bf16.msra.mxu1 %v9012_v25  ;;  %v9172_v25 = vcombine.low %v3198_v62, %v3206_v11  ;;  %v3103_v62 = vld [vmem:[%s10641_s21 + $0xba0] sm:$0xff] }
 0x315   : > { %6224 = vmatpush1.bf16.msra.mxu0 %v8744_v26  ;;  %6100 = vmatprep.subr.bf16.mxu1 %v8997_v27  ;;  %v8904_v26 = vcombine.low %v2928_v63, %v2936_v1  ;;  %v9157_v27 = vcombine.high %v3182_v15, %v3190_v18  ;;  %v3111_v11 = vld [vmem:[%s10641_s21 + $0xbe0] sm:$0xff]  ;;  %v2833_v63 = vld [vmem:[%s10641_s21 + $0x330] sm:$0xff] }
 0x316   : > { %6225 = vmatprep.subr.bf16.mxu0 %v8729_v28  ;;  %v8889_v28 = vcombine.high %v2912_v19, %v2920_v23  ;;  %v2841_v1 = vld [vmem:[%s10641_s21 + $0x370] sm:$0xff] }
 0x318   : > { %6101 = vmatpush1.bf16.msra.mxu1 %v8996_v60  ;;  %v9156_v60 = vcombine.low %v3182_v15, %v3190_v18  ;;  %v3087_v15 = vld [vmem:[%s10641_s21 + $0xb20] sm:$0xff] }
 0x319   : > { %6226 = vmatpush1.bf16.msra.mxu0 %v8728_v30  ;;  %6102 = vmatprep.subr.bf16.mxu1 %v8981_v32  ;;  %v8888_v30 = vcombine.low %v2912_v19, %v2920_v23  ;;  %v9141_v32 = vcombine.high %v3166_v43, %v3174_v10  ;;  %v3095_v18 = vld [vmem:[%s10641_s21 + $0xb60] sm:$0xff]  ;;  %v2817_v19 = vld [vmem:[%s10641_s21 + $0x2b0] sm:$0xff] }
 0x31a   : > { %6227 = vmatprep.subr.bf16.mxu0 %v8713_v13  ;;  %v8873_v13 = vcombine.high %v2896_v29, %v2904_v22  ;;  %v2825_v23 = vld [vmem:[%s10641_s21 + $0x2f0] sm:$0xff] }
 0x31c   : > { %6103 = vmatpush1.bf16.msra.mxu1 %v8980_v17  ;;  %v9140_v17 = vcombine.low %v3166_v43, %v3174_v10  ;;  %v8795_v10 = vcombine.high %v2817_v19, %v2825_v23 }
 0x31d   : > { %6228 = vmatpush1.bf16.msra.mxu0 %v8712_v45  ;;  %6104 = vmatprep.subr.bf16.mxu1 %v8965_v59  ;;  %v8872_v45 = vcombine.low %v2896_v29, %v2904_v22  ;;  %v9125_v59 = vcombine.high %v3150_v50, %v3158_v39  ;;  %v3071_v29 = vld [vmem:[%s10641_s21 + $0xaa0] sm:$0xff] }
 0x31e   : > { %6229 = vmatprep.subr.bf16.mxu0 %v8953_v46  ;;  %v8857_v46 = vcombine.high %v2880_v42, %v2888_v9  ;;  %v3079_v22 = vld [vmem:[%s10641_s21 + $0xae0] sm:$0xff] }
 0x320   : > { %6105 = vmatpush1.bf16.msra.mxu1 %v8964_v4  ;;  %v9124_v4 = vcombine.low %v3150_v50, %v3158_v39 }
 0x321   : > { %6230 = vmatpush2.bf16.msra.mxu0 %v8952_v8  ;;  %6106 = vmatprep.subr.bf16.mxu1 %v9205_v14  ;;  %v8856_v8 = vcombine.low %v2880_v42, %v2888_v9  ;;  %v9109_v14 = vcombine.high %v3134_v38, %v3142_v47  ;;  %v9062_v42 = vcombine.low %v3087_v15, %v3095_v18  ;;  %v2712_v9 = vld [vmem:[#allocation2] sm:$0xff] }
 0x322   : > { %6231 = vmatprep.subr.bf16.mxu0 %v8937_v20  ;;  %v8841_v20 = vcombine.high %v2864_v48, %v2872_v34 }
 0x324   : > { %6107 = vmatpush2.bf16.msra.mxu1 %v9204_v56  ;;  %v9108_v56 = vcombine.low %v3134_v38, %v3142_v47 }
 0x325   : > { %6232 = vmatpush2.bf16.msra.mxu0 %v8936_v57  ;;  %6108 = vmatprep.subr.bf16.mxu1 %v9189_v58  ;;  %v8840_v57 = vcombine.low %v2864_v48, %v2872_v34  ;;  %v9093_v58 = vcombine.high %v3118_v16, %v3126_v21  ;;  %v3055_v48 = vld [vmem:[%s10641_s21 + $0xa20] sm:$0xff] }
 0x326   : > { %6233 = vmatprep.subr.bf16.mxu0 %v8921_v31  ;;  %v8827_v31 = vcombine.high %v2849_v51, %v2857_v52  ;;  %v3063_v34 = vld [vmem:[%s10641_s21 + $0xa60] sm:$0xff] }
 0x328   : > { %6109 = vmatpush2.bf16.msra.mxu1 %v9188_v2  ;;  %v9092_v2 = vcombine.low %v3118_v16, %v3126_v21  ;;  %v9046_v16 = vcombine.low %v3071_v29, %v3079_v22 }
 0x329   : > { %6234 = vmatpush2.bf16.msra.mxu0 %v8920_v3  ;;  %6110 = vmatprep.subr.bf16.mxu1 %v9173_v6  ;;  %v8826_v3 = vcombine.low %v2849_v51, %v2857_v52  ;;  %v9079_v6 = vcombine.high %v3103_v62, %v3111_v11  ;;  %v9031_v51 = vcombine.high %v3055_v48, %v3063_v34 }
 0x32a   : > { %6235 = vmatprep.subr.bf16.mxu0 %v8905_v7  ;;  %v8811_v7 = vcombine.high %v2833_v63, %v2841_v1 }
 0x32c   : > { %6111 = vmatpush2.bf16.msra.mxu1 %v9172_v25 }
 0x32d   : > { %6236 = vmatpush2.bf16.msra.mxu0 %v8904_v26  ;;  %6112 = vmatprep.subr.bf16.mxu1 %v9157_v27  ;;  %v9078_v26 = vcombine.low %v3103_v62, %v3111_v11  ;;  %v8810_v27 = vcombine.low %v2833_v63, %v2841_v1  ;;  %v9030_v62 = vcombine.low %v3055_v48, %v3063_v34 }
 0x32e   : > { %6237 = vmatprep.subr.bf16.mxu0 %v8889_v28  ;;  %v9063_v28 = vcombine.high %v3087_v15, %v3095_v18 }
 0x330   : > { %6113 = vmatpush2.bf16.msra.mxu1 %v9156_v60  ;;  %v2711_v60 = vld [vmem:[#allocation2 + $0x30] sm:$0xff] }
 0x331   : > { %6238 = vmatpush2.bf16.msra.mxu0 %v8888_v30  ;;  %6114 = vmatprep.subr.bf16.mxu1 %v9141_v32  ;;  %v2801_v32 = vld [vmem:[%s10641_s21 + $0x230] sm:$0xff] }
 0x332   : > { %6239 = vmatprep.subr.bf16.mxu0 %v8873_v13  ;;  %v2809_v13 = vld [vmem:[%s10641_s21 + $0x270] sm:$0xff] }
 0x334   : > { %6115 = vmatpush2.bf16.msra.mxu1 %v9140_v17 }
 0x335   : > { %6240 = vmatpush2.bf16.msra.mxu0 %v8872_v45  ;;  %6116 = vmatprep.subr.bf16.mxu1 %v9125_v59  ;;  %v8794_v45 = vcombine.low %v2817_v19, %v2825_v23  ;;  %v9047_v59 = vcombine.high %v3071_v29, %v3079_v22 }
 0x336   : > { %6241 = vmatprep.subr.bf16.mxu0 %v8857_v46 }
 0x338   : > { %6117 = vmatpush2.bf16.msra.mxu1 %v9124_v4 }
 0x339   : > { %6242 = vmatpush2.bf16.msra.mxu0 %v8856_v8  ;;  %6118 = vmatprep.subr.bf16.mxu1 %v9109_v14  ;;  %v2785_v8 = vld [vmem:[%s10641_s21 + $0x1b0] sm:$0xff] }
 0x33a   : > { %6243 = vmatprep.subr.bf16.mxu0 %v8841_v20  ;;  %v2793_v14 = vld [vmem:[%s10641_s21 + $0x1f0] sm:$0xff] }
 0x33b   : > { %v8763_v52 = vcombine.high %v2785_v8, %v2793_v14  ;;  %v8762_v11 = vcombine.low %v2785_v8, %v2793_v14  ;;  %v3215_v8 = vld [vmem:[%s10641_s21 + $0xf20] sm:$0xff] }
 0x33c   : > { %6119 = vmatpush2.bf16.msra.mxu1 %v9108_v56  ;;  %v3039_v56 = vld [vmem:[%s10641_s21 + $0x9a0] sm:$0xff] }
 0x33d   : > { %6244 = vmatpush2.bf16.msra.mxu0 %v8840_v57  ;;  %6120 = vmatprep.subr.bf16.mxu1 %v9093_v58  ;;  %v3047_v57 = vld [vmem:[%s10641_s21 + $0x9e0] sm:$0xff]  ;;  %v2769_v58 = vld [vmem:[%s10641_s21 + $0x130] sm:$0xff] }
 0x33e   : > { %6295 = vmatprep.subr.bf16.mxu0 %v8827_v31  ;;  %v2777_v31 = vld [vmem:[%s10641_s21 + $0x170] sm:$0xff]  ;;  %v9015_v63 = vcombine.high %v3039_v56, %v3047_v57  ;;  %v9014_v15 = vcombine.low %v3039_v56, %v3047_v57  ;;  %v3223_v14 = vld [vmem:[%s10641_s21 + $0xf60] sm:$0xff] }
 0x33f   : > { %v8747_v1 = vcombine.high %v2769_v58, %v2777_v31  ;;  %v8746_v18 = vcombine.low %v2769_v58, %v2777_v31  ;;  %v3199_v56 = vld [vmem:[%s10641_s21 + $0xea0] sm:$0xff]  ;;  %v2929_v58 = vld [vmem:[%s10641_s21 + $0x630] sm:$0xff] }
 0x340   : > { %6121 = vmatpush2.bf16.msra.mxu1 %v9092_v2  ;;  %v11468_v25 = vpop.f32.mrf.mxu0  ;;  %6246 = vmatmul.mubr.bf16.vlgmr.msra.gmra.mxu0 %v11130_v0  ;;  %v3023_v2 = vld [vmem:[%s10641_s21 + $0x920] sm:$0xff]  ;;  %v2937_v31 = vld [vmem:[%s10641_s21 + $0x670] sm:$0xff] }
 0x341   : > { %6296 = vmatpush1.bf16.msra.mxu0 %v8826_v3  ;;  %6327 = vmatprep.mubr.bf16.mxu0 %v11126_v61  ;;  %v3031_v3 = vld [vmem:[%s10641_s21 + $0x960] sm:$0xff] }
 0x342   : > { %v11472_v43 = vpop.f32.mrf.mxu0  ;;  %6172 = vmatprep.subr.bf16.mxu1 %v9079_v6  ;;  %6297 = vmatprep.subr.bf16.mxu0 %v8811_v7  ;;  %v2753_v6 = vld [vmem:[%s10641_s21 + $0xb0] sm:$0xff]  ;;  %v8999_v19 = vcombine.high %v3023_v2, %v3031_v3  ;;  %v8998_v29 = vcombine.low %v3023_v2, %v3031_v3  ;;  %v3207_v57 = vld [vmem:[%s10641_s21 + $0xee0] sm:$0xff] }
 0x343   : > { %6123 = vmatmul.mubr.bf16.vlgmr.msra.gmra.mxu1 %v11251_v36  ;;  %v5878_v30 = vpop.f32.mrf.mxu1  ;;  %v2761_v7 = vld [vmem:[%s10641_s21 + $0xf0] sm:$0xff]  ;;  %v3183_v2 = vld [vmem:[%s10641_s21 + $0xe20] sm:$0xff] }
 0x344   : > { %v5879_v50 = vadd.f32 %v5878_v30, %v11325_v54  ;;  %6173 = vmatpush1.bf16.msra.mxu1 %v9078_v26  ;;  %6204 = vmatprep.mubr.bf16.mxu1 %v11246_v41  ;;  %v6005_v39 = vpop.f32.mrf.mxu0  ;;  %v8779_v54 = vcombine.high %v2801_v32, %v2809_v13  ;;  %v8731_v23 = vcombine.high %v2753_v6, %v2761_v7  ;;  %v3007_v26 = vld [vmem:[%s10641_s21 + $0x8a0] sm:$0xff] }
 0x345   : > { %v5880_v17 = vpop.f32.mrf.mxu1  ;;  %6298 = vmatpush1.bf16.msra.mxu0 %v8810_v27  ;;  %6174 = vmatprep.subr.bf16.mxu1 %v9063_v28  ;;  %v3015_v27 = vld [vmem:[%s10641_s21 + $0x8e0] sm:$0xff]  ;;  %v2737_v28 = vld [vmem:[%s10641_s21 + $0x30] sm:$0xff]  ;;  %v8730_v22 = vcombine.low %v2753_v6, %v2761_v7 }
 0x346   : > { %v6459_v46 = vadd.f32 %v5879_v50, %v2711_v60  ;;  %v5881_v38 = vadd.f32 %v5880_v17, %v11328_v55  ;;  %v6006_v47 = vpop.f32.mrf.mxu0  ;;  %6299 = vmatprep.subr.bf16.mxu0 %v8795_v10  ;;  %v8778_v55 = vcombine.low %v2801_v32, %v2809_v13  ;;  %v2745_v10 = vld [vmem:[%s10641_s21 + $0x70] sm:$0xff]  ;;  %v8983_v60 = vcombine.high %v3007_v26, %v3015_v27  ;;  %v2991_v32 = vld [vmem:[%s10641_s21 + $0x820] sm:$0xff] }
 0x347   : > { %v5882_v4 = vpop.f32.mrf.mxu1  ;;  %v8715_v30 = vcombine.high %v2737_v28, %v2745_v10  ;;  %v2999_v13 = vld [vmem:[%s10641_s21 + $0x860] sm:$0xff]  ;;  %v2977_v50 = vld [vmem:[%s10641_s21 + $0x7b0] sm:$0xff] }
 0x348   : > { %6475 = vst [vmem:[#allocation2 + $0x30] sm:$0xff] %v6459_v46  ;;  %v6460_v20 = vadd.f32 %v5881_v38, %v2712_v9  ;;  %6175 = vmatpush1.bf16.msra.mxu1 %v9062_v42  ;;  %v2985_v39 = vld [vmem:[%s10641_s21 + $0x7f0] sm:$0xff]  ;;  %v8982_v42 = vcombine.low %v3007_v26, %v3015_v27  ;;  %v8714_v9 = vcombine.low %v2737_v28, %v2745_v10  ;;  %v3239_v46 = vld [vmem:[%s10641_s21 + $0xfe0] sm:$0xff] }
 0x349   : > { %v5883_v21 = vpop.f32.mrf.mxu1  ;;  %6300 = vmatpush1.bf16.msra.mxu0 %v8794_v45  ;;  %6176 = vmatprep.subr.bf16.mxu1 %v9047_v59  ;;  %v8967_v17 = vcombine.high %v2991_v32, %v2999_v13  ;;  %v8955_v45 = vcombine.high %v2977_v50, %v2985_v39  ;;  %v3231_v59 = vld [vmem:[%s10641_s21 + $0xfa0] sm:$0xff]  ;;  %v2961_v38 = vld [vmem:[%s10641_s21 + $0x730] sm:$0xff]  ;;  %v8954_v48 = vcombine.low %v2977_v50, %v2985_v39 }
 0x34a   : > { %6476 = vst [vmem:[#allocation2] sm:$0xff] %v6460_v20  ;;  %6301 = vmatprep.subr.bf16.mxu0 %v8779_v54  ;;  %v2969_v47 = vld [vmem:[%s10641_s21 + $0x770] sm:$0xff]  ;;  %v8966_v54 = vcombine.low %v2991_v32, %v2999_v13  ;;  %v9207_v34 = vcombine.high %v3231_v59, %v3239_v46  ;;  %v9206_v21 = vcombine.low %v3231_v59, %v3239_v46  ;;  %v3191_v3 = vld [vmem:[%s10641_s21 + $0xe60] sm:$0xff] }
 0x34b   : > { %v8939_v4 = vcombine.high %v2961_v38, %v2969_v47  ;;  %v2945_v20 = vld [vmem:[%s10641_s21 + $0x6b0] sm:$0xff]  ;;  %v3167_v26 = vld [vmem:[%s10641_s21 + $0xda0] sm:$0xff] }
 0x34c   : > { %6177 = vmatpush1.bf16.msra.mxu1 %v9046_v16  ;;  %v2953_v16 = vld [vmem:[%s10641_s21 + $0x6f0] sm:$0xff]  ;;  %v3175_v27 = vld [vmem:[%s10641_s21 + $0xde0] sm:$0xff] }
 0x34d   : > { %6302 = vmatpush1.bf16.msra.mxu0 %v8778_v55  ;;  %6178 = vmatprep.subr.bf16.mxu1 %v9031_v51  ;;  %v8938_v55 = vcombine.low %v2961_v38, %v2969_v47  ;;  %v9191_v51 = vcombine.high %v3215_v8, %v3223_v14  ;;  %v2913_v6 = vld [vmem:[%s10641_s21 + $0x5b0] sm:$0xff]  ;;  %v3151_v32 = vld [vmem:[%s10641_s21 + $0xd20] sm:$0xff] }
 0x34e   : > { %6303 = vmatprep.subr.bf16.mxu0 %v8763_v52  ;;  %v8923_v52 = vcombine.high %v2945_v20, %v2953_v16  ;;  %v2921_v7 = vld [vmem:[%s10641_s21 + $0x5f0] sm:$0xff]  ;;  %v3159_v13 = vld [vmem:[%s10641_s21 + $0xd60] sm:$0xff] }
 0x34f   : > { %v2897_v28 = vld [vmem:[%s10641_s21 + $0x530] sm:$0xff]  ;;  %v3135_v59 = vld [vmem:[%s10641_s21 + $0xca0] sm:$0xff] }
 0x350   : > { %6179 = vmatpush1.bf16.msra.mxu1 %v9030_v62  ;;  %v9190_v62 = vcombine.low %v3215_v8, %v3223_v14  ;;  %v2905_v10 = vld [vmem:[%s10641_s21 + $0x570] sm:$0xff]  ;;  %v3143_v46 = vld [vmem:[%s10641_s21 + $0xce0] sm:$0xff] }
 0x351   : > { %6304 = vmatpush1.bf16.msra.mxu0 %v8762_v11  ;;  %6180 = vmatprep.subr.bf16.mxu1 %v9015_v63  ;;  %v8922_v11 = vcombine.low %v2945_v20, %v2953_v16  ;;  %v9175_v63 = vcombine.high %v3199_v56, %v3207_v57  ;;  %v2881_v50 = vld [vmem:[%s10641_s21 + $0x4b0] sm:$0xff]  ;;  %v3119_v8 = vld [vmem:[%s10641_s21 + $0xc20] sm:$0xff]  ;;  %v2850_v20 = vld [vmem:[%s10641_s21 + $0x3b8] sm:$0xff] }
 0x352   : > { %6305 = vmatprep.subr.bf16.mxu0 %v8747_v1  ;;  %v8907_v1 = vcombine.high %v2929_v58, %v2937_v31  ;;  %v2889_v39 = vld [vmem:[%s10641_s21 + $0x4f0] sm:$0xff]  ;;  %v3127_v14 = vld [vmem:[%s10641_s21 + $0xc60] sm:$0xff]  ;;  %v2858_v16 = vld [vmem:[%s10641_s21 + $0x3f8] sm:$0xff] }
 0x353   : > { %v2865_v38 = vld [vmem:[%s10641_s21 + $0x430] sm:$0xff] }
 0x354   : > { %6181 = vmatpush1.bf16.msra.mxu1 %v9014_v15  ;;  %v9174_v15 = vcombine.low %v3199_v56, %v3207_v57  ;;  %v2873_v47 = vld [vmem:[%s10641_s21 + $0x470] sm:$0xff]  ;;  %v3104_v56 = vld [vmem:[%s10641_s21 + $0xba8] sm:$0xff] }
 0x355   : > { %6306 = vmatpush1.bf16.msra.mxu0 %v8746_v18  ;;  %6182 = vmatprep.subr.bf16.mxu1 %v8999_v19  ;;  %v8906_v18 = vcombine.low %v2929_v58, %v2937_v31  ;;  %v9159_v19 = vcombine.high %v3183_v2, %v3191_v3  ;;  %v3112_v57 = vld [vmem:[%s10641_s21 + $0xbe8] sm:$0xff]  ;;  %v2834_v58 = vld [vmem:[%s10641_s21 + $0x338] sm:$0xff] }
 0x356   : > { %6307 = vmatprep.subr.bf16.mxu0 %v8731_v23  ;;  %v8891_v23 = vcombine.high %v2913_v6, %v2921_v7  ;;  %v2842_v31 = vld [vmem:[%s10641_s21 + $0x378] sm:$0xff] }
 0x358   : > { %6183 = vmatpush1.bf16.msra.mxu1 %v8998_v29  ;;  %v9158_v29 = vcombine.low %v3183_v2, %v3191_v3  ;;  %v3088_v2 = vld [vmem:[%s10641_s21 + $0xb28] sm:$0xff] }
 0x359   : > { %6308 = vmatpush1.bf16.msra.mxu0 %v8730_v22  ;;  %6184 = vmatprep.subr.bf16.mxu1 %v8983_v60  ;;  %v8890_v22 = vcombine.low %v2913_v6, %v2921_v7  ;;  %v9143_v60 = vcombine.high %v3167_v26, %v3175_v27  ;;  %v3096_v3 = vld [vmem:[%s10641_s21 + $0xb68] sm:$0xff]  ;;  %v2818_v6 = vld [vmem:[%s10641_s21 + $0x2b8] sm:$0xff] }
 0x35a   : > { %6309 = vmatprep.subr.bf16.mxu0 %v8715_v30  ;;  %v8875_v30 = vcombine.high %v2897_v28, %v2905_v10  ;;  %v2826_v7 = vld [vmem:[%s10641_s21 + $0x2f8] sm:$0xff] }
 0x35c   : > { %6185 = vmatpush1.bf16.msra.mxu1 %v8982_v42  ;;  %v9142_v42 = vcombine.low %v3167_v26, %v3175_v27  ;;  %v8797_v27 = vcombine.high %v2818_v6, %v2826_v7 }
 0x35d   : > { %6310 = vmatpush1.bf16.msra.mxu0 %v8714_v9  ;;  %6186 = vmatprep.subr.bf16.mxu1 %v8967_v17  ;;  %v8874_v9 = vcombine.low %v2897_v28, %v2905_v10  ;;  %v9127_v17 = vcombine.high %v3151_v32, %v3159_v13  ;;  %v3072_v28 = vld [vmem:[%s10641_s21 + $0xaa8] sm:$0xff] }
 0x35e   : > { %6311 = vmatprep.subr.bf16.mxu0 %v8955_v45  ;;  %v8859_v45 = vcombine.high %v2881_v50, %v2889_v39  ;;  %v3080_v10 = vld [vmem:[%s10641_s21 + $0xae8] sm:$0xff] }
 0x360   : > { %6187 = vmatpush1.bf16.msra.mxu1 %v8966_v54  ;;  %v9126_v54 = vcombine.low %v3151_v32, %v3159_v13  ;;  %v9064_v13 = vcombine.low %v3088_v2, %v3096_v3 }
 0x361   : > { %6312 = vmatpush2.bf16.msra.mxu0 %v8954_v48  ;;  %6188 = vmatprep.subr.bf16.mxu1 %v9207_v34  ;;  %v8858_v48 = vcombine.low %v2881_v50, %v2889_v39  ;;  %v9111_v34 = vcombine.high %v3135_v59, %v3143_v46  ;;  %v2714_v50 = vld [vmem:[#allocation2 + $0x18] sm:$0xff] }
 0x362   : > { %6313 = vmatprep.subr.bf16.mxu0 %v8939_v4  ;;  %v8843_v4 = vcombine.high %v2865_v38, %v2873_v47 }
 0x364   : > { %6189 = vmatpush2.bf16.msra.mxu1 %v9206_v21  ;;  %v9110_v21 = vcombine.low %v3135_v59, %v3143_v46  ;;  %v3056_v46 = vld [vmem:[%s10641_s21 + $0xa28] sm:$0xff] }
 0x365   : > { %6314 = vmatpush2.bf16.msra.mxu0 %v8938_v55  ;;  %6190 = vmatprep.subr.bf16.mxu1 %v9191_v51  ;;  %v8842_v55 = vcombine.low %v2865_v38, %v2873_v47  ;;  %v9095_v51 = vcombine.high %v3119_v8, %v3127_v14  ;;  %v3064_v38 = vld [vmem:[%s10641_s21 + $0xa68] sm:$0xff] }
 0x366   : > { %6315 = vmatprep.subr.bf16.mxu0 %v8923_v52  ;;  %v8829_v52 = vcombine.high %v2850_v20, %v2858_v16 }
 0x368   : > { %6191 = vmatpush2.bf16.msra.mxu1 %v9190_v62  ;;  %v9094_v62 = vcombine.low %v3119_v8, %v3127_v14  ;;  %v9033_v14 = vcombine.high %v3056_v46, %v3064_v38 }
 0x369   : > { %6316 = vmatpush2.bf16.msra.mxu0 %v8922_v11  ;;  %6192 = vmatprep.subr.bf16.mxu1 %v9175_v63  ;;  %v8828_v11 = vcombine.low %v2850_v20, %v2858_v16  ;;  %v9081_v63 = vcombine.high %v3104_v56, %v3112_v57  ;;  %v3040_v16 = vld [vmem:[%s10641_s21 + $0x9a8] sm:$0xff] }
 0x36a   : > { %6317 = vmatprep.subr.bf16.mxu0 %v8907_v1  ;;  %v8813_v1 = vcombine.high %v2834_v58, %v2842_v31 }
 0x36c   : > { %6193 = vmatpush2.bf16.msra.mxu1 %v9174_v15 }
 0x36d   : > { %6318 = vmatpush2.bf16.msra.mxu0 %v8906_v18  ;;  %6194 = vmatprep.subr.bf16.mxu1 %v9159_v19  ;;  %v9080_v18 = vcombine.low %v3104_v56, %v3112_v57  ;;  %v8812_v19 = vcombine.low %v2834_v58, %v2842_v31  ;;  %v3024_v31 = vld [vmem:[%s10641_s21 + $0x928] sm:$0xff] }
 0x36e   : > { %6319 = vmatprep.subr.bf16.mxu0 %v8891_v23  ;;  %v9065_v23 = vcombine.high %v3088_v2, %v3096_v3 }
 0x370   : > { %6195 = vmatpush2.bf16.msra.mxu1 %v9158_v29  ;;  %v2713_v29 = vld [vmem:[#allocation2 + $0x58] sm:$0xff] }
 0x371   : > { %6320 = vmatpush2.bf16.msra.mxu0 %v8890_v22  ;;  %6196 = vmatprep.subr.bf16.mxu1 %v9143_v60  ;;  %v2802_v60 = vld [vmem:[%s10641_s21 + $0x238] sm:$0xff] }
 0x372   : > { %6321 = vmatprep.subr.bf16.mxu0 %v8875_v30  ;;  %v2810_v30 = vld [vmem:[%s10641_s21 + $0x278] sm:$0xff] }
 0x374   : > { %6197 = vmatpush2.bf16.msra.mxu1 %v9142_v42  ;;  %v8796_v42 = vcombine.low %v2818_v6, %v2826_v7  ;;  %v3008_v7 = vld [vmem:[%s10641_s21 + $0x8a8] sm:$0xff] }
 0x375   : > { %6322 = vmatpush2.bf16.msra.mxu0 %v8874_v9  ;;  %6198 = vmatprep.subr.bf16.mxu1 %v9127_v17  ;;  %v9049_v9 = vcombine.high %v3072_v28, %v3080_v10 }
 0x376   : > { %6323 = vmatprep.subr.bf16.mxu0 %v8859_v45 }
 0x378   : > { %6199 = vmatpush2.bf16.msra.mxu1 %v9126_v54  ;;  %v2786_v54 = vld [vmem:[%s10641_s21 + $0x1b8] sm:$0xff] }
 0x379   : > { %6324 = vmatpush2.bf16.msra.mxu0 %v8858_v48  ;;  %6200 = vmatprep.subr.bf16.mxu1 %v9111_v34  ;;  %v2794_v48 = vld [vmem:[%s10641_s21 + $0x1f8] sm:$0xff] }
 0x37a   : > { %6325 = vmatprep.subr.bf16.mxu0 %v8843_v4  ;;  %v9048_v4 = vcombine.low %v3072_v28, %v3080_v10  ;;  %v8765_v20 = vcombine.high %v2786_v54, %v2794_v48  ;;  %v8764_v56 = vcombine.low %v2786_v54, %v2794_v48  ;;  %v3224_v54 = vld [vmem:[%s10641_s21 + $0xf68] sm:$0xff]  ;;  %v2946_v48 = vld [vmem:[%s10641_s21 + $0x6b8] sm:$0xff] }
 0x37c   : > { %6201 = vmatpush2.bf16.msra.mxu1 %v9110_v21  ;;  %v3048_v21 = vld [vmem:[%s10641_s21 + $0x9e8] sm:$0xff] }
 0x37d   : > { %6326 = vmatpush2.bf16.msra.mxu0 %v8842_v55  ;;  %6202 = vmatprep.subr.bf16.mxu1 %v9095_v51  ;;  %v2770_v55 = vld [vmem:[%s10641_s21 + $0x138] sm:$0xff]  ;;  %v9017_v57 = vcombine.high %v3040_v16, %v3048_v21 }
 0x37e   : > { %6377 = vmatprep.subr.bf16.mxu0 %v8829_v52  ;;  %v2778_v51 = vld [vmem:[%s10641_s21 + $0x178] sm:$0xff]  ;;  %v9032_v52 = vcombine.low %v3056_v46, %v3064_v38 }
 0x37f   : > { %v8749_v58 = vcombine.high %v2770_v55, %v2778_v51  ;;  %v8748_v2 = vcombine.low %v2770_v55, %v2778_v51  ;;  %v2938_v55 = vld [vmem:[%s10641_s21 + $0x678] sm:$0xff] }
 0x380   : > { %6203 = vmatpush2.bf16.msra.mxu1 %v9094_v62  ;;  %v11542_v15 = vpop.f32.mrf.mxu0  ;;  %6328 = vmatmul.mubr.bf16.vlgmr.msra.gmra.mxu0 %v11130_v0  ;;  %v3032_v62 = vld [vmem:[%s10641_s21 + $0x968] sm:$0xff] }
 0x381   : > { %6378 = vmatpush1.bf16.msra.mxu0 %v8828_v11  ;;  %6409 = vmatprep.mubr.bf16.mxu0 %v11126_v61  ;;  %v2754_v11 = vld [vmem:[%s10641_s21 + $0xb8] sm:$0xff]  ;;  %v9001_v3 = vcombine.high %v3024_v31, %v3032_v62 }
 0x382   : > { %v11546_v26 = vpop.f32.mrf.mxu0  ;;  %6254 = vmatprep.subr.bf16.mxu1 %v9081_v63  ;;  %6379 = vmatprep.subr.bf16.mxu0 %v8813_v1  ;;  %v2762_v63 = vld [vmem:[%s10641_s21 + $0xf8] sm:$0xff]  ;;  %v9016_v1 = vcombine.low %v3040_v16, %v3048_v21  ;;  %v3208_v16 = vld [vmem:[%s10641_s21 + $0xee8] sm:$0xff] }
 0x383   : > { %v5960_v22 = vpop.f32.mrf.mxu1  ;;  %6205 = vmatmul.mubr.bf16.vlgmr.msra.gmra.mxu1 %v11251_v36  ;;  %v8733_v6 = vcombine.high %v2754_v11, %v2762_v63  ;;  %v8732_v28 = vcombine.low %v2754_v11, %v2762_v63  ;;  %v2930_v21 = vld [vmem:[%s10641_s21 + $0x638] sm:$0xff] }
 0x384   : > { %v5961_v32 = vadd.f32 %v5960_v22, %v11396_v40  ;;  %6255 = vmatpush1.bf16.msra.mxu1 %v9080_v18  ;;  %6286 = vmatprep.mubr.bf16.mxu1 %v11246_v41  ;;  %v6087_v61 = vpop.f32.mrf.mxu0  ;;  %v8781_v40 = vcombine.high %v2802_v60, %v2810_v30  ;;  %v3016_v18 = vld [vmem:[%s10641_s21 + $0x8e8] sm:$0xff]  ;;  %v2922_v11 = vld [vmem:[%s10641_s21 + $0x5f8] sm:$0xff] }
 0x385   : > { %v5962_v39 = vpop.f32.mrf.mxu1  ;;  %6380 = vmatpush1.bf16.msra.mxu0 %v8812_v19  ;;  %6256 = vmatprep.subr.bf16.mxu1 %v9065_v23  ;;  %v2738_v19 = vld [vmem:[%s10641_s21 + $0x38] sm:$0xff]  ;;  %v8985_v10 = vcombine.high %v3008_v7, %v3016_v18  ;;  %v2992_v22 = vld [vmem:[%s10641_s21 + $0x828] sm:$0xff]  ;;  %v8984_v61 = vcombine.low %v3008_v7, %v3016_v18 }
 0x386   : > { %v6461_v17 = vadd.f32 %v5961_v32, %v2713_v29  ;;  %v5963_v45 = vadd.f32 %v5962_v39, %v11400_v44  ;;  %v6088_v59 = vpop.f32.mrf.mxu0  ;;  %6381 = vmatprep.subr.bf16.mxu0 %v8797_v27  ;;  %v8780_v44 = vcombine.low %v2802_v60, %v2810_v30  ;;  %v2746_v23 = vld [vmem:[%s10641_s21 + $0x78] sm:$0xff]  ;;  %v9000_v27 = vcombine.low %v3024_v31, %v3032_v62  ;;  %v3000_v60 = vld [vmem:[%s10641_s21 + $0x868] sm:$0xff] }
 0x387   : > { %v5964_v47 = vpop.f32.mrf.mxu1  ;;  %v8717_v29 = vcombine.high %v2738_v19, %v2746_v23  ;;  %v2978_v30 = vld [vmem:[%s10641_s21 + $0x7b8] sm:$0xff]  ;;  %v8968_v59 = vcombine.low %v2992_v22, %v3000_v60  ;;  %v3192_v31 = vld [vmem:[%s10641_s21 + $0xe68] sm:$0xff] }
 0x388   : > { %6477 = vst [vmem:[#allocation2 + $0x58] sm:$0xff] %v6461_v17  ;;  %v6462_v34 = vadd.f32 %v5963_v45, %v2714_v50  ;;  %6257 = vmatpush1.bf16.msra.mxu1 %v9064_v13  ;;  %v2986_v32 = vld [vmem:[%s10641_s21 + $0x7f8] sm:$0xff]  ;;  %v8716_v13 = vcombine.low %v2738_v19, %v2746_v23  ;;  %v8969_v50 = vcombine.high %v2992_v22, %v3000_v60  ;;  %v3216_v47 = vld [vmem:[%s10641_s21 + $0xf28] sm:$0xff] }
 0x389   : > { %v5965_v8 = vpop.f32.mrf.mxu1  ;;  %6382 = vmatpush1.bf16.msra.mxu0 %v8796_v42  ;;  %6258 = vmatprep.subr.bf16.mxu1 %v9049_v9  ;;  %v8957_v39 = vcombine.high %v2978_v30, %v2986_v32  ;;  %v3232_v42 = vld [vmem:[%s10641_s21 + $0xfa8] sm:$0xff]  ;;  %v2962_v17 = vld [vmem:[%s10641_s21 + $0x738] sm:$0xff]  ;;  %v9192_v51 = vcombine.low %v3216_v47, %v3224_v54 }
 0x38a   : > { %6478 = vst [vmem:[#allocation2 + $0x18] sm:$0xff] %v6462_v34  ;;  %6383 = vmatprep.subr.bf16.mxu0 %v8781_v40  ;;  %v3240_v9 = vld [vmem:[%s10641_s21 + $0xfe8] sm:$0xff]  ;;  %v2970_v45 = vld [vmem:[%s10641_s21 + $0x778] sm:$0xff]  ;;  %v8956_v40 = vcombine.low %v2978_v30, %v2986_v32 }
 0x38b   : > { %v9209_v46 = vcombine.high %v3232_v42, %v3240_v9  ;;  %v8941_v38 = vcombine.high %v2962_v17, %v2970_v45  ;;  %v2954_v34 = vld [vmem:[%s10641_s21 + $0x6f8] sm:$0xff]  ;;  %v8940_v8 = vcombine.low %v2962_v17, %v2970_v45  ;;  %v3176_v7 = vld [vmem:[%s10641_s21 + $0xde8] sm:$0xff] }
 0x38c   : > { %6259 = vmatpush1.bf16.msra.mxu1 %v9048_v4  ;;  %v9208_v4 = vcombine.low %v3232_v42, %v3240_v9  ;;  %v2914_v62 = vld [vmem:[%s10641_s21 + $0x5b8] sm:$0xff]  ;;  %v3160_v22 = vld [vmem:[%s10641_s21 + $0xd68] sm:$0xff] }
 0x38d   : > { %6384 = vmatpush1.bf16.msra.mxu0 %v8780_v44  ;;  %6260 = vmatprep.subr.bf16.mxu1 %v9033_v14  ;;  %v9193_v44 = vcombine.high %v3216_v47, %v3224_v54  ;;  %v8925_v14 = vcombine.high %v2946_v48, %v2954_v34  ;;  %v2898_v18 = vld [vmem:[%s10641_s21 + $0x538] sm:$0xff]  ;;  %v3144_v42 = vld [vmem:[%s10641_s21 + $0xce8] sm:$0xff] }
 0x38e   : > { %6385 = vmatprep.subr.bf16.mxu0 %v8765_v20  ;;  %v3200_v20 = vld [vmem:[%s10641_s21 + $0xea8] sm:$0xff]  ;;  %v2906_v19 = vld [vmem:[%s10641_s21 + $0x578] sm:$0xff] }
 0x38f   : > { %v9176_v63 = vcombine.low %v3200_v20, %v3208_v16  ;;  %v2882_v60 = vld [vmem:[%s10641_s21 + $0x4b8] sm:$0xff]  ;;  %v3128_v47 = vld [vmem:[%s10641_s21 + $0xc68] sm:$0xff] }
 0x390   : > { %6261 = vmatpush1.bf16.msra.mxu1 %v9032_v52  ;;  %v8924_v52 = vcombine.low %v2946_v48, %v2954_v34  ;;  %v2890_v30 = vld [vmem:[%s10641_s21 + $0x4f8] sm:$0xff] }
 0x391   : > { %6386 = vmatpush1.bf16.msra.mxu0 %v8764_v56  ;;  %6262 = vmatprep.subr.bf16.mxu1 %v9017_v57  ;;  %v9177_v56 = vcombine.high %v3200_v20, %v3208_v16  ;;  %v8909_v57 = vcombine.high %v2930_v21, %v2938_v55  ;;  %v2866_v9 = vld [vmem:[%s10641_s21 + $0x438] sm:$0xff]  ;;  %v3089_v20 = vld [vmem:[%s10641_s21 + $0xb30] sm:$0xff] }
 0x392   : > { %6387 = vmatprep.subr.bf16.mxu0 %v8749_v58  ;;  %v3184_v58 = vld [vmem:[%s10641_s21 + $0xe28] sm:$0xff]  ;;  %v2874_v17 = vld [vmem:[%s10641_s21 + $0x478] sm:$0xff]  ;;  %v3097_v16 = vld [vmem:[%s10641_s21 + $0xb70] sm:$0xff] }
 0x393   : > { %v9160_v23 = vcombine.low %v3184_v58, %v3192_v31  ;;  %v8844_v48 = vcombine.low %v2866_v9, %v2874_v17 }
 0x394   : > { %6263 = vmatpush1.bf16.msra.mxu1 %v9016_v1  ;;  %v8908_v1 = vcombine.low %v2930_v21, %v2938_v55 }
 0x395   : > { %6388 = vmatpush1.bf16.msra.mxu0 %v8748_v2  ;;  %6264 = vmatprep.subr.bf16.mxu1 %v9001_v3  ;;  %v9161_v2 = vcombine.high %v3184_v58, %v3192_v31  ;;  %v8893_v3 = vcombine.high %v2914_v62, %v2922_v11  ;;  %v2715_v58 = vld [vmem:[#allocation2 + $0x50] sm:$0xff] }
 0x396   : > { %6389 = vmatprep.subr.bf16.mxu0 %v8733_v6  ;;  %v3168_v6 = vld [vmem:[%s10641_s21 + $0xda8] sm:$0xff] }
 0x397   : > { %v9144_v32 = vcombine.low %v3168_v6, %v3176_v7 }
 0x398   : > { %6265 = vmatpush1.bf16.msra.mxu1 %v9000_v27  ;;  %v8892_v27 = vcombine.low %v2914_v62, %v2922_v11 }
 0x399   : > { %6390 = vmatpush1.bf16.msra.mxu0 %v8732_v28  ;;  %6266 = vmatprep.subr.bf16.mxu1 %v8985_v10  ;;  %v9145_v28 = vcombine.high %v3168_v6, %v3176_v7  ;;  %v8877_v10 = vcombine.high %v2898_v18, %v2906_v19 }
 0x39a   : > { %6391 = vmatprep.subr.bf16.mxu0 %v8717_v29  ;;  %v3152_v29 = vld [vmem:[%s10641_s21 + $0xd28] sm:$0xff] }
 0x39b   : > { %v9128_v45 = vcombine.low %v3152_v29, %v3160_v22 }
 0x39c   : > { %6267 = vmatpush1.bf16.msra.mxu1 %v8984_v61  ;;  %v8876_v61 = vcombine.low %v2898_v18, %v2906_v19  ;;  %v3057_v18 = vld [vmem:[%s10641_s21 + $0xa30] sm:$0xff] }
 0x39d   : > { %6392 = vmatpush1.bf16.msra.mxu0 %v8716_v13  ;;  %6268 = vmatprep.subr.bf16.mxu1 %v8969_v50  ;;  %v9129_v13 = vcombine.high %v3152_v29, %v3160_v22  ;;  %v8861_v50 = vcombine.high %v2882_v60, %v2890_v30  ;;  %v3065_v19 = vld [vmem:[%s10641_s21 + $0xa70] sm:$0xff] }
 0x39e   : > { %6393 = vmatprep.subr.bf16.mxu0 %v8957_v39  ;;  %v3136_v39 = vld [vmem:[%s10641_s21 + $0xca8] sm:$0xff]  ;;  %v3041_v29 = vld [vmem:[%s10641_s21 + $0x9b0] sm:$0xff] }
 0x39f   : > { %v9112_v54 = vcombine.low %v3136_v39, %v3144_v42  ;;  %v3049_v22 = vld [vmem:[%s10641_s21 + $0x9f0] sm:$0xff] }
 0x3a0   : > { %6269 = vmatpush1.bf16.msra.mxu1 %v8968_v59  ;;  %v8860_v59 = vcombine.low %v2882_v60, %v2890_v30  ;;  %v9019_v60 = vcombine.high %v3041_v29, %v3049_v22  ;;  %v3025_v30 = vld [vmem:[%s10641_s21 + $0x930] sm:$0xff] }
 0x3a1   : > { %6394 = vmatpush2.bf16.msra.mxu0 %v8956_v40  ;;  %6270 = vmatprep.subr.bf16.mxu1 %v9209_v46  ;;  %v9113_v40 = vcombine.high %v3136_v39, %v3144_v42  ;;  %v8845_v46 = vcombine.high %v2866_v9, %v2874_v17  ;;  %v3017_v39 = vld [vmem:[%s10641_s21 + $0x8f0] sm:$0xff] }
 0x3a2   : > { %6395 = vmatprep.subr.bf16.mxu0 %v8941_v38  ;;  %v3120_v38 = vld [vmem:[%s10641_s21 + $0xc28] sm:$0xff]  ;;  %v2993_v17 = vld [vmem:[%s10641_s21 + $0x830] sm:$0xff] }
 0x3a3   : > { %v9097_v34 = vcombine.high %v3120_v38, %v3128_v47 }
 0x3a4   : > { %6271 = vmatpush2.bf16.msra.mxu1 %v9208_v4  ;;  %v3105_v4 = vld [vmem:[%s10641_s21 + $0xbb0] sm:$0xff] }
 0x3a5   : > { %6396 = vmatpush2.bf16.msra.mxu0 %v8940_v8  ;;  %6272 = vmatprep.subr.bf16.mxu1 %v9193_v44  ;;  %v3113_v8 = vld [vmem:[%s10641_s21 + $0xbf0] sm:$0xff]  ;;  %v9096_v44 = vcombine.low %v3120_v38, %v3128_v47 }
 0x3a6   : > { %6397 = vmatprep.subr.bf16.mxu0 %v8925_v14  ;;  %v9083_v14 = vcombine.high %v3105_v4, %v3113_v8  ;;  %v9082_v55 = vcombine.low %v3105_v4, %v3113_v8  ;;  %v3241_v38 = vld [vmem:[%s10641_s21 + $0xff0] sm:$0xff] }
 0x3a8   : > { %6273 = vmatpush2.bf16.msra.mxu1 %v9192_v51  ;;  %v9067_v51 = vcombine.high %v3089_v20, %v3097_v16 }
 0x3a9   : > { %6398 = vmatpush2.bf16.msra.mxu0 %v8924_v52  ;;  %6274 = vmatprep.subr.bf16.mxu1 %v9177_v56  ;;  %v3073_v56 = vld [vmem:[%s10641_s21 + $0xab0] sm:$0xff] }
 0x3aa   : > { %6399 = vmatprep.subr.bf16.mxu0 %v8909_v57  ;;  %v3081_v57 = vld [vmem:[%s10641_s21 + $0xaf0] sm:$0xff] }
 0x3ac   : > { %6275 = vmatpush2.bf16.msra.mxu1 %v9176_v63  ;;  %v2716_v63 = vld [vmem:[#allocation2 + $0x68] sm:$0xff] }
 0x3ad   : > { %6400 = vmatpush2.bf16.msra.mxu0 %v8908_v1  ;;  %6276 = vmatprep.subr.bf16.mxu1 %v9161_v2  ;;  %v9051_v2 = vcombine.high %v3073_v56, %v3081_v57 }
 0x3ae   : > { %6401 = vmatprep.subr.bf16.mxu0 %v8893_v3 }
 0x3b0   : > { %6277 = vmatpush2.bf16.msra.mxu1 %v9160_v23 }
 0x3b1   : > { %6402 = vmatpush2.bf16.msra.mxu0 %v8892_v27  ;;  %6278 = vmatprep.subr.bf16.mxu1 %v9145_v28  ;;  %v9050_v27 = vcombine.low %v3073_v56, %v3081_v57 }
 0x3b2   : > { %6403 = vmatprep.subr.bf16.mxu0 %v8877_v10  ;;  %v9035_v10 = vcombine.high %v3057_v18, %v3065_v19 }
 0x3b4   : > { %6279 = vmatpush2.bf16.msra.mxu1 %v9144_v32  ;;  %v3033_v32 = vld [vmem:[%s10641_s21 + $0x970] sm:$0xff] }
 0x3b5   : > { %6404 = vmatpush2.bf16.msra.mxu0 %v8876_v61  ;;  %6280 = vmatprep.subr.bf16.mxu1 %v9129_v13  ;;  %v9018_v61 = vcombine.low %v3041_v29, %v3049_v22  ;;  %v9003_v13 = vcombine.high %v3025_v30, %v3033_v32  ;;  %v9002_v42 = vcombine.low %v3025_v30, %v3033_v32 }
 0x3b6   : > { %6405 = vmatprep.subr.bf16.mxu0 %v8861_v50  ;;  %v3009_v50 = vld [vmem:[%s10641_s21 + $0x8b0] sm:$0xff] }
 0x3b7   : > { %v8987_v9 = vcombine.high %v3009_v50, %v3017_v39 }
 0x3b8   : > { %6281 = vmatpush2.bf16.msra.mxu1 %v9128_v45  ;;  %v3001_v45 = vld [vmem:[%s10641_s21 + $0x870] sm:$0xff] }
 0x3b9   : > { %6406 = vmatpush2.bf16.msra.mxu0 %v8860_v59  ;;  %6282 = vmatprep.subr.bf16.mxu1 %v9113_v40  ;;  %v8986_v59 = vcombine.low %v3009_v50, %v3017_v39  ;;  %v8971_v40 = vcombine.high %v2993_v17, %v3001_v45  ;;  %v8970_v47 = vcombine.low %v2993_v17, %v3001_v45  ;;  %v3074_v50 = vld [vmem:[%s10641_s21 + $0xab8] sm:$0xff] }
 0x3ba   : > { %6407 = vmatprep.subr.bf16.mxu0 %v8845_v46  ;;  %v3233_v46 = vld [vmem:[%s10641_s21 + $0xfb0] sm:$0xff]  ;;  %v3082_v39 = vld [vmem:[%s10641_s21 + $0xaf8] sm:$0xff] }
 0x3bb   : > { %v9210_v4 = vcombine.low %v3233_v46, %v3241_v38 }
 0x3bc   : > { %6283 = vmatpush2.bf16.msra.mxu1 %v9112_v54  ;;  %v9211_v54 = vcombine.high %v3233_v46, %v3241_v38  ;;  %v9053_v38 = vcombine.high %v3074_v50, %v3082_v39 }
 0x3bd   : > { %6408 = vmatpush2.bf16.msra.mxu0 %v8844_v48  ;;  %6284 = vmatprep.subr.bf16.mxu1 %v9097_v34  ;;  %v3217_v48 = vld [vmem:[%s10641_s21 + $0xf30] sm:$0xff] }
 0x3be   : > { %v3225_v34 = vld [vmem:[%s10641_s21 + $0xf70] sm:$0xff] }
 0x3bf   : > { %v9195_v8 = vcombine.high %v3217_v48, %v3225_v34 }
 0x3c0   : > { %6285 = vmatpush2.bf16.msra.mxu1 %v9096_v44  ;;  %v11610_v21 = vpop.f32.mrf.mxu0  ;;  %6410 = vmatmul.mubr.bf16.vlgmr.msra.gmra.mxu0 %v11130_v0  ;;  %v9066_v0 = vcombine.low %v3089_v20, %v3097_v16  ;;  %v3201_v44 = vld [vmem:[%s10641_s21 + $0xeb0] sm:$0xff]  ;;  %v9194_v20 = vcombine.low %v3217_v48, %v3225_v34  ;;  %v3058_v34 = vld [vmem:[%s10641_s21 + $0xa38] sm:$0xff] }
 0x3c1   : > { %6336 = vmatprep.subr.bf16.mxu1 %v9083_v14  ;;  %v3209_v14 = vld [vmem:[%s10641_s21 + $0xef0] sm:$0xff] }
 0x3c2   : > { %v11613_v52 = vpop.f32.mrf.mxu0  ;;  %v9179_v16 = vcombine.high %v3201_v44, %v3209_v14  ;;  %v9178_v56 = vcombine.low %v3201_v44, %v3209_v14 }
 0x3c3   : > { %v6042_v31 = vpop.f32.mrf.mxu1  ;;  %6287 = vmatmul.mubr.bf16.vlgmr.msra.gmra.mxu1 %v11251_v36 }
 0x3c4   : > { %v6043_v62 = vadd.f32 %v6042_v31, %v11468_v25  ;;  %6337 = vmatpush1.bf16.msra.mxu1 %v9082_v55  ;;  %6368 = vmatprep.mubr.bf16.mxu1 %v11246_v41  ;;  %v6169_v11 = vpop.f32.mrf.mxu0  ;;  %v3185_v55 = vld [vmem:[%s10641_s21 + $0xe30] sm:$0xff] }
 0x3c5   : > { %v6044_v1 = vpop.f32.mrf.mxu1  ;;  %6338 = vmatprep.subr.bf16.mxu1 %v9067_v51  ;;  %v3193_v51 = vld [vmem:[%s10641_s21 + $0xe70] sm:$0xff] }
 0x3c6   : > { %v6463_v3 = vadd.f32 %v6043_v62, %v2715_v58  ;;  %v6045_v6 = vadd.f32 %v6044_v1, %v11472_v43  ;;  %v6170_v7 = vpop.f32.mrf.mxu0  ;;  %v9034_v43 = vcombine.low %v3057_v18, %v3065_v19  ;;  %v9163_v57 = vcombine.high %v3185_v55, %v3193_v51  ;;  %v3169_v58 = vld [vmem:[%s10641_s21 + $0xdb0] sm:$0xff] }
 0x3c7   : > { %v6046_v23 = vpop.f32.mrf.mxu1  ;;  %v3177_v31 = vld [vmem:[%s10641_s21 + $0xdf0] sm:$0xff]  ;;  %v9162_v62 = vcombine.low %v3185_v55, %v3193_v51  ;;  %v3026_v51 = vld [vmem:[%s10641_s21 + $0x938] sm:$0xff] }
 0x3c8   : > { %6479 = vst [vmem:[#allocation2 + $0x50] sm:$0xff] %v6463_v3  ;;  %v6464_v25 = vadd.f32 %v6045_v6, %v2716_v63  ;;  %6339 = vmatpush1.bf16.msra.mxu1 %v9066_v0  ;;  %v9147_v11 = vcombine.high %v3169_v58, %v3177_v31  ;;  %v3153_v0 = vld [vmem:[%s10641_s21 + $0xd30] sm:$0xff]  ;;  %v9146_v1 = vcombine.low %v3169_v58, %v3177_v31  ;;  %v3010_v31 = vld [vmem:[%s10641_s21 + $0x8b8] sm:$0xff] }
 0x3c9   : > { %v6047_v28 = vpop.f32.mrf.mxu1  ;;  %6340 = vmatprep.subr.bf16.mxu1 %v9051_v2  ;;  %v3161_v63 = vld [vmem:[%s10641_s21 + $0xd70] sm:$0xff] }
 0x3ca   : > { %6480 = vst [vmem:[#allocation2 + $0x68] sm:$0xff] %v6464_v25  ;;  %v9131_v2 = vcombine.high %v3153_v0, %v3161_v63  ;;  %v3137_v3 = vld [vmem:[%s10641_s21 + $0xcb0] sm:$0xff]  ;;  %v9130_v7 = vcombine.low %v3153_v0, %v3161_v63  ;;  %v3106_v28 = vld [vmem:[%s10641_s21 + $0xbb8] sm:$0xff] }
 0x3cb   : > { %v3145_v6 = vld [vmem:[%s10641_s21 + $0xcf0] sm:$0xff]  ;;  %v2994_v63 = vld [vmem:[%s10641_s21 + $0x838] sm:$0xff] }
 0x3cc   : > { %6341 = vmatpush1.bf16.msra.mxu1 %v9050_v27  ;;  %v9115_v18 = vcombine.high %v3137_v3, %v3145_v6  ;;  %v3121_v19 = vld [vmem:[%s10641_s21 + $0xc30] sm:$0xff]  ;;  %v9114_v25 = vcombine.low %v3137_v3, %v3145_v6  ;;  %v3234_v6 = vld [vmem:[%s10641_s21 + $0xfb8] sm:$0xff] }
 0x3cd   : > { %6342 = vmatprep.subr.bf16.mxu1 %v9035_v10  ;;  %v3129_v23 = vld [vmem:[%s10641_s21 + $0xc70] sm:$0xff]  ;;  %v3114_v10 = vld [vmem:[%s10641_s21 + $0xbf8] sm:$0xff] }
 0x3ce   : > { %v9099_v27 = vcombine.high %v3121_v19, %v3129_v23  ;;  %v9098_v29 = vcombine.low %v3121_v19, %v3129_v23  ;;  %v9085_v22 = vcombine.high %v3106_v28, %v3114_v10  ;;  %v9084_v32 = vcombine.low %v3106_v28, %v3114_v10  ;;  %v3218_v23 = vld [vmem:[%s10641_s21 + $0xf38] sm:$0xff] }
 0x3cf   : > { %v3202_v10 = vld [vmem:[%s10641_s21 + $0xeb8] sm:$0xff] }
 0x3d0   : > { %6343 = vmatpush1.bf16.msra.mxu1 %v9034_v43  ;;  %v3090_v43 = vld [vmem:[%s10641_s21 + $0xb38] sm:$0xff] }
 0x3d1   : > { %6344 = vmatprep.subr.bf16.mxu1 %v9019_v60  ;;  %v3098_v60 = vld [vmem:[%s10641_s21 + $0xb78] sm:$0xff] }
 0x3d4   : > { %6345 = vmatpush1.bf16.msra.mxu1 %v9018_v61  ;;  %v9069_v61 = vcombine.high %v3090_v43, %v3098_v60 }
 0x3d5   : > { %6346 = vmatprep.subr.bf16.mxu1 %v9003_v13 }
 0x3d8   : > { %6347 = vmatpush1.bf16.msra.mxu1 %v9002_v42  ;;  %v2717_v42 = vld [vmem:[#allocation2 + $0x8] sm:$0xff] }
 0x3d9   : > { %6348 = vmatprep.subr.bf16.mxu1 %v8987_v9 }
 0x3dc   : > { %6349 = vmatpush1.bf16.msra.mxu1 %v8986_v59  ;;  %v9068_v59 = vcombine.low %v3090_v43, %v3098_v60  ;;  %v3186_v60 = vld [vmem:[%s10641_s21 + $0xe38] sm:$0xff] }
 0x3dd   : > { %6350 = vmatprep.subr.bf16.mxu1 %v8971_v40  ;;  %v2718_v40 = vld [vmem:[#allocation2 + $0x48] sm:$0xff] }
 0x3e0   : > { %6351 = vmatpush1.bf16.msra.mxu1 %v8970_v47 }
 0x3e1   : > { %6352 = vmatprep.subr.bf16.mxu1 %v9211_v54 }
 0x3e4   : > { %6353 = vmatpush2.bf16.msra.mxu1 %v9210_v4  ;;  %v3066_v4 = vld [vmem:[%s10641_s21 + $0xa78] sm:$0xff] }
 0x3e5   : > { %6354 = vmatprep.subr.bf16.mxu1 %v9195_v8  ;;  %v9037_v14 = vcombine.high %v3058_v34, %v3066_v4 }
 0x3e8   : > { %6355 = vmatpush2.bf16.msra.mxu1 %v9194_v20  ;;  %v3042_v20 = vld [vmem:[%s10641_s21 + $0x9b8] sm:$0xff] }
 0x3e9   : > { %6356 = vmatprep.subr.bf16.mxu1 %v9179_v16  ;;  %v3050_v16 = vld [vmem:[%s10641_s21 + $0x9f8] sm:$0xff] }
 0x3ea   : > { %v9021_v55 = vcombine.high %v3042_v20, %v3050_v16 }
 0x3ec   : > { %6357 = vmatpush2.bf16.msra.mxu1 %v9178_v56  ;;  %v3034_v56 = vld [vmem:[%s10641_s21 + $0x978] sm:$0xff] }
 0x3ed   : > { %6358 = vmatprep.subr.bf16.mxu1 %v9163_v57  ;;  %v9020_v57 = vcombine.low %v3042_v20, %v3050_v16  ;;  %v9005_v58 = vcombine.high %v3026_v51, %v3034_v56  ;;  %v2719_v20 = vld [vmem:[#allocation2 + $0x40] sm:$0xff] }
 0x3f0   : > { %6359 = vmatpush2.bf16.msra.mxu1 %v9162_v62  ;;  %v3018_v62 = vld [vmem:[%s10641_s21 + $0x8f8] sm:$0xff] }
 0x3f1   : > { %6360 = vmatprep.subr.bf16.mxu1 %v9147_v11  ;;  %v9004_v11 = vcombine.low %v3026_v51, %v3034_v56  ;;  %v8989_v0 = vcombine.high %v3010_v31, %v3018_v62  ;;  %v2720_v51 = vld [vmem:[#allocation2 + $0x20] sm:$0xff] }
 0x3f4   : > { %6361 = vmatpush2.bf16.msra.mxu1 %v9146_v1  ;;  %v3002_v1 = vld [vmem:[%s10641_s21 + $0x878] sm:$0xff] }
 0x3f5   : > { %6362 = vmatprep.subr.bf16.mxu1 %v9131_v2  ;;  %v8988_v2 = vcombine.low %v3010_v31, %v3018_v62  ;;  %v8973_v3 = vcombine.high %v2994_v63, %v3002_v1 }
 0x3f8   : > { %6363 = vmatpush2.bf16.msra.mxu1 %v9130_v7  ;;  %v3242_v7 = vld [vmem:[%s10641_s21 + $0xff8] sm:$0xff] }
 0x3f9   : > { %6364 = vmatprep.subr.bf16.mxu1 %v9115_v18  ;;  %v8972_v18 = vcombine.low %v2994_v63, %v3002_v1  ;;  %v9213_v19 = vcombine.high %v3234_v6, %v3242_v7 }
 0x3fc   : > { %6365 = vmatpush2.bf16.msra.mxu1 %v9114_v25  ;;  %v3226_v25 = vld [vmem:[%s10641_s21 + $0xf78] sm:$0xff] }
 0x3fd   : > { %6366 = vmatprep.subr.bf16.mxu1 %v9099_v27  ;;  %v9212_v27 = vcombine.low %v3234_v6, %v3242_v7  ;;  %v9197_v28 = vcombine.high %v3218_v23, %v3226_v25 }
 0x400   : > { %6367 = vmatpush2.bf16.msra.mxu1 %v9098_v29  ;;  %v11651_v30 = vpop.f32.mrf.mxu0  ;;  %v3210_v29 = vld [vmem:[%s10641_s21 + $0xef8] sm:$0xff] }
 0x401   : > { %6418 = vmatprep.subr.bf16.mxu1 %v9085_v22  ;;  %v9196_v22 = vcombine.low %v3218_v23, %v3226_v25  ;;  %v9181_v43 = vcombine.high %v3202_v10, %v3210_v29 }
 0x402   : > { %v11653_v13 = vpop.f32.mrf.mxu0 }
 0x403   : > { %v6124_v9 = vpop.f32.mrf.mxu1  ;;  %6369 = vmatmul.mubr.bf16.vlgmr.msra.gmra.mxu1 %v11251_v36 }
 0x404   : > { %v6125_v17 = vadd.f32 %v6124_v9, %v11542_v15  ;;  %6419 = vmatpush1.bf16.msra.mxu1 %v9084_v32  ;;  %6450 = vmatprep.mubr.bf16.mxu1 %v11246_v41  ;;  %v6251_v45 = vpop.f32.mrf.mxu0  ;;  %v9052_v41 = vcombine.low %v3074_v50, %v3082_v39  ;;  %v3194_v32 = vld [vmem:[%s10641_s21 + $0xe78] sm:$0xff] }
 0x405   : > { %v6126_v46 = vpop.f32.mrf.mxu1  ;;  %6420 = vmatprep.subr.bf16.mxu1 %v9069_v61  ;;  %v9180_v61 = vcombine.low %v3202_v10, %v3210_v29  ;;  %v9165_v50 = vcombine.high %v3186_v60, %v3194_v32  ;;  %v3170_v39 = vld [vmem:[%s10641_s21 + $0xdb8] sm:$0xff]  ;;  %v9164_v9 = vcombine.low %v3186_v60, %v3194_v32 }
 0x406   : > { %v6465_v47 = vadd.f32 %v6125_v17, %v2717_v42  ;;  %v6127_v54 = vadd.f32 %v6126_v46, %v11546_v26  ;;  %v6252_v48 = vpop.f32.mrf.mxu0  ;;  %v9036_v26 = vcombine.low %v3058_v34, %v3066_v4  ;;  %v3178_v42 = vld [vmem:[%s10641_s21 + $0xdf8] sm:$0xff] }
 0x407   : > { %v6128_v8 = vpop.f32.mrf.mxu1  ;;  %v9149_v17 = vcombine.high %v3170_v39, %v3178_v42  ;;  %v3154_v45 = vld [vmem:[%s10641_s21 + $0xd38] sm:$0xff] }
 0x408   : > { %6481 = vst [vmem:[#allocation2 + $0x8] sm:$0xff] %v6465_v47  ;;  %v6466_v15 = vadd.f32 %v6127_v54, %v2718_v40  ;;  %6421 = vmatpush1.bf16.msra.mxu1 %v9068_v59  ;;  %v3162_v59 = vld [vmem:[%s10641_s21 + $0xd78] sm:$0xff]  ;;  %v9148_v40 = vcombine.low %v3170_v39, %v3178_v42  ;;  %v2725_v39 = vld [vmem:[#allocation2 + $0x78] sm:$0xff] }
 0x409   : > { %v6129_v44 = vpop.f32.mrf.mxu1  ;;  %6422 = vmatprep.subr.bf16.mxu1 %v9053_v38  ;;  %v9133_v46 = vcombine.high %v3154_v45, %v3162_v59  ;;  %v3138_v38 = vld [vmem:[%s10641_s21 + $0xcb8] sm:$0xff]  ;;  %v9132_v54 = vcombine.low %v3154_v45, %v3162_v59 }
 0x40a   : > { %6482 = vst [vmem:[#allocation2 + $0x48] sm:$0xff] %v6466_v15  ;;  %v3146_v47 = vld [vmem:[%s10641_s21 + $0xcf8] sm:$0xff] }
 0x40b   : > { %v9117_v48 = vcombine.high %v3138_v38, %v3146_v47  ;;  %v3122_v34 = vld [vmem:[%s10641_s21 + $0xc38] sm:$0xff]  ;;  %v9116_v8 = vcombine.low %v3138_v38, %v3146_v47 }
 0x40c   : > { %6423 = vmatpush1.bf16.msra.mxu1 %v9052_v41  ;;  %v3130_v4 = vld [vmem:[%s10641_s21 + $0xc78] sm:$0xff] }
 0x40d   : > { %6424 = vmatprep.subr.bf16.mxu1 %v9037_v14  ;;  %v9101_v15 = vcombine.high %v3122_v34, %v3130_v4  ;;  %v9100_v41 = vcombine.low %v3122_v34, %v3130_v4 }
 0x410   : > { %6425 = vmatpush1.bf16.msra.mxu1 %v9036_v26 }
 0x411   : > { %6426 = vmatprep.subr.bf16.mxu1 %v9021_v55 }
 0x414   : > { %6427 = vmatpush1.bf16.msra.mxu1 %v9020_v57 }
 0x415   : > { %6428 = vmatprep.subr.bf16.mxu1 %v9005_v58 }
 0x418   : > { %6429 = vmatpush1.bf16.msra.mxu1 %v9004_v11 }
 0x419   : > { %6430 = vmatprep.subr.bf16.mxu1 %v8989_v0 }
 0x41c   : > { %6431 = vmatpush1.bf16.msra.mxu1 %v8988_v2  ;;  %v2721_v2 = vld [vmem:[#allocation2 + $0x10] sm:$0xff] }
 0x41d   : > { %6432 = vmatprep.subr.bf16.mxu1 %v8973_v3 }
 0x420   : > { %6433 = vmatpush1.bf16.msra.mxu1 %v8972_v18 }
 0x421   : > { %6434 = vmatprep.subr.bf16.mxu1 %v9213_v19 }
 0x424   : > { %6435 = vmatpush2.bf16.msra.mxu1 %v9212_v27 }
 0x425   : > { %6436 = vmatprep.subr.bf16.mxu1 %v9197_v28  ;;  %v2723_v28 = vld [vmem:[#allocation2 + $0x60] sm:$0xff] }
 0x428   : > { %6437 = vmatpush2.bf16.msra.mxu1 %v9196_v22  ;;  %v2724_v22 = vld [vmem:[#allocation2 + $0x70] sm:$0xff] }
 0x429   : > { %6438 = vmatprep.subr.bf16.mxu1 %v9181_v43 }
 0x42c   : > { %6439 = vmatpush2.bf16.msra.mxu1 %v9180_v61 }
 0x42d   : > { %6440 = vmatprep.subr.bf16.mxu1 %v9165_v50 }
 0x430   : > { %6441 = vmatpush2.bf16.msra.mxu1 %v9164_v9  ;;  %v2726_v9 = vld [vmem:[#allocation2 + $0x28] sm:$0xff] }
 0x431   : > { %6442 = vmatprep.subr.bf16.mxu1 %v9149_v17 }
 0x434   : > { %6443 = vmatpush2.bf16.msra.mxu1 %v9148_v40 }
 0x435   : > { %6444 = vmatprep.subr.bf16.mxu1 %v9133_v46 }
 0x438   : > { %6445 = vmatpush2.bf16.msra.mxu1 %v9132_v54 }
 0x439   : > { %6446 = vmatprep.subr.bf16.mxu1 %v9117_v48 }
 0x43c   : > { %6447 = vmatpush2.bf16.msra.mxu1 %v9116_v8 }
 0x43d   : > { %6448 = vmatprep.subr.bf16.mxu1 %v9101_v15 }
 0x440   : > { %6449 = vmatpush2.bf16.msra.mxu1 %v9100_v41  ;;  %v6329_v44 = vpop.f32.mrf.mxu0 }
 0x442   : > { %v6331_v14 = vpop.f32.mrf.mxu0 }
 0x443   : > { %v6206_v16 = vpop.f32.mrf.mxu1  ;;  %6451 = vmatmul.mubr.bf16.vlgmr.msra.gmra.mxu1 %v11251_v36 }
 0x444   : > { %v6207_v26 = vadd.f32 %v6206_v16, %v11610_v21  ;;  %v6333_v55 = vpop.f32.mrf.mxu0  ;;  %v2722_v21 = vld [vmem:[#allocation2 + $0x38] sm:$0xff] }
 0x445   : > { %v6208_v56 = vpop.f32.mrf.mxu1 }
 0x446   : > { %v6467_v57 = vadd.f32 %v6207_v26, %v2719_v20  ;;  %v6209_v58 = vadd.f32 %v6208_v56, %v11613_v52  ;;  %v6334_v31 = vpop.f32.mrf.mxu0 }
 0x447   : > { %v6210_v62 = vpop.f32.mrf.mxu1 }
 0x448   : > { %6483 = vst [vmem:[#allocation2 + $0x40] sm:$0xff] %v6467_v57  ;;  %v6468_v11 = vadd.f32 %v6209_v58, %v2720_v51 }
 0x449   : > { %v6211_v0 = vpop.f32.mrf.mxu1 }
 0x44a   : > { %6484 = vst [vmem:[#allocation2 + $0x20] sm:$0xff] %v6468_v11 }
 0x480   : > { %v6411_v63 = vpop.f32.mrf.mxu0 }
 0x482   : > { %v6413_v1 = vpop.f32.mrf.mxu0 }
 0x483   : > { %v6288_v3 = vpop.f32.mrf.mxu1 }
 0x484   : > { %v6289_v36 = vadd.f32 %v6288_v3, %v11651_v30  ;;  %v6415_v6 = vpop.f32.mrf.mxu0 }
 0x485   : > { %v6290_v7 = vpop.f32.mrf.mxu1 }
 0x486   : > { %v6469_v18 = vadd.f32 %v6289_v36, %v2721_v2  ;;  %v6291_v19 = vadd.f32 %v6290_v7, %v11653_v13  ;;  %v6416_v23 = vpop.f32.mrf.mxu0 }
 0x487   : > { %v6292_v52 = vpop.f32.mrf.mxu1 }
 0x488   : > { %6485 = vst [vmem:[#allocation2 + $0x10] sm:$0xff] %v6469_v18  ;;  %v6470_v25 = vadd.f32 %v6291_v19, %v2722_v21 }
 0x489   : > { %v6293_v27 = vpop.f32.mrf.mxu1 }
 0x48a   : > { %6486 = vst [vmem:[#allocation2 + $0x38] sm:$0xff] %v6470_v25 }
 0x4c3   : > { %v6370_v10 = vpop.f32.mrf.mxu1 }
 0x4c4   : > { %v6371_v29 = vadd.f32 %v6370_v10, %v6329_v44 }
 0x4c5   : > { %v6372_v43 = vpop.f32.mrf.mxu1 }
 0x4c6   : > { %v6471_v60 = vadd.f32 %v6371_v29, %v2723_v28  ;;  %v6373_v32 = vadd.f32 %v6372_v43, %v6331_v14 }
 0x4c7   : > { %v6374_v30 = vpop.f32.mrf.mxu1 }
 0x4c8   : > { %6487 = vst [vmem:[#allocation2 + $0x60] sm:$0xff] %v6471_v60  ;;  %v6472_v61 = vadd.f32 %v6373_v32, %v2724_v22 }
 0x4c9   : > { %v6375_v50 = vpop.f32.mrf.mxu1 }
 0x4ca   : > { %6488 = vst [vmem:[#allocation2 + $0x70] sm:$0xff] %v6472_v61 }
 0x503   : > { %v6452_v13 = vpop.f32.mrf.mxu1 }
 0x504   : > { %v6453_v42 = vadd.f32 %v6452_v13, %v6411_v63 }
 0x505   : > { %v6454_v17 = vpop.f32.mrf.mxu1 }
 0x506   : > { %v6473_v45 = vadd.f32 %v6453_v42, %v2725_v39  ;;  %v6455_v59 = vadd.f32 %v6454_v17, %v6413_v1  ;;  %6494 = sbr.rel (%p9214_p4) target bundleno = 1937 (0x791), region = 80 }
 0x507   : > { %v6456_v40 = vpop.f32.mrf.mxu1 }
 0x508   : > { %6489 = vst [vmem:[#allocation2 + $0x78] sm:$0xff] %v6473_v45  ;;  %v6474_v46 = vadd.f32 %v6455_v59, %v2726_v9 }
 0x509   : > { %v6457_v38 = vpop.f32.mrf.mxu1 }
 0x50a   : > { %6490 = vst [vmem:[#allocation2 + $0x28] sm:$0xff] %v6474_v46 }
 0x50b   : > { %v10065_v47 = vld [vmem:[#allocation10 + $0x78] sm:$0xff]   ;;  %v10069_v4 = vld [vmem:[#allocation10 + $0x70] sm:$0xff]   ;;  %v10073_v44 = vld [vmem:[#allocation10 + $0x68] sm:$0xff]  }
 0x50c   : > { %v10066_v54 = vld [vmem:[#allocation10 + $0xf8] sm:$0xff]   ;;  %9351 = vmatprep.subr.bf16.mxu0 %v10065_v47  ;;  %v10070_v8 = vld [vmem:[#allocation10 + $0xf0] sm:$0xff]   ;;  %v10074_v14 = vld [vmem:[#allocation10 + $0xe8] sm:$0xff]  }
 0x50d   : > { %v10067_v48 = vld [vmem:[#allocation10 + $0x38] sm:$0xff]   ;;  %9373 = vmatprep.subr.bf16.mxu1 %v10066_v54  ;;  %v10071_v15 = vld [vmem:[#allocation10 + $0x30] sm:$0xff]   ;;  %v10075_v20 = vld [vmem:[#allocation10 + $0x28] sm:$0xff]  }
 0x50e   : > { %v10068_v34 = vld [vmem:[#allocation10 + $0xb8] sm:$0xff]   ;;  %9352 = vmatpush3.bf16.msra.mxu0 %v10067_v48  ;;  %v10072_v41 = vld [vmem:[#allocation10 + $0xb0] sm:$0xff]   ;;  %v10076_v16 = vld [vmem:[#allocation10 + $0xa8] sm:$0xff]  }
 0x50f   : > { %9374 = vmatpush3.bf16.msra.mxu1 %v10068_v34  ;;  %9353 = vmatprep.subr.bf16.mxu0 %v10069_v4  ;;  %v10077_v26 = vld [vmem:[#allocation10 + $0x60] sm:$0xff]   ;;  %v10081_v57 = vld [vmem:[#allocation10 + $0x58] sm:$0xff]   ;;  %v10085_v11 = vld [vmem:[#allocation10 + $0x50] sm:$0xff]  }
 0x510   : > { %9375 = vmatprep.subr.bf16.mxu1 %v10070_v8  ;;  %v10078_v55 = vld [vmem:[#allocation10 + $0xe0] sm:$0xff]   ;;  %v10082_v58 = vld [vmem:[#allocation10 + $0xd8] sm:$0xff]   ;;  %v10086_v0 = vld [vmem:[#allocation10 + $0xd0] sm:$0xff]  }
 0x511   : > { %v10079_v51 = vld [vmem:[#allocation10 + $0x20] sm:$0xff]   ;;  %v10083_v31 = vld [vmem:[#allocation10 + $0x18] sm:$0xff]   ;;  %v10087_v63 = vld [vmem:[#allocation10 + $0x10] sm:$0xff]  }
 0x512   : > { %9354 = vmatpush3.bf16.msra.mxu0 %v10071_v15  ;;  %v10080_v56 = vld [vmem:[#allocation10 + $0xa0] sm:$0xff]   ;;  %v10084_v62 = vld [vmem:[#allocation10 + $0x98] sm:$0xff]   ;;  %v10088_v1 = vld [vmem:[#allocation10 + $0x90] sm:$0xff]  }
 0x513   : > { %9376 = vmatpush3.bf16.msra.mxu1 %v10072_v41  ;;  %9355 = vmatprep.subr.bf16.mxu0 %v10073_v44  ;;  %v10089_v2 = vld [vmem:[#allocation10 + $0x48] sm:$0xff]   ;;  %v10093_v21 = vld [vmem:[#allocation10 + $0x40] sm:$0xff]   ;;  %v6500_v52 = vld [vmem:[#allocation2] sm:$0xff] }
 0x514   : > { %9377 = vmatprep.subr.bf16.mxu1 %v10074_v14  ;;  %v10090_v3 = vld [vmem:[#allocation10 + $0xc8] sm:$0xff]   ;;  %v10094_v7 = vld [vmem:[#allocation10 + $0xc0] sm:$0xff]   ;;  %v10097_v50 = vld [vmem:[#allocation10 + $0x178] sm:$0xff]  }
 0x515   : > { %v10091_v36 = vld [vmem:[#allocation10 + $0x8] sm:$0xff]   ;;  %v10095_v18 = vld [vmem:[#allocation10] sm:$0xff]   ;;  %v10098_v17 = vld [vmem:[#allocation10 + $0x1f8] sm:$0xff]  }
 0x516   : > { %9356 = vmatpush3.bf16.msra.mxu0 %v10075_v20  ;;  %v10092_v6 = vld [vmem:[#allocation10 + $0x88] sm:$0xff]   ;;  %v10096_v19 = vld [vmem:[#allocation10 + $0x80] sm:$0xff]   ;;  %v10099_v14 = vld [vmem:[#allocation10 + $0x138] sm:$0xff]  }
 0x517   : > { %9378 = vmatpush3.bf16.msra.mxu1 %v10076_v16  ;;  %9357 = vmatprep.subr.bf16.mxu0 %v10077_v26  ;;  %v6495_v23 = vld [vmem:[#allocation8] sm:$0xff]  ;;  %v6502_v25 = vld [vmem:[#allocation2 + $0x18] sm:$0xff]  ;;  %v10100_v20 = vld [vmem:[#allocation10 + $0x1b8] sm:$0xff]  }
 0x518   : > { %9379 = vmatprep.subr.bf16.mxu1 %v10078_v55  ;;  %v6526_v27 = vrot.slane %v6495_v23, %v11089_v53  ;;  %v6686_v28 = vrot.slane %v6495_v23, %v11100_v24  ;;  %v6534_v10 = vrot.slane %v6495_v23, %v11216_v35  ;;  %v6694_v29 = vrot.slane %v6495_v23, %v11221_v37  ;;  %v6499_v22 = vld [vmem:[#allocation2 + $0x30] sm:$0xff]  ;;  %v6501_v43 = vld [vmem:[#allocation2 + $0x58] sm:$0xff] }
 0x519   : > { %v6522_v60 = vrot.slane %v6495_v23, %v11074_v5  ;;  %v6682_v32 = vrot.slane %v6495_v23, %v11086_v12  ;;  %v6530_v30 = vrot.slane %v6495_v23, %v11208_v49  ;;  %v6690_v61 = vrot.slane %v6495_v23, %v11213_v33  ;;  %v10116_v23 = vld [vmem:[#allocation10 + $0x198] sm:$0xff]  }
 0x51a   : > { %9358 = vmatpush3.bf16.msra.mxu0 %v10079_v51  ;;  %v6606_v39 = vrot.slane %v6526_v27, %v11074_v5  ;;  %v6766_v13 = vrot.slane %v6686_v28, %v11086_v12  ;;  %v6614_v42 = vrot.slane %v6534_v10, %v11074_v5  ;;  %v6774_v9 = vrot.slane %v6694_v29, %v11086_v12  ;;  %v10119_v27 = vld [vmem:[#allocation10 + $0x110] sm:$0xff]   ;;  %v10121_v10 = vld [vmem:[#allocation10 + $0x148] sm:$0xff]  }
 0x51b   : > { %9380 = vmatpush3.bf16.msra.mxu1 %v10080_v56  ;;  %9359 = vmatprep.subr.bf16.mxu0 %v10081_v57  ;;  %v6602_v45 = vrot.slane %v6522_v60, %v11074_v5  ;;  %v6762_v59 = vrot.slane %v6682_v32, %v11086_v12  ;;  %v6610_v40 = vrot.slane %v6530_v30, %v11074_v5  ;;  %v10101_v56 = vld [vmem:[#allocation10 + $0x170] sm:$0xff]   ;;  %v10122_v29 = vld [vmem:[#allocation10 + $0x1c8] sm:$0xff]   ;;  %v10125_v60 = vld [vmem:[#allocation10 + $0x140] sm:$0xff]  }
 0x51c   : > { %9381 = vmatprep.subr.bf16.mxu1 %v10082_v58  ;;  %v6770_v46 = vrot.slane %v6690_v61, %v11086_v12  ;;  %v6664_v38 = vmul.f32 %v6606_v39, %v6500_v52  ;;  %v6666_v47 = vmul.f32 %v6614_v42, %v6502_v25  ;;  %v10117_v52 = vld [vmem:[#allocation10 + $0x150] sm:$0xff]   ;;  %v6496_v32 = vld [vmem:[#allocation8 + $0x8] sm:$0xff]  ;;  %v10126_v30 = vld [vmem:[#allocation10 + $0x1c0] sm:$0xff]  }
 0x51d   : > { %v6663_v54 = vmul.f32 %v6602_v45, %v6499_v22  ;;  %v6665_v48 = vmul.f32 %v6610_v40, %v6501_v43  ;;  %v10118_v25 = vld [vmem:[#allocation10 + $0x1d0] sm:$0xff]   ;;  %v10123_v22 = vld [vmem:[#allocation10 + $0x108] sm:$0xff]   ;;  %v6504_v61 = vld [vmem:[#allocation2 + $0x68] sm:$0xff]  ;;  %v6702_v39 = vrot.slane %v6496_v32, %v11100_v24  ;;  %v6698_v45 = vrot.slane %v6496_v32, %v11086_v12 }
 0x51e   : > { %9360 = vmatpush3.bf16.msra.mxu0 %v10083_v31  ;;  %v6824_v34 = vadd.f32 %v6766_v13, %v6664_v38  ;;  %v6826_v4 = vadd.f32 %v6774_v9, %v6666_v47  ;;  %v10102_v31 = vld [vmem:[#allocation10 + $0x1f0] sm:$0xff]   ;;  %v10124_v43 = vld [vmem:[#allocation10 + $0x188] sm:$0xff]   ;;  %v6550_v13 = vrot.slane %v6496_v32, %v11216_v35  ;;  %v6506_v42 = vld [vmem:[#allocation2 + $0x48] sm:$0xff]  ;;  %v6710_v9 = vrot.slane %v6496_v32, %v11221_v37 }
 0x51f   : > { %9382 = vmatpush3.bf16.msra.mxu1 %v10084_v62  ;;  %9361 = vmatprep.subr.bf16.mxu0 %v10085_v11  ;;  %v6823_v8 = vadd.f32 %v6762_v59, %v6663_v54  ;;  %v6825_v15 = vadd.f32 %v6770_v46, %v6665_v48  ;;  %v10103_v62 = vld [vmem:[#allocation10 + $0x130] sm:$0xff]   ;;  %v10127_v59 = vld [vmem:[#allocation10 + $0x100] sm:$0xff]   ;;  %v6782_v38 = vrot.slane %v6702_v39, %v11086_v12 }
 0x520   : > { %9383 = vmatprep.subr.bf16.mxu1 %v10086_v0  ;;  %v6840_v41 = vmax.f32 %v6824_v34, 0.0  ;;  %v6842_v44 = vmax.f32 %v6826_v4, 0.0  ;;  %v10104_v11 = vld [vmem:[#allocation10 + $0x1b0] sm:$0xff]   ;;  %v10105_v0 = vld [vmem:[#allocation10 + $0x168] sm:$0xff]   ;;  %v10128_v40 = vld [vmem:[#allocation10 + $0x180] sm:$0xff]   ;;  %v6630_v47 = vrot.slane %v6550_v13, %v11074_v5  ;;  %v6546_v48 = vrot.slane %v6496_v32, %v11208_v49 }
 0x521   : > { %v6839_v16 = vmax.f32 %v6823_v8, 0.0  ;;  %v6841_v26 = vmax.f32 %v6825_v15, 0.0  ;;  %v10120_v28 = vld [vmem:[#allocation10 + $0x190] sm:$0xff]   ;;  %v6503_v54 = vld [vmem:[#allocation2 + $0x50] sm:$0xff]  ;;  %v6790_v34 = vrot.slane %v6710_v9, %v11086_v12  ;;  %v6778_v8 = vrot.slane %v6698_v45, %v11086_v12  ;;  %v6505_v15 = vld [vmem:[#allocation2 + $0x8] sm:$0xff] }
 0x522   : > { %9362 = vmatpush3.bf16.msra.mxu0 %v10087_v63  ;;  %v6856_v55 = vpack.c.bf16 %v6840_v41, %v6840_v41  ;;  %v6858_v51 = vpack.c.bf16 %v6842_v44, %v6842_v44  ;;  %v10106_v63 = vld [vmem:[#allocation10 + $0x1e8] sm:$0xff]   ;;  %v6706_v41 = vrot.slane %v6496_v32, %v11213_v33  ;;  %v10149_v39 = vld [vmem:[#allocation10 + $0x250] sm:$0xff]  }
 0x523   : > { %9384 = vmatpush3.bf16.msra.mxu1 %v10088_v1  ;;  %9363 = vmatprep.subr.bf16.mxu0 %v10089_v2  ;;  %v6855_v57 = vpack.c.bf16 %v6839_v16, %v6839_v16  ;;  %v6857_v58 = vpack.c.bf16 %v6841_v26, %v6841_v26  ;;  %v10107_v1 = vld [vmem:[#allocation10 + $0x128] sm:$0xff]   ;;  %v10129_v16 = vld [vmem:[#allocation10 + $0x278] sm:$0xff]   ;;  %v10150_v13 = vld [vmem:[#allocation10 + $0x2d0] sm:$0xff]  }
 0x524   : > { %9385 = vmatprep.subr.bf16.mxu1 %v10090_v3  ;;  %7934 = vmatprep.mubr.bf16.mxu0 %v6856_v55  ;;  %v10108_v2 = vld [vmem:[#allocation10 + $0x1a8] sm:$0xff]   ;;  %v10109_v3 = vld [vmem:[#allocation10 + $0x160] sm:$0xff]   ;;  %v6786_v55 = vrot.slane %v6706_v41, %v11086_v12  ;;  %v10152_v9 = vld [vmem:[#allocation10 + $0x290] sm:$0xff]  }
 0x525   : > { %7974 = vmatprep.mubr.bf16.mxu1 %v6858_v51  ;;  %v10130_v51 = vld [vmem:[#allocation10 + $0x2f8] sm:$0xff]   ;;  %v10154_v45 = vld [vmem:[#allocation10 + $0x2c8] sm:$0xff]  }
 0x526   : > { %9364 = vmatpush3.bf16.msra.mxu0 %v10091_v36  ;;  %v10110_v36 = vld [vmem:[#allocation10 + $0x1e0] sm:$0xff]  }
 0x527   : > { %9386 = vmatpush3.bf16.msra.mxu1 %v10092_v6  ;;  %9365 = vmatprep.subr.bf16.mxu0 %v10093_v21  ;;  %v10111_v6 = vld [vmem:[#allocation10 + $0x120] sm:$0xff]  }
 0x528   : > { %9387 = vmatprep.subr.bf16.mxu1 %v10094_v7  ;;  %v10112_v21 = vld [vmem:[#allocation10 + $0x1a0] sm:$0xff]   ;;  %v10113_v7 = vld [vmem:[#allocation10 + $0x158] sm:$0xff]  }
 0x52a   : > { %9366 = vmatpush3.bf16.msra.mxu0 %v10095_v18  ;;  %v10114_v18 = vld [vmem:[#allocation10 + $0x1d8] sm:$0xff]  }
 0x52b   : > { %9388 = vmatpush3.bf16.msra.mxu1 %v10096_v19  ;;  %9395 = vmatprep.subr.bf16.mxu0 %v10097_v50  ;;  %v10115_v19 = vld [vmem:[#allocation10 + $0x118] sm:$0xff]   ;;  %v6542_v50 = vrot.slane %v6496_v32, %v11089_v53 }
 0x52c   : > { %9417 = vmatprep.subr.bf16.mxu1 %v10098_v17  ;;  %v6538_v17 = vrot.slane %v6496_v32, %v11074_v5  ;;  %v10145_v32 = vld [vmem:[#allocation10 + $0x258] sm:$0xff]  }
 0x52d   : > { %7935 = vmatmul.mubr.bf16.vlgmr.msra.gmra.mxu0 %v6855_v57  ;;  %v6622_v46 = vrot.slane %v6542_v50, %v11074_v5  ;;  %v10148_v50 = vld [vmem:[#allocation10 + $0x298] sm:$0xff]  }
 0x52e   : > { %7975 = vmatmul.mubr.bf16.vlgmr.msra.gmra.mxu1 %v6857_v58  ;;  %9396 = vmatpush3.bf16.msra.mxu0 %v10099_v14  ;;  %v6618_v4 = vrot.slane %v6538_v17, %v11074_v5  ;;  %v6670_v14 = vmul.f32 %v6630_v47, %v6506_v42  ;;  %v10151_v42 = vld [vmem:[#allocation10 + $0x210] sm:$0xff]   ;;  %v10153_v17 = vld [vmem:[#allocation10 + $0x248] sm:$0xff]  }
 0x52f   : > { %9418 = vmatpush3.bf16.msra.mxu1 %v10100_v20  ;;  %9397 = vmatprep.subr.bf16.mxu0 %v10101_v56  ;;  %v6668_v44 = vmul.f32 %v6622_v46, %v6504_v61  ;;  %v6626_v20 = vrot.slane %v6546_v48, %v11074_v5  ;;  %v10147_v61 = vld [vmem:[#allocation10 + $0x218] sm:$0xff]   ;;  %v10156_v46 = vld [vmem:[#allocation10 + $0x288] sm:$0xff]   ;;  %v6508_v47 = vld [vmem:[#allocation2 + $0x20] sm:$0xff] }
 0x530   : > { %9419 = vmatprep.subr.bf16.mxu1 %v10102_v31  ;;  %v6667_v26 = vmul.f32 %v6618_v4, %v6503_v54  ;;  %v6830_v57 = vadd.f32 %v6790_v34, %v6670_v14  ;;  %v6510_v34 = vld [vmem:[#allocation2 + $0x38] sm:$0xff] }
 0x531   : > { %v6828_v56 = vadd.f32 %v6782_v38, %v6668_v44  ;;  %v6669_v58 = vmul.f32 %v6626_v20, %v6505_v15  ;;  %v10157_v38 = vld [vmem:[#allocation10 + $0x240] sm:$0xff]   ;;  %v6507_v15 = vld [vmem:[#allocation2 + $0x40] sm:$0xff] }
 0x532   : > { %9398 = vmatpush3.bf16.msra.mxu0 %v10103_v62  ;;  %v6827_v31 = vadd.f32 %v6778_v8, %v6667_v26 }
 0x533   : > { %9420 = vmatpush3.bf16.msra.mxu1 %v10104_v11  ;;  %9399 = vmatprep.subr.bf16.mxu0 %v10105_v0  ;;  %v6844_v62 = vmax.f32 %v6828_v56, 0.0  ;;  %v6846_v11 = vmax.f32 %v6830_v57, 0.0  ;;  %v6829_v0 = vadd.f32 %v6786_v55, %v6669_v58  ;;  %v10158_v56 = vld [vmem:[#allocation10 + $0x2c0] sm:$0xff]  }
 0x534   : > { %9421 = vmatprep.subr.bf16.mxu1 %v10106_v63  ;;  %v10131_v63 = vld [vmem:[#allocation10 + $0x238] sm:$0xff]  }
 0x536   : > { %9400 = vmatpush3.bf16.msra.mxu0 %v10107_v1  ;;  %v6843_v1 = vmax.f32 %v6827_v31, 0.0 }
 0x537   : > { %9422 = vmatpush3.bf16.msra.mxu1 %v10108_v2  ;;  %9401 = vmatprep.subr.bf16.mxu0 %v10109_v3  ;;  %v10132_v2 = vld [vmem:[#allocation10 + $0x2b8] sm:$0xff]   ;;  %v10133_v3 = vld [vmem:[#allocation10 + $0x270] sm:$0xff]  }
 0x538   : > { %9423 = vmatprep.subr.bf16.mxu1 %v10110_v36  ;;  %v6860_v36 = vpack.c.bf16 %v6844_v62, %v6844_v62 }
 0x53a   : > { %9402 = vmatpush3.bf16.msra.mxu0 %v10111_v6  ;;  %v6862_v6 = vpack.c.bf16 %v6846_v11, %v6846_v11  ;;  %8014 = vmatprep.mubr.bf16.mxu0 %v6860_v36  ;;  %v10159_v11 = vld [vmem:[#allocation10 + $0x200] sm:$0xff]  }
 0x53b   : > { %9424 = vmatpush3.bf16.msra.mxu1 %v10112_v21  ;;  %9403 = vmatprep.subr.bf16.mxu0 %v10113_v7  ;;  %v6845_v21 = vmax.f32 %v6829_v0, 0.0  ;;  %v10134_v7 = vld [vmem:[#allocation10 + $0x2f0] sm:$0xff]  }
 0x53c   : > { %9425 = vmatprep.subr.bf16.mxu1 %v10114_v18  ;;  %v6859_v18 = vpack.c.bf16 %v6843_v1, %v6843_v1  ;;  %8054 = vmatprep.mubr.bf16.mxu1 %v6862_v6 }
 0x53e   : > { %9404 = vmatpush3.bf16.msra.mxu0 %v10115_v19  ;;  %v6861_v19 = vpack.c.bf16 %v6845_v21, %v6845_v21 }
 0x53f   : > { %9426 = vmatpush3.bf16.msra.mxu1 %v10116_v23  ;;  %9405 = vmatprep.subr.bf16.mxu0 %v10117_v52  ;;  %v10135_v23 = vld [vmem:[#allocation10 + $0x230] sm:$0xff]  }
 0x540   : > { %9427 = vmatprep.subr.bf16.mxu1 %v10118_v25  ;;  %v10136_v52 = vld [vmem:[#allocation10 + $0x2b0] sm:$0xff]   ;;  %v10137_v25 = vld [vmem:[#allocation10 + $0x268] sm:$0xff]  }
 0x542   : > { %9406 = vmatpush3.bf16.msra.mxu0 %v10119_v27  ;;  %v10138_v27 = vld [vmem:[#allocation10 + $0x2e8] sm:$0xff]  }
 0x543   : > { %9428 = vmatpush3.bf16.msra.mxu1 %v10120_v28  ;;  %9407 = vmatprep.subr.bf16.mxu0 %v10121_v10  ;;  %v10139_v28 = vld [vmem:[#allocation10 + $0x228] sm:$0xff]  }
 0x544   : > { %9429 = vmatprep.subr.bf16.mxu1 %v10122_v29  ;;  %v10140_v10 = vld [vmem:[#allocation10 + $0x2a8] sm:$0xff]   ;;  %v10141_v29 = vld [vmem:[#allocation10 + $0x260] sm:$0xff]  }
 0x546   : > { %9408 = vmatpush3.bf16.msra.mxu0 %v10123_v22  ;;  %v10142_v22 = vld [vmem:[#allocation10 + $0x2e0] sm:$0xff]  }
 0x547   : > { %9430 = vmatpush3.bf16.msra.mxu1 %v10124_v43  ;;  %9409 = vmatprep.subr.bf16.mxu0 %v10125_v60  ;;  %v10143_v43 = vld [vmem:[#allocation10 + $0x220] sm:$0xff]  }
 0x548   : > { %9431 = vmatprep.subr.bf16.mxu1 %v10126_v30  ;;  %v10144_v60 = vld [vmem:[#allocation10 + $0x2a0] sm:$0xff]   ;;  %v10146_v30 = vld [vmem:[#allocation10 + $0x2d8] sm:$0xff]  }
 0x54a   : > { %9410 = vmatpush3.bf16.msra.mxu0 %v10127_v59  ;;  %v10155_v59 = vld [vmem:[#allocation10 + $0x208] sm:$0xff]  }
 0x54b   : > { %9432 = vmatpush3.bf16.msra.mxu1 %v10128_v40  ;;  %9439 = vmatprep.subr.bf16.mxu0 %v10129_v16  ;;  %v6497_v40 = vld [vmem:[#allocation8 + $0x10] sm:$0xff] }
 0x54c   : > { %9461 = vmatprep.subr.bf16.mxu1 %v10130_v51  ;;  %v6558_v54 = vrot.slane %v6497_v40, %v11089_v53  ;;  %v6718_v48 = vrot.slane %v6497_v40, %v11100_v24  ;;  %v6566_v4 = vrot.slane %v6497_v40, %v11216_v35  ;;  %v6726_v8 = vrot.slane %v6497_v40, %v11221_v37  ;;  %v6509_v51 = vld [vmem:[#allocation2 + $0x10] sm:$0xff] }
 0x54d   : > { %8015 = vmatmul.mubr.bf16.vlgmr.msra.gmra.mxu0 %v6859_v18  ;;  %v6554_v41 = vrot.slane %v6497_v40, %v11074_v5  ;;  %v6714_v44 = vrot.slane %v6497_v40, %v11086_v12  ;;  %v6562_v14 = vrot.slane %v6497_v40, %v11208_v49  ;;  %v6722_v20 = vrot.slane %v6497_v40, %v11213_v33  ;;  %v10175_v40 = vld [vmem:[#allocation10 + $0x320] sm:$0xff]  }
 0x54e   : > { %8055 = vmatmul.mubr.bf16.vlgmr.msra.gmra.mxu1 %v6861_v19  ;;  %9440 = vmatpush3.bf16.msra.mxu0 %v10131_v63  ;;  %v6638_v16 = vrot.slane %v6558_v54, %v11074_v5  ;;  %v6798_v26 = vrot.slane %v6718_v48, %v11086_v12  ;;  %v6646_v55 = vrot.slane %v6566_v4, %v11074_v5  ;;  %v10179_v54 = vld [vmem:[#allocation10 + $0x318] sm:$0xff]   ;;  %v10182_v4 = vld [vmem:[#allocation10 + $0x3d0] sm:$0xff]  }
 0x54f   : > { %9462 = vmatpush3.bf16.msra.mxu1 %v10132_v2  ;;  %9441 = vmatprep.subr.bf16.mxu0 %v10133_v3  ;;  %v6806_v57 = vrot.slane %v6726_v8, %v11086_v12  ;;  %v6634_v58 = vrot.slane %v6554_v41, %v11074_v5  ;;  %v6794_v31 = vrot.slane %v6714_v44, %v11086_v12  ;;  %v10160_v2 = vld [vmem:[#allocation10 + $0x280] sm:$0xff]   ;;  %v10180_v48 = vld [vmem:[#allocation10 + $0x398] sm:$0xff]   ;;  %v10183_v8 = vld [vmem:[#allocation10 + $0x310] sm:$0xff]  }
 0x550   : > { %9463 = vmatprep.subr.bf16.mxu1 %v10134_v7  ;;  %v6642_v62 = vrot.slane %v6562_v14, %v11074_v5  ;;  %v6672_v0 = vmul.f32 %v6638_v16, %v6508_v47  ;;  %v6674_v63 = vmul.f32 %v6646_v55, %v6510_v34  ;;  %v6802_v1 = vrot.slane %v6722_v20, %v11086_v12  ;;  %v10161_v7 = vld [vmem:[#allocation10 + $0x378] sm:$0xff]   ;;  %v10181_v34 = vld [vmem:[#allocation10 + $0x350] sm:$0xff]   ;;  %v10185_v41 = vld [vmem:[#allocation10 + $0x348] sm:$0xff]  }
 0x551   : > { %v6671_v3 = vmul.f32 %v6634_v58, %v6507_v15  ;;  %v10178_v47 = vld [vmem:[#allocation10 + $0x3d8] sm:$0xff]   ;;  %v10184_v15 = vld [vmem:[#allocation10 + $0x390] sm:$0xff]   ;;  %v10186_v44 = vld [vmem:[#allocation10 + $0x3c8] sm:$0xff]  }
 0x552   : > { %9442 = vmatpush3.bf16.msra.mxu0 %v10135_v23  ;;  %v6673_v36 = vmul.f32 %v6642_v62, %v6509_v51  ;;  %v6832_v6 = vadd.f32 %v6798_v26, %v6672_v0  ;;  %v6834_v21 = vadd.f32 %v6806_v57, %v6674_v63  ;;  %v10162_v23 = vld [vmem:[#allocation10 + $0x3f8] sm:$0xff]   ;;  %v10187_v20 = vld [vmem:[#allocation10 + $0x308] sm:$0xff]   ;;  %v10189_v26 = vld [vmem:[#allocation10 + $0x340] sm:$0xff]  }
 0x553   : > { %9464 = vmatpush3.bf16.msra.mxu1 %v10136_v52  ;;  %9443 = vmatprep.subr.bf16.mxu0 %v10137_v25  ;;  %v6831_v18 = vadd.f32 %v6794_v31, %v6671_v3  ;;  %v6498_v14 = vld [vmem:[#allocation8 + $0x18] sm:$0xff]  ;;  %v10188_v16 = vld [vmem:[#allocation10 + $0x388] sm:$0xff]   ;;  %v10190_v57 = vld [vmem:[#allocation10 + $0x3c0] sm:$0xff]  }
 0x554   : > { %9465 = vmatprep.subr.bf16.mxu1 %v10138_v27  ;;  %v6833_v19 = vadd.f32 %v6802_v1, %v6673_v36  ;;  %v6848_v52 = vmax.f32 %v6832_v6, 0.0  ;;  %v6850_v25 = vmax.f32 %v6834_v21, 0.0  ;;  %v10163_v27 = vld [vmem:[#allocation10 + $0x338] sm:$0xff]   ;;  %v6574_v55 = vrot.slane %v6498_v14, %v11089_v53  ;;  %v6512_v58 = vld [vmem:[#allocation2 + $0x70] sm:$0xff] }
 0x555   : > { %v6734_v51 = vrot.slane %v6498_v14, %v11100_v24  ;;  %v6514_v31 = vld [vmem:[#allocation2 + $0x28] sm:$0xff]  ;;  %v6742_v62 = vrot.slane %v6498_v14, %v11221_v37  ;;  %v6730_v0 = vrot.slane %v6498_v14, %v11086_v12  ;;  %v6511_v24 = vld [vmem:[#allocation2 + $0x60] sm:$0xff]  ;;  %v6513_v37 = vld [vmem:[#allocation2 + $0x78] sm:$0xff]  ;;  %v6738_v6 = vrot.slane %v6498_v14, %v11213_v33 }
 0x556   : > { %9444 = vmatpush3.bf16.msra.mxu0 %v10139_v28  ;;  %v10164_v28 = vld [vmem:[#allocation10 + $0x3b8] sm:$0xff]   ;;  %v6654_v63 = vrot.slane %v6574_v55, %v11074_v5  ;;  %v10191_v21 = vld [vmem:[#allocation10 + $0x300] sm:$0xff]  }
 0x557   : > { %9466 = vmatpush3.bf16.msra.mxu1 %v10140_v10  ;;  %9445 = vmatprep.subr.bf16.mxu0 %v10141_v29  ;;  %v6847_v10 = vmax.f32 %v6831_v18, 0.0  ;;  %v6849_v29 = vmax.f32 %v6833_v19, 0.0  ;;  %v6814_v1 = vrot.slane %v6734_v51, %v11086_v12  ;;  %v6810_v36 = vrot.slane %v6730_v0, %v11086_v12 }
 0x558   : > { %9467 = vmatprep.subr.bf16.mxu1 %v10142_v22  ;;  %v6864_v22 = vpack.c.bf16 %v6848_v52, %v6848_v52  ;;  %v6676_v18 = vmul.f32 %v6654_v63, %v6512_v58  ;;  %v6818_v52 = vrot.slane %v6738_v6, %v11086_v12 }
 0x55a   : > { %9446 = vmatpush3.bf16.msra.mxu0 %v10143_v43  ;;  %v6866_v43 = vpack.c.bf16 %v6850_v25, %v6850_v25  ;;  %8094 = vmatprep.mubr.bf16.mxu0 %v6864_v22  ;;  %v6836_v25 = vadd.f32 %v6814_v1, %v6676_v18 }
 0x55b   : > { %9468 = vmatpush3.bf16.msra.mxu1 %v10144_v60  ;;  %9447 = vmatprep.subr.bf16.mxu0 %v10145_v32  ;;  %v10165_v60 = vld [vmem:[#allocation10 + $0x370] sm:$0xff]   ;;  %v6863_v32 = vpack.c.bf16 %v6847_v10, %v6847_v10 }
 0x55c   : > { %9469 = vmatprep.subr.bf16.mxu1 %v10146_v30  ;;  %v6865_v30 = vpack.c.bf16 %v6849_v29, %v6849_v29  ;;  %8134 = vmatprep.mubr.bf16.mxu1 %v6866_v43  ;;  %v6852_v33 = vmax.f32 %v6836_v25, 0.0 }
 0x55e   : > { %9448 = vmatpush3.bf16.msra.mxu0 %v10147_v61  ;;  %v10166_v61 = vld [vmem:[#allocation10 + $0x3f0] sm:$0xff]  }
 0x55f   : > { %9470 = vmatpush3.bf16.msra.mxu1 %v10148_v50  ;;  %9449 = vmatprep.subr.bf16.mxu0 %v10149_v39  ;;  %v10167_v50 = vld [vmem:[#allocation10 + $0x330] sm:$0xff]  }
 0x560   : > { %9471 = vmatprep.subr.bf16.mxu1 %v10150_v13  ;;  %v10168_v39 = vld [vmem:[#allocation10 + $0x3b0] sm:$0xff]   ;;  %v10169_v13 = vld [vmem:[#allocation10 + $0x368] sm:$0xff]  }
 0x562   : > { %9450 = vmatpush3.bf16.msra.mxu0 %v10151_v42  ;;  %v10170_v42 = vld [vmem:[#allocation10 + $0x3e8] sm:$0xff]  }
 0x563   : > { %9472 = vmatpush3.bf16.msra.mxu1 %v10152_v9  ;;  %9451 = vmatprep.subr.bf16.mxu0 %v10153_v17  ;;  %v10171_v9 = vld [vmem:[#allocation10 + $0x328] sm:$0xff]  }
 0x564   : > { %9473 = vmatprep.subr.bf16.mxu1 %v10154_v45  ;;  %v10172_v17 = vld [vmem:[#allocation10 + $0x3a8] sm:$0xff]   ;;  %v10173_v45 = vld [vmem:[#allocation10 + $0x360] sm:$0xff]  }
 0x566   : > { %9452 = vmatpush3.bf16.msra.mxu0 %v10155_v59  ;;  %v10174_v59 = vld [vmem:[#allocation10 + $0x3e0] sm:$0xff]  }
 0x567   : > { %9474 = vmatpush3.bf16.msra.mxu1 %v10156_v46  ;;  %9453 = vmatprep.subr.bf16.mxu0 %v10157_v38  ;;  %v10176_v46 = vld [vmem:[#allocation10 + $0x3a0] sm:$0xff]   ;;  %v10177_v38 = vld [vmem:[#allocation10 + $0x358] sm:$0xff]  }
 0x568   : > { %9475 = vmatprep.subr.bf16.mxu1 %v10158_v56  ;;  %v6582_v56 = vrot.slane %v6498_v14, %v11216_v35  ;;  %v6578_v35 = vrot.slane %v6498_v14, %v11208_v49 }
 0x56a   : > { %9454 = vmatpush3.bf16.msra.mxu0 %v10159_v11  ;;  %v6570_v11 = vrot.slane %v6498_v14, %v11074_v5  ;;  %v6662_v53 = vrot.slane %v6582_v56, %v11074_v5 }
 0x56b   : > { %9476 = vmatpush3.bf16.msra.mxu1 %v10160_v2  ;;  %9483 = vmatprep.subr.bf16.mxu0 %v10161_v7  ;;  %v6822_v2 = vrot.slane %v6742_v62, %v11086_v12  ;;  %v10192_v7 = vld [vmem:[#allocation10 + $0x380] sm:$0xff]  }
 0x56c   : > { %9505 = vmatprep.subr.bf16.mxu1 %v10162_v23  ;;  %v6650_v3 = vrot.slane %v6570_v11, %v11074_v5  ;;  %v6678_v19 = vmul.f32 %v6662_v53, %v6514_v31  ;;  %v6658_v23 = vrot.slane %v6578_v35, %v11074_v5 }
 0x56d   : > { %8095 = vmatmul.mubr.bf16.vlgmr.msra.gmra.mxu0 %v6863_v32 }
 0x56e   : > { %8135 = vmatmul.mubr.bf16.vlgmr.msra.gmra.mxu1 %v6865_v30  ;;  %9484 = vmatpush3.bf16.msra.mxu0 %v10163_v27  ;;  %v6675_v49 = vmul.f32 %v6650_v3, %v6511_v24  ;;  %v6838_v27 = vadd.f32 %v6822_v2, %v6678_v19 }
 0x56f   : > { %9506 = vmatpush3.bf16.msra.mxu1 %v10164_v28  ;;  %9485 = vmatprep.subr.bf16.mxu0 %v10165_v60  ;;  %v6677_v28 = vmul.f32 %v6658_v23, %v6513_v37  ;;  %v6868_v60 = vpack.c.bf16 %v6852_v33, %v6852_v33 }
 0x570   : > { %9507 = vmatprep.subr.bf16.mxu1 %v10166_v61  ;;  %v6835_v10 = vadd.f32 %v6810_v36, %v6675_v49  ;;  %v6854_v29 = vmax.f32 %v6838_v27, 0.0 }
 0x571   : > { %v6837_v22 = vadd.f32 %v6818_v52, %v6677_v28  ;;  %8174 = vmatprep.mubr.bf16.mxu0 %v6868_v60 }
 0x572   : > { %9486 = vmatpush3.bf16.msra.mxu0 %v10167_v50  ;;  %v6851_v43 = vmax.f32 %v6835_v10, 0.0  ;;  %v6870_v32 = vpack.c.bf16 %v6854_v29, %v6854_v29 }
 0x573   : > { %9508 = vmatpush3.bf16.msra.mxu1 %v10168_v39  ;;  %9487 = vmatprep.subr.bf16.mxu0 %v10169_v13  ;;  %v6853_v30 = vmax.f32 %v6837_v22, 0.0  ;;  %v9215_v39 = vld [vmem:[#allocation11] ss:$0 sm:$0xff] }
 0x574   : > { %9509 = vmatprep.subr.bf16.mxu1 %v10170_v42  ;;  %v6867_v61 = vpack.c.bf16 %v6851_v43, %v6851_v43  ;;  %8214 = vmatprep.mubr.bf16.mxu1 %v6870_v32 }
 0x575   : > { %v6869_v5 = vpack.c.bf16 %v6853_v30, %v6853_v30 }
 0x576   : > { %9488 = vmatpush3.bf16.msra.mxu0 %v10171_v9 }
 0x577   : > { %9510 = vmatpush3.bf16.msra.mxu1 %v10172_v17  ;;  %9489 = vmatprep.subr.bf16.mxu0 %v10173_v45 }
 0x578   : > { %9511 = vmatprep.subr.bf16.mxu1 %v10174_v59 }
 0x57a   : > { %9490 = vmatpush3.bf16.msra.mxu0 %v10175_v40 }
 0x57b   : > { %9512 = vmatpush3.bf16.msra.mxu1 %v10176_v46  ;;  %9491 = vmatprep.subr.bf16.mxu0 %v10177_v38 }
 0x57c   : > { %9513 = vmatprep.subr.bf16.mxu1 %v10178_v47 }
 0x57e   : > { %9492 = vmatpush3.bf16.msra.mxu0 %v10179_v54 }
 0x57f   : > { %9514 = vmatpush3.bf16.msra.mxu1 %v10180_v48  ;;  %9493 = vmatprep.subr.bf16.mxu0 %v10181_v34 }
 0x580   : > { %9515 = vmatprep.subr.bf16.mxu1 %v10182_v4 }
 0x582   : > { %9494 = vmatpush3.bf16.msra.mxu0 %v10183_v8 }
 0x583   : > { %9516 = vmatpush3.bf16.msra.mxu1 %v10184_v15  ;;  %9495 = vmatprep.subr.bf16.mxu0 %v10185_v41 }
 0x584   : > { %9517 = vmatprep.subr.bf16.mxu1 %v10186_v44 }
 0x586   : > { %9496 = vmatpush3.bf16.msra.mxu0 %v10187_v20 }
 0x587   : > { %9518 = vmatpush3.bf16.msra.mxu1 %v10188_v16  ;;  %9497 = vmatprep.subr.bf16.mxu0 %v10189_v26 }
 0x588   : > { %9519 = vmatprep.subr.bf16.mxu1 %v10190_v57 }
 0x58a   : > { %9498 = vmatpush3.bf16.msra.mxu0 %v10191_v21 }
 0x58b   : > { %9520 = vmatpush3.bf16.msra.mxu1 %v10192_v7 }
 0x58d   : > { %8175 = vmatmul.mubr.bf16.vlgmr.msra.gmra.mxu0 %v6867_v61 }
 0x58e   : > { %8215 = vmatmul.mubr.bf16.vlgmr.msra.gmra.mxu1 %v6869_v5 }
 0x5ed   : > { %v9367_v12 = vpop.f32.mrf.mxu0 }
 0x5ee   : > { %v9389_v50 = vpop.f32.mrf.mxu1 }
 0x5ef   : > { %v9368_v13 = vpop.f32.mrf.mxu0 }
 0x5f0   : > { %v9390_v42 = vpop.f32.mrf.mxu1  ;;  %v9369_v9 = vadd.f32 %v9368_v13, %v9367_v12 }
 0x5f1   : > { %v9391_v17 = vadd.f32 %v9390_v42, %v9389_v50  ;;  %v9370_v45 = vpop.f32.mrf.mxu0 }
 0x5f2   : > { %v9392_v59 = vpop.f32.mrf.mxu1  ;;  %v7937_v40 = vadd.f32 %v9369_v9, %v9215_v39 }
 0x5f3   : > { %v9371_v46 = vpop.f32.mrf.mxu0 }
 0x5f4   : > { %v9393_v38 = vpop.f32.mrf.mxu1  ;;  %v7977_v47 = vadd.f32 %v9391_v17, %v7937_v40 }
 0x60d   : > { %v9411_v54 = vpop.f32.mrf.mxu0 }
 0x60e   : > { %v9433_v48 = vpop.f32.mrf.mxu1 }
 0x60f   : > { %v9412_v34 = vpop.f32.mrf.mxu0 }
 0x610   : > { %v9434_v4 = vpop.f32.mrf.mxu1  ;;  %v9413_v58 = vadd.f32 %v9412_v34, %v9411_v54 }
 0x611   : > { %v9414_v8 = vpop.f32.mrf.mxu0  ;;  %v9435_v62 = vadd.f32 %v9434_v4, %v9433_v48 }
 0x612   : > { %v9436_v15 = vpop.f32.mrf.mxu1  ;;  %v8017_v31 = vadd.f32 %v9413_v58, %v7977_v47 }
 0x613   : > { %v9415_v41 = vpop.f32.mrf.mxu0 }
 0x614   : > { %v9437_v44 = vpop.f32.mrf.mxu1  ;;  %v8057_v0 = vadd.f32 %v9435_v62, %v8017_v31 }
 0x62d   : > { %v9455_v14 = vpop.f32.mrf.mxu0 }
 0x62e   : > { %v9477_v20 = vpop.f32.mrf.mxu1 }
 0x62f   : > { %v9456_v16 = vpop.f32.mrf.mxu0 }
 0x630   : > { %v9478_v26 = vpop.f32.mrf.mxu1  ;;  %v9457_v11 = vadd.f32 %v9456_v16, %v9455_v14 }
 0x631   : > { %v9458_v55 = vpop.f32.mrf.mxu0  ;;  %v9479_v1 = vadd.f32 %v9478_v26, %v9477_v20 }
 0x632   : > { %v9480_v51 = vpop.f32.mrf.mxu1  ;;  %v8097_v63 = vadd.f32 %v9457_v11, %v8057_v0 }
 0x633   : > { %v9459_v56 = vpop.f32.mrf.mxu0 }
 0x634   : > { %v9481_v57 = vpop.f32.mrf.mxu1  ;;  %v8137_v2 = vadd.f32 %v9479_v1, %v8097_v63 }
 0x64d   : > { %v9499_v53 = vpop.f32.mrf.mxu0 }
 0x64e   : > { %v9521_v24 = vpop.f32.mrf.mxu1 }
 0x64f   : > { %v9500_v35 = vpop.f32.mrf.mxu0 }
 0x650   : > { %v9501_v3 = vadd.f32 %v9500_v35, %v9499_v53  ;;  %v9522_v36 = vpop.f32.mrf.mxu1 }
 0x651   : > { %v9502_v37 = vpop.f32.mrf.mxu0  ;;  %v9523_v21 = vadd.f32 %v9522_v36, %v9521_v24 }
 0x652   : > { %v8177_v6 = vadd.f32 %v9501_v3, %v8137_v2  ;;  %v9524_v7 = vpop.f32.mrf.mxu1 }
 0x653   : > { %v9503_v18 = vpop.f32.mrf.mxu0 }
 0x654   : > { %v8217_v19 = vadd.f32 %v9523_v21, %v8177_v6  ;;  %v9525_v23 = vpop.f32.mrf.mxu1 }
 0x656   : > { %8222 = vmax.xlane.f32.xlu0 %v8217_v19 }
 0x6df   : > { %v8223_v49 = vpop.xlane.xlu0 %8222 }
 0x6e0   : > { %v8224_v52 = vsub.f32 %v8217_v19, %v8223_v49 }
 0x6e2   : > { %v8225_v25 = vmul.f32 1.442695, %v8224_v52 }
 0x6e4   : > { %10193 = vpow2.f32 %v8225_v25 }
 0x6f1   : > { %v10194_v27 = vpop.eup %10193 }
 0x6f2   : > { %8227 = vadd.xlane.f32.xlu0 %v10194_v27 }
 0x77b   : > { %v8228_v28 = vpop.xlane.xlu0 %8227 }
 0x77c   : > { %10195 = vlog2.f32 %v8228_v28 }
 0x789   : > { %v10196_v10 = vpop.eup %10195 }
 0x78a   : > { %v8230_v33 = vmul.f32 0.6931472, %v10196_v10 }
 0x78c   : > { %v8231_v29 = vadd.f32 %v8230_v33, %v8223_v49 }
 0x78e   : > { %v8232_v22 = vsub.f32 %v8217_v19, %v8231_v29 }
 0x790   : > { %8233 = vst [vmem:[%s11785_s7] sm:$0xff] %v8232_v22 }
 0x791 PF: > { %s25_s29 = sadd.s32 1, %s10421_s29   ;;  %s11816_s10 = sld [smem:[#allocation18_spill]] }
 0x792   : > { %p22_p8 = scmp.ge.s32.totalorder %s25_s29, 8   ;;  %s11817_s15 = sld [smem:[#allocation17_spill]] }
 0x793   : > { %s11818_s24 = smov %s10405_s25  ;;  %s11819_s25 = smov %s10409_s26 }
 0x794   : > { %s11821_s27 = smov %s10417_s28  ;;  %24 = sbr.rel (!%p22_p8) target bundleno = 14 (0xe), region = 135 }
 0x797   : > { %s11820_s26 = smov %s11816_s10 }
 0x798   : > { %s11822_s28 = smov %s11817_s15 }
 0x799   :  { %8253 = vsyncpa [#allocation4], 1 }
 0x79a   :  { %8255 = vsyncpa [#allocation4 + $0x1], 1 }
 0x79b   :  { %8256 = vsyncpa [#allocation6], 1 }
 0x79c   :  { %8258 = vsyncpa [#allocation6 + $0x1], 1 }
 0x79d   :  { %8259 = vsyncpa [#allocation9], 1 }
 0x79e   :  { %8260 = vsyncpa [#allocation12], 1 }

</bundles_post_ra>
